<compile_context>
chip_gen: v5e
topology: v5e:2x2
jax: 0.10.0
libtpu: 0.0.40
codegen_flags: <defaults>
</compile_context>

<pallas_src>
import functools
import math

import jax
import jax.numpy as jnp
from jax.experimental import pallas as pl
from jax.experimental.pallas import tpu as pltpu

# ---------------- tiny synthetic model config (deterministic weights) --------
H_REAL = 32            # real hidden size of the synthetic model
HP = 128               # hidden padded to one full 128-lane vreg
FF_REAL = 64
FFP = 128              # FFN width padded to a 128x128 MXU tile
HEADS = 2
HEAD_DIM = H_REAL // HEADS
HB = 128               # per-head lane block inside the fused QKV projection
BERT_LAYERS = 2
EXT_LAYERS = 2
VOCAB = 64
MAX_POS = 64
BERT_LN_EPS = 1e-12
EXT_LN_EPS = 1e-6


# ------------------------- in-kernel building blocks --------------------------
def _ln(x, g, b, eps, lane_ok):
    """LayerNorm over the real H_REAL lanes of a lane-padded [R, HP] tile.

    Padded lanes of x are zero on entry; g/b are zero-padded so the padded
    lanes stay exactly zero on exit.  All math in f32 (v5e-safe)."""
    mu = jnp.sum(x, axis=-1, keepdims=True) * (1.0 / H_REAL)
    c = jnp.where(lane_ok, x - mu, 0.0)
    var = jnp.sum(c * c, axis=-1, keepdims=True) * (1.0 / H_REAL)
    return c * jax.lax.rsqrt(var + eps) * g + b


def _dot_bf16(a_f32, w_bf16):
    # MXU-native bf16 operands, f32 accumulation.
    return jnp.dot(a_f32.astype(jnp.bfloat16), w_bf16,
                   preferred_element_type=jnp.float32)


def _mha(inp, wqkv, bqkv, woh, bias, heads):
    """Multi-head attention.

    inp  : [R, HP]  f32 (padded lanes zero)
    wqkv : [HP, heads*3*HB] bf16, per-head lane blocks [q|k|v]; Q pre-scaled
    bqkv : [1, heads*3*HB]  f32
    woh  : [heads, HB, HP]  bf16 output-projection rows per head
    bias : [1, R] additive key bias
    Head merge is fused into the output projection (no lane concat)."""
    qkv = jnp.dot(inp.astype(jnp.bfloat16), wqkv,
                  preferred_element_type=jnp.float32) + bqkv
    attn = None
    for h in range(heads):                      # static unroll (HEADS=2)
        base = h * 3 * HB
        q = qkv[:, base:base + HB].astype(jnp.bfloat16)
        k = qkv[:, base + HB:base + 2 * HB].astype(jnp.bfloat16)
        v = qkv[:, base + 2 * HB:base + 3 * HB].astype(jnp.bfloat16)
        # contract last dims of both operands -> no explicit K transpose
        s = jax.lax.dot_general(q, k, (((1,), (1,)), ((), ())),
                                preferred_element_type=jnp.float32) + bias
        s = s - jnp.max(s, axis=-1, keepdims=True)
        p = jnp.exp(s)
        p = p * pl.reciprocal(jnp.sum(p, axis=-1, keepdims=True), approx=False)
        ctx = jnp.dot(p.astype(jnp.bfloat16), v,
                      preferred_element_type=jnp.float32)          # [R, HB]
        contrib = jnp.dot(ctx.astype(jnp.bfloat16), woh[h],
                          preferred_element_type=jnp.float32)      # [R, HP]
        attn = contrib if attn is None else attn + contrib
    return attn


# ------------------------------ Pallas kernels --------------------------------
def _bert_encoder_kernel(x_ref, mask_ref, embg_ref, embb_ref,
                         wqkv_ref, bqkv_ref, woh_ref, bo_ref,
                         ln1g_ref, ln1b_ref, w1_ref, b1_ref, w2_ref, b2_ref,
                         ln2g_ref, ln2b_ref, o_ref,
                         *, layers, heads, eps):
    x = x_ref[...]                                    # [S, HP] f32, padded lanes 0
    bias = (1.0 - mask_ref[...]) * -10000.0           # [1, S] additive key bias
    lane_ok = jax.lax.broadcasted_iota(jnp.int32, x.shape, 1) < H_REAL
    x = _ln(x, embg_ref[...], embb_ref[...], eps, lane_ok)   # embedding LayerNorm
    # TODO(synk): if BERT_LAYERS scales up, switch this static unroll to
    #             lax.fori_loop(..., unroll=True) over the stacked weights.
    for l in range(layers):
        attn = _mha(x, wqkv_ref[l], bqkv_ref[l], woh_ref[l], bias, heads)
        attn = attn + bo_ref[l]
        h1 = _ln(x + attn, ln1g_ref[l], ln1b_ref[l], eps, lane_ok)
        # TODO(synk): HF BERT uses exact erf-GELU; tanh approximation used here.
        ff = jax.nn.gelu(_dot_bf16(h1, w1_ref[l]) + b1_ref[l], approximate=True)
        ff = _dot_bf16(ff, w2_ref[l]) + b2_ref[l]
        x = _ln(h1 + ff, ln2g_ref[l], ln2b_ref[l], eps, lane_ok)
    o_ref[...] = x


def _ext_encoder_kernel(x_ref, mask_ref, lng_ref, lnb_ref,
                        wqkv_ref, bqkv_ref, woh_ref, bfin_ref,
                        ffng_ref, ffnb_ref, w1_ref, b1_ref, w2_ref, b2_ref,
                        fing_ref, finb_ref, wo_ref, bo_ref, o_ref,
                        *, layers, heads, eps):
    x = x_ref[...]                                    # [N, HP] f32, padded lanes 0
    bias = (1.0 - mask_ref[...]) * -1e18              # [1, N]
    lane_ok = jax.lax.broadcasted_iota(jnp.int32, x.shape, 1) < H_REAL
    for l in range(layers):
        inp = x if l == 0 else _ln(x, lng_ref[l], lnb_ref[l], eps, lane_ok)
        attn = _mha(inp, wqkv_ref[l], bqkv_ref[l], woh_ref[l], bias, heads)
        out = attn + bfin_ref[l] + x                  # dropout = identity (eval)
        normed = _ln(out, ffng_ref[l], ffnb_ref[l], eps, lane_ok)
        # PreSumm FFN uses the tanh-approx GELU -> exact match.
        ff = jax.nn.gelu(_dot_bf16(normed, w1_ref[l]) + b1_ref[l], approximate=True)
        ff = _dot_bf16(ff, w2_ref[l]) + b2_ref[l]
        x = ff + out
    # final LayerNorm + scorer (lane-dense [N, 128] logits slab, column 0 is real)
    xn = _ln(x, fing_ref[...], finb_ref[...], eps, lane_ok)
    logits = _dot_bf16(xn, wo_ref[...]) + bo_ref[...]
    o_ref[...] = jax.nn.sigmoid(logits)


# --------------------------- pallas_call wrappers ------------------------------
def _full_spec(a):
    idx = (0,) * a.ndim
    return pl.BlockSpec(a.shape, lambda b, idx=idx: idx)


def bert_encoder_fused(p, emb, mask_f):
    B, S, _ = emb.shape
    weights = [p["emb_ln_g"], p["emb_ln_b"], p["wqkv"], p["bqkv"], p["woh"],
               p["bo"], p["ln1_g"], p["ln1_b"], p["w1"], p["b1"],
               p["w2"], p["b2"], p["ln2_g"], p["ln2_b"]]
    return pl.pallas_call(
        functools.partial(_bert_encoder_kernel, layers=BERT_LAYERS, heads=HEADS,
                          eps=BERT_LN_EPS),
        out_shape=jax.ShapeDtypeStruct((B, S, HP), jnp.float32),
        grid=(B,),
        in_specs=[pl.BlockSpec((None, S, HP), lambda b: (b, 0, 0)),
                  pl.BlockSpec((None, 1, S), lambda b: (b, 0, 0))]
                 + [_full_spec(w) for w in weights],
        out_specs=pl.BlockSpec((None, S, HP), lambda b: (b, 0, 0)),
        compiler_params=pltpu.CompilerParams(dimension_semantics=("parallel",)),
    )(emb, mask_f, *weights)


def ext_encoder_fused(p, x0, mask_f):
    B, N, _ = x0.shape
    weights = [p["ln_g"], p["ln_b"], p["wqkv"], p["bqkv"], p["woh"], p["bfin"],
               p["ffn_ln_g"], p["ffn_ln_b"], p["w1"], p["b1"], p["w2"], p["b2"],
               p["fin_ln_g"], p["fin_ln_b"], p["wo"], p["bo"]]
    return pl.pallas_call(
        functools.partial(_ext_encoder_kernel, layers=EXT_LAYERS, heads=HEADS,
                          eps=EXT_LN_EPS),
        out_shape=jax.ShapeDtypeStruct((B, N, 128), jnp.float32),
        grid=(B,),
        in_specs=[pl.BlockSpec((None, N, HP), lambda b: (b, 0, 0)),
                  pl.BlockSpec((None, 1, N), lambda b: (b, 0, 0))]
                 + [_full_spec(w) for w in weights],
        out_specs=pl.BlockSpec((None, N, 128), lambda b: (b, 0, 0)),
        compiler_params=pltpu.CompilerParams(dimension_semantics=("parallel",)),
    )(x0, mask_f, *weights)


# --------------------------- model forward (glue) -----------------------------
def ext_summarizer_forward(params, src, segs, clss, mask_src, mask_cls):
    pb, pe_ = params["bert"], params["ext"]
    B, S = src.shape
    N = clss.shape[1]
    # TODO(synk): pretrained BertModel weights/config cannot be loaded here; a
    # tiny synthetic BERT encoder with the same forward structure is used.
    emb = pb["word_emb"][src] + pb["pos_emb"][None, :S, :] + pb["seg_emb"][segs]
    mask_src_f = mask_src.astype(jnp.float32)[:, None, :]          # [B, 1, S]
    top_vec = bert_encoder_fused(pb, emb, mask_src_f)              # launch 1

    # sents_vec = top_vec[arange(B)[:, None], clss]
    sents_vec = jnp.take_along_axis(top_vec, clss[:, :, None], axis=1)
    mask_cls_f = mask_cls.astype(jnp.float32)
    x0 = sents_vec * mask_cls_f[:, :, None] + pe_["pe"][None, :N, :]

    scores_pad = ext_encoder_fused(pe_, x0, mask_cls_f[:, None, :])  # launch 2
    sent_scores = scores_pad[:, :, 0] * mask_cls_f
    return sent_scores, mask_cls


# ------------------------------ parameter init --------------------------------
def init_params(key):
    keys = iter(jax.random.split(key, 256))

    def nrm(shape, scale=0.02):
        return scale * jax.random.normal(next(keys), shape, jnp.float32)

    def xav(shape):
        lim = math.sqrt(6.0 / (shape[0] + shape[1]))
        return jax.random.uniform(next(keys), shape, jnp.float32, -lim, lim)

    scale = 1.0 / math.sqrt(HEAD_DIM)

    def pad_vec(v, n):                       # [m] -> zero-padded [1, n]
        return jnp.zeros((1, n), jnp.float32).at[0, :v.shape[0]].set(v)

    def pad_mat(m, r, c):                    # [a,b] -> zero-padded [r, c]
        return jnp.zeros((r, c), jnp.float32).at[:m.shape[0], :m.shape[1]].set(m)

    ones_h = jnp.ones((H_REAL,), jnp.float32)
    zero_h = jnp.zeros((H_REAL,), jnp.float32)
    zero_ff = jnp.zeros((FF_REAL,), jnp.float32)

    def pack_qkv(wq, wk, wv):
        # Fold 1/sqrt(head_dim) into Q; pack per head as [q|k|v] 128-lane blocks.
        W = jnp.zeros((HP, HEADS * 3 * HB), jnp.float32)
        for h in range(HEADS):
            cs = slice(h * HEAD_DIM, (h + 1) * HEAD_DIM)
            base = h * 3 * HB
            W = W.at[:H_REAL, base:base + HEAD_DIM].set(wq[:, cs] * scale)
            W = W.at[:H_REAL, base + HB:base + HB + HEAD_DIM].set(wk[:, cs])
            W = W.at[:H_REAL, base + 2 * HB:base + 2 * HB + HEAD_DIM].set(wv[:, cs])
        bqkv = jnp.zeros((1, HEADS * 3 * HB), jnp.float32)   # zero biases
        return W.astype(jnp.bfloat16), bqkv

    def pack_wo(wo):
        # wo rows = concat head outputs; split per head, pad to [HEADS, HB, HP].
        Wh = jnp.zeros((HEADS, HB, HP), jnp.float32)
        for h in range(HEADS):
            rs = slice(h * HEAD_DIM, (h + 1) * HEAD_DIM)
            Wh = Wh.at[h, :HEAD_DIM, :H_REAL].set(wo[rs, :])
        return Wh.astype(jnp.bfloat16)

    def bert_layer():
        wqkv, bqkv = pack_qkv(nrm((H_REAL, H_REAL)), nrm((H_REAL, H_REAL)),
                              nrm((H_REAL, H_REAL)))
        return dict(
            wqkv=wqkv, bqkv=bqkv,
            woh=pack_wo(nrm((H_REAL, H_REAL))), bo=pad_vec(zero_h, HP),
            ln1_g=pad_vec(ones_h, HP), ln1_b=pad_vec(zero_h, HP),
            w1=pad_mat(nrm((H_REAL, FF_REAL)), HP, FFP).astype(jnp.bfloat16),
            b1=pad_vec(zero_ff, FFP),
            w2=pad_mat(nrm((FF_REAL, H_REAL)), FFP, HP).astype(jnp.bfloat16),
            b2=pad_vec(zero_h, HP),
            ln2_g=pad_vec(ones_h, HP), ln2_b=pad_vec(zero_h, HP),
        )

    def ext_layer():
        wqkv, bqkv = pack_qkv(xav((H_REAL, H_REAL)), xav((H_REAL, H_REAL)),
                              xav((H_REAL, H_REAL)))
        return dict(
            ln_g=pad_vec(ones_h, HP), ln_b=pad_vec(zero_h, HP),
            wqkv=wqkv, bqkv=bqkv,
            woh=pack_wo(xav((H_REAL, H_REAL))), bfin=pad_vec(zero_h, HP),
            ffn_ln_g=pad_vec(ones_h, HP), ffn_ln_b=pad_vec(zero_h, HP),
            w1=pad_mat(xav((H_REAL, FF_REAL)), HP, FFP).astype(jnp.bfloat16),
            b1=pad_vec(zero_ff, FFP),
            w2=pad_mat(xav((FF_REAL, H_REAL)), FFP, HP).astype(jnp.bfloat16),
            b2=pad_vec(zero_h, HP),
        )

    def stack(layer_list):
        return {k: jnp.stack([lyr[k] for lyr in layer_list]) for k in layer_list[0]}

    bert_layers = [bert_layer() for _ in range(BERT_LAYERS)]
    bert = dict(
        word_emb=pad_mat(nrm((VOCAB, H_REAL)), VOCAB, HP),
        pos_emb=pad_mat(nrm((MAX_POS, H_REAL)), MAX_POS, HP),
        seg_emb=pad_mat(nrm((2, H_REAL)), 2, HP),
        emb_ln_g=pad_vec(ones_h, HP), emb_ln_b=pad_vec(zero_h, HP),
        **stack(bert_layers),
    )

    # sinusoidal positional encoding (PreSumm PositionalEncoding.pe), lane-padded
    position = jnp.arange(MAX_POS, dtype=jnp.float32)[:, None]
    div_term = jnp.exp(jnp.arange(0, H_REAL, 2, dtype=jnp.float32)
                       * -(math.log(10000.0) / H_REAL))
    pe_real = jnp.zeros((MAX_POS, H_REAL), jnp.float32)
    pe_real = pe_real.at[:, 0::2].set(jnp.sin(position * div_term))
    pe_real = pe_real.at[:, 1::2].set(jnp.cos(position * div_term))

    wo_col = xav((H_REAL, 1))                       # scorer weight, column 0 real
    wo_pad = jnp.zeros((HP, 128), jnp.float32).at[:H_REAL, 0:1].set(wo_col)

    ext_layers = [ext_layer() for _ in range(EXT_LAYERS)]
    ext = dict(
        pe=pad_mat(pe_real, MAX_POS, HP),
        fin_ln_g=pad_vec(ones_h, HP), fin_ln_b=pad_vec(zero_h, HP),
        wo=wo_pad.astype(jnp.bfloat16), bo=jnp.zeros((1, 1), jnp.float32),
        **stack(ext_layers),
    )
    return dict(bert=bert, ext=ext)


# ----------------------------------- main --------------------------------------
if __name__ == "__main__":
    key = jax.random.PRNGKey(0)
    k_par, k_src, k_seg, k_cls = jax.random.split(key, 4)

    B, S, NC = 2, 16, 8
    params = init_params(k_par)

    src = jax.random.randint(k_src, (B, S), 0, VOCAB, dtype=jnp.int32)
    segs = jax.random.randint(k_seg, (B, S), 0, 2, dtype=jnp.int32)
    clss = jnp.sort(jax.random.randint(k_cls, (B, NC), 0, S, dtype=jnp.int32), axis=1)
    src_lens = jnp.array([S, 12], dtype=jnp.int32)
    cls_lens = jnp.array([NC, 6], dtype=jnp.int32)
    mask_src = jnp.arange(S)[None, :] < src_lens[:, None]   # [B, S] bool
    mask_cls = jnp.arange(NC)[None, :] < cls_lens[:, None]  # [B, NC] bool

    fwd = jax.jit(ext_summarizer_forward)
    sent_scores, out_mask = fwd(params, src, segs, clss, mask_src, mask_cls)
    jax.block_until_ready(sent_scores)

    assert sent_scores.shape == (B, NC)
    assert out_mask.shape == (B, NC)
    assert bool(jnp.all(jnp.isfinite(sent_scores)))
    # masked-out (padded) sentence positions must score exactly zero
    assert float(jnp.abs(jnp.where(out_mask, 0.0, sent_scores)).max()) == 0.0
    print("KERNEL_OK")
</pallas_src>

<mosaic_0001>
module attributes {stable_mosaic.version = 11 : i64} {
  func.func @_bert_encoder_kernel(%arg0: i32, %arg1: memref<1x16x128xf32, #tpu.memory_space<vmem>>, %arg2: memref<1x1x16xf32, #tpu.memory_space<vmem>>, %arg3: memref<1x128xf32, #tpu.memory_space<vmem>>, %arg4: memref<1x128xf32, #tpu.memory_space<vmem>>, %arg5: memref<2x128x768xbf16, #tpu.memory_space<vmem>>, %arg6: memref<2x1x768xf32, #tpu.memory_space<vmem>>, %arg7: memref<2x2x128x128xbf16, #tpu.memory_space<vmem>>, %arg8: memref<2x1x128xf32, #tpu.memory_space<vmem>>, %arg9: memref<2x1x128xf32, #tpu.memory_space<vmem>>, %arg10: memref<2x1x128xf32, #tpu.memory_space<vmem>>, %arg11: memref<2x128x128xbf16, #tpu.memory_space<vmem>>, %arg12: memref<2x1x128xf32, #tpu.memory_space<vmem>>, %arg13: memref<2x128x128xbf16, #tpu.memory_space<vmem>>, %arg14: memref<2x1x128xf32, #tpu.memory_space<vmem>>, %arg15: memref<2x1x128xf32, #tpu.memory_space<vmem>>, %arg16: memref<2x1x128xf32, #tpu.memory_space<vmem>>, %arg17: memref<1x16x128xf32, #tpu.memory_space<vmem>>) attributes {dimension_semantics = [#tpu.dimension_semantics<parallel>], iteration_bounds = array<i64: 2>, scalar_prefetch = 0 : i64, scratch_operands = 0 : i64, tpu.core_type = #tpu.core_type<tc>, window_params = [{transform_indices = @transform_0, window_bounds = array<i64: 1, 16, 128>}, {transform_indices = @transform_1, window_bounds = array<i64: 1, 1, 16>}, {pipeline_mode = #tpu.pipeline_mode<synchronous>, transform_indices = @transform_2, window_bounds = array<i64: 1, 128>}, {pipeline_mode = #tpu.pipeline_mode<synchronous>, transform_indices = @transform_3, window_bounds = array<i64: 1, 128>}, {pipeline_mode = #tpu.pipeline_mode<synchronous>, transform_indices = @transform_4, window_bounds = array<i64: 2, 128, 768>}, {pipeline_mode = #tpu.pipeline_mode<synchronous>, transform_indices = @transform_5, window_bounds = array<i64: 2, 1, 768>}, {pipeline_mode = #tpu.pipeline_mode<synchronous>, transform_indices = @transform_6, window_bounds = array<i64: 2, 2, 128, 128>}, {pipeline_mode = #tpu.pipeline_mode<synchronous>, transform_indices = @transform_7, window_bounds = array<i64: 2, 1, 128>}, {pipeline_mode = #tpu.pipeline_mode<synchronous>, transform_indices = @transform_8, window_bounds = array<i64: 2, 1, 128>}, {pipeline_mode = #tpu.pipeline_mode<synchronous>, transform_indices = @transform_9, window_bounds = array<i64: 2, 1, 128>}, {pipeline_mode = #tpu.pipeline_mode<synchronous>, transform_indices = @transform_10, window_bounds = array<i64: 2, 128, 128>}, {pipeline_mode = #tpu.pipeline_mode<synchronous>, transform_indices = @transform_11, window_bounds = array<i64: 2, 1, 128>}, {pipeline_mode = #tpu.pipeline_mode<synchronous>, transform_indices = @transform_12, window_bounds = array<i64: 2, 128, 128>}, {pipeline_mode = #tpu.pipeline_mode<synchronous>, transform_indices = @transform_13, window_bounds = array<i64: 2, 1, 128>}, {pipeline_mode = #tpu.pipeline_mode<synchronous>, transform_indices = @transform_14, window_bounds = array<i64: 2, 1, 128>}, {pipeline_mode = #tpu.pipeline_mode<synchronous>, transform_indices = @transform_15, window_bounds = array<i64: 2, 1, 128>}, {transform_indices = @transform_16, window_bounds = array<i64: 1, 16, 128>}]} {
    %c0 = arith.constant 0 : index
    %c0_0 = arith.constant 0 : index
    %c0_1 = arith.constant 0 : index
    %0 = vector.load %arg1[%c0, %c0_0, %c0_1] : memref<1x16x128xf32, #tpu.memory_space<vmem>>, vector<1x16x128xf32>
    %1 = vector.shape_cast %0 : vector<1x16x128xf32> to vector<16x128xf32>
    %c0_2 = arith.constant 0 : index
    %c0_3 = arith.constant 0 : index
    %c0_4 = arith.constant 0 : index
    %2 = vector.load %arg2[%c0_2, %c0_3, %c0_4] : memref<1x1x16xf32, #tpu.memory_space<vmem>>, vector<1x1x16xf32>
    %3 = vector.shape_cast %2 : vector<1x1x16xf32> to vector<1x16xf32>
    %cst = arith.constant 1.000000e+00 : f32
    %4 = vector.broadcast %cst : f32 to vector<1x16xf32>
    %5 = arith.subf %4, %3 : vector<1x16xf32>
    %cst_5 = arith.constant -1.000000e+04 : f32
    %6 = vector.broadcast %cst_5 : f32 to vector<1x16xf32>
    %7 = arith.mulf %5, %6 : vector<1x16xf32>
    %8 = tpu.iota {dimensions = array<i32: 1>} : vector<16x128xi32>
    %c32_i32 = arith.constant 32 : i32
    %9 = vector.broadcast %c32_i32 : i32 to vector<16x128xi32>
    %10 = arith.cmpi slt, %8, %9 : vector<16x128xi32>
    %c0_6 = arith.constant 0 : index
    %c0_7 = arith.constant 0 : index
    %11 = vector.load %arg3[%c0_6, %c0_7] : memref<1x128xf32, #tpu.memory_space<vmem>>, vector<1x128xf32>
    %c0_8 = arith.constant 0 : index
    %c0_9 = arith.constant 0 : index
    %12 = vector.load %arg4[%c0_8, %c0_9] : memref<1x128xf32, #tpu.memory_space<vmem>>, vector<1x128xf32>
    %cst_10 = arith.constant dense<0.000000e+00> : vector<16xf32>
    %13 = vector.multi_reduction <add>, %1, %cst_10 [1] : vector<16x128xf32> to vector<16xf32>
    %14 = vector.shape_cast %13 : vector<16xf32> to vector<16x1xf32>
    %cst_11 = arith.constant 3.125000e-02 : f32
    %15 = vector.broadcast %cst_11 : f32 to vector<16x1xf32>
    %16 = arith.mulf %14, %15 : vector<16x1xf32>
    %17 = vector.broadcast %16 : vector<16x1xf32> to vector<16x128xf32>
    %18 = arith.subf %1, %17 : vector<16x128xf32>
    %cst_12 = arith.constant 0.000000e+00 : f32
    %19 = vector.broadcast %cst_12 : f32 to vector<16x128xf32>
    %20 = arith.select %10, %18, %19 : vector<16x128xi1>, vector<16x128xf32>
    %21 = arith.mulf %20, %20 : vector<16x128xf32>
    %cst_13 = arith.constant dense<0.000000e+00> : vector<16xf32>
    %22 = vector.multi_reduction <add>, %21, %cst_13 [1] : vector<16x128xf32> to vector<16xf32>
    %23 = vector.shape_cast %22 : vector<16xf32> to vector<16x1xf32>
    %cst_14 = arith.constant 3.125000e-02 : f32
    %24 = vector.broadcast %cst_14 : f32 to vector<16x1xf32>
    %25 = arith.mulf %23, %24 : vector<16x1xf32>
    %cst_15 = arith.constant 9.99999996E-13 : f32
    %26 = vector.broadcast %cst_15 : f32 to vector<16x1xf32>
    %27 = arith.addf %25, %26 : vector<16x1xf32>
    %28 = math.rsqrt %27 : vector<16x1xf32>
    %29 = vector.broadcast %28 : vector<16x1xf32> to vector<16x128xf32>
    %30 = arith.mulf %20, %29 : vector<16x128xf32>
    %31 = vector.broadcast %11 : vector<1x128xf32> to vector<16x128xf32>
    %32 = arith.mulf %30, %31 : vector<16x128xf32>
    %33 = vector.broadcast %12 : vector<1x128xf32> to vector<16x128xf32>
    %34 = arith.addf %32, %33 : vector<16x128xf32>
    %c0_16 = arith.constant 0 : index
    %c0_17 = arith.constant 0 : index
    %c0_18 = arith.constant 0 : index
    %35 = vector.load %arg5[%c0_16, %c0_17, %c0_18] : memref<2x128x768xbf16, #tpu.memory_space<vmem>>, vector<1x128x768xbf16>
    %36 = vector.shape_cast %35 : vector<1x128x768xbf16> to vector<128x768xbf16>
    %c0_19 = arith.constant 0 : index
    %c0_20 = arith.constant 0 : index
    %c0_21 = arith.constant 0 : index
    %37 = vector.load %arg6[%c0_19, %c0_20, %c0_21] : memref<2x1x768xf32, #tpu.memory_space<vmem>>, vector<1x1x768xf32>
    %38 = vector.shape_cast %37 : vector<1x1x768xf32> to vector<1x768xf32>
    %c0_22 = arith.constant 0 : index
    %c0_23 = arith.constant 0 : index
    %c0_24 = arith.constant 0 : index
    %c0_25 = arith.constant 0 : index
    %39 = vector.load %arg7[%c0_22, %c0_23, %c0_24, %c0_25] : memref<2x2x128x128xbf16, #tpu.memory_space<vmem>>, vector<1x2x128x128xbf16>
    %40 = vector.shape_cast %39 : vector<1x2x128x128xbf16> to vector<2x128x128xbf16>
    %41 = arith.truncf %34 : vector<16x128xf32> to vector<16x128xbf16>
    %cst_26 = arith.constant dense<0.000000e+00> : vector<16x768xf32>
    %42 = tpu.matmul %41, %36, %cst_26 {dimension_numbers = #tpu.dot_dimension_numbers<[1], [0], [0], [1], [0, 0, 1, 1], [], []>} : vector<16x128xbf16>, vector<128x768xbf16>, vector<16x768xf32> -> vector<16x768xf32>
    %43 = vector.broadcast %38 : vector<1x768xf32> to vector<16x768xf32>
    %44 = arith.addf %42, %43 : vector<16x768xf32>
    %45 = vector.extract_strided_slice %44 {offsets = [0, 0], sizes = [16, 128], strides = [1, 1]} : vector<16x768xf32> to vector<16x128xf32>
    %46 = arith.truncf %45 : vector<16x128xf32> to vector<16x128xbf16>
    %47 = vector.extract_strided_slice %44 {offsets = [0, 128], sizes = [16, 128], strides = [1, 1]} : vector<16x768xf32> to vector<16x128xf32>
    %48 = arith.truncf %47 : vector<16x128xf32> to vector<16x128xbf16>
    %49 = vector.extract_strided_slice %44 {offsets = [0, 256], sizes = [16, 128], strides = [1, 1]} : vector<16x768xf32> to vector<16x128xf32>
    %50 = arith.truncf %49 : vector<16x128xf32> to vector<16x128xbf16>
    %cst_27 = arith.constant dense<0.000000e+00> : vector<16x16xf32>
    %51 = tpu.matmul %46, %48, %cst_27 {dimension_numbers = #tpu.dot_dimension_numbers<[1], [1], [0], [0], [0, 0, 1, 0], [], []>} : vector<16x128xbf16>, vector<16x128xbf16>, vector<16x16xf32> -> vector<16x16xf32>
    %52 = vector.broadcast %7 : vector<1x16xf32> to vector<16x16xf32>
    %53 = arith.addf %51, %52 : vector<16x16xf32>
    %cst_28 = arith.constant dense<0xFF800000> : vector<16xf32>
    %54 = vector.multi_reduction <maximumf>, %53, %cst_28 [1] : vector<16x16xf32> to vector<16xf32>
    %55 = vector.shape_cast %54 : vector<16xf32> to vector<16x1xf32>
    %56 = vector.broadcast %55 : vector<16x1xf32> to vector<16x16xf32>
    %57 = arith.subf %53, %56 : vector<16x16xf32>
    %58 = math.exp %57 : vector<16x16xf32>
    %cst_29 = arith.constant dense<0.000000e+00> : vector<16xf32>
    %59 = vector.multi_reduction <add>, %58, %cst_29 [1] : vector<16x16xf32> to vector<16xf32>
    %60 = vector.shape_cast %59 : vector<16xf32> to vector<16x1xf32>
    %61 = tpu.reciprocal %60 : vector<16x1xf32> -> vector<16x1xf32>
    %62 = vector.broadcast %61 : vector<16x1xf32> to vector<16x16xf32>
    %63 = arith.mulf %58, %62 : vector<16x16xf32>
    %64 = arith.truncf %63 : vector<16x16xf32> to vector<16x16xbf16>
    %cst_30 = arith.constant dense<0.000000e+00> : vector<16x128xf32>
    %65 = tpu.matmul %64, %50, %cst_30 {dimension_numbers = #tpu.dot_dimension_numbers<[1], [0], [0], [1], [0, 0, 1, 1], [], []>} : vector<16x16xbf16>, vector<16x128xbf16>, vector<16x128xf32> -> vector<16x128xf32>
    %66 = arith.truncf %65 : vector<16x128xf32> to vector<16x128xbf16>
    %67 = vector.extract_strided_slice %40 {offsets = [0, 0, 0], sizes = [1, 128, 128], strides = [1, 1, 1]} : vector<2x128x128xbf16> to vector<1x128x128xbf16>
    %68 = vector.shape_cast %67 : vector<1x128x128xbf16> to vector<128x128xbf16>
    %cst_31 = arith.constant dense<0.000000e+00> : vector<16x128xf32>
    %69 = tpu.matmul %66, %68, %cst_31 {dimension_numbers = #tpu.dot_dimension_numbers<[1], [0], [0], [1], [0, 0, 1, 1], [], []>} : vector<16x128xbf16>, vector<128x128xbf16>, vector<16x128xf32> -> vector<16x128xf32>
    %70 = vector.extract_strided_slice %44 {offsets = [0, 384], sizes = [16, 128], strides = [1, 1]} : vector<16x768xf32> to vector<16x128xf32>
    %71 = arith.truncf %70 : vector<16x128xf32> to vector<16x128xbf16>
    %72 = vector.extract_strided_slice %44 {offsets = [0, 512], sizes = [16, 128], strides = [1, 1]} : vector<16x768xf32> to vector<16x128xf32>
    %73 = arith.truncf %72 : vector<16x128xf32> to vector<16x128xbf16>
    %74 = vector.extract_strided_slice %44 {offsets = [0, 640], sizes = [16, 128], strides = [1, 1]} : vector<16x768xf32> to vector<16x128xf32>
    %75 = arith.truncf %74 : vector<16x128xf32> to vector<16x128xbf16>
    %cst_32 = arith.constant dense<0.000000e+00> : vector<16x16xf32>
    %76 = tpu.matmul %71, %73, %cst_32 {dimension_numbers = #tpu.dot_dimension_numbers<[1], [1], [0], [0], [0, 0, 1, 0], [], []>} : vector<16x128xbf16>, vector<16x128xbf16>, vector<16x16xf32> -> vector<16x16xf32>
    %77 = vector.broadcast %7 : vector<1x16xf32> to vector<16x16xf32>
    %78 = arith.addf %76, %77 : vector<16x16xf32>
    %cst_33 = arith.constant dense<0xFF800000> : vector<16xf32>
    %79 = vector.multi_reduction <maximumf>, %78, %cst_33 [1] : vector<16x16xf32> to vector<16xf32>
    %80 = vector.shape_cast %79 : vector<16xf32> to vector<16x1xf32>
    %81 = vector.broadcast %80 : vector<16x1xf32> to vector<16x16xf32>
    %82 = arith.subf %78, %81 : vector<16x16xf32>
    %83 = math.exp %82 : vector<16x16xf32>
    %cst_34 = arith.constant dense<0.000000e+00> : vector<16xf32>
    %84 = vector.multi_reduction <add>, %83, %cst_34 [1] : vector<16x16xf32> to vector<16xf32>
    %85 = vector.shape_cast %84 : vector<16xf32> to vector<16x1xf32>
    %86 = tpu.reciprocal %85 : vector<16x1xf32> -> vector<16x1xf32>
    %87 = vector.broadcast %86 : vector<16x1xf32> to vector<16x16xf32>
    %88 = arith.mulf %83, %87 : vector<16x16xf32>
    %89 = arith.truncf %88 : vector<16x16xf32> to vector<16x16xbf16>
    %cst_35 = arith.constant dense<0.000000e+00> : vector<16x128xf32>
    %90 = tpu.matmul %89, %75, %cst_35 {dimension_numbers = #tpu.dot_dimension_numbers<[1], [0], [0], [1], [0, 0, 1, 1], [], []>} : vector<16x16xbf16>, vector<16x128xbf16>, vector<16x128xf32> -> vector<16x128xf32>
    %91 = arith.truncf %90 : vector<16x128xf32> to vector<16x128xbf16>
    %92 = vector.extract_strided_slice %40 {offsets = [1, 0, 0], sizes = [1, 128, 128], strides = [1, 1, 1]} : vector<2x128x128xbf16> to vector<1x128x128xbf16>
    %93 = vector.shape_cast %92 : vector<1x128x128xbf16> to vector<128x128xbf16>
    %cst_36 = arith.constant dense<0.000000e+00> : vector<16x128xf32>
    %94 = tpu.matmul %91, %93, %cst_36 {dimension_numbers = #tpu.dot_dimension_numbers<[1], [0], [0], [1], [0, 0, 1, 1], [], []>} : vector<16x128xbf16>, vector<128x128xbf16>, vector<16x128xf32> -> vector<16x128xf32>
    %95 = arith.addf %69, %94 : vector<16x128xf32>
    %c0_37 = arith.constant 0 : index
    %c0_38 = arith.constant 0 : index
    %c0_39 = arith.constant 0 : index
    %96 = vector.load %arg8[%c0_37, %c0_38, %c0_39] : memref<2x1x128xf32, #tpu.memory_space<vmem>>, vector<1x1x128xf32>
    %97 = vector.shape_cast %96 : vector<1x1x128xf32> to vector<1x128xf32>
    %98 = vector.broadcast %97 : vector<1x128xf32> to vector<16x128xf32>
    %99 = arith.addf %95, %98 : vector<16x128xf32>
    %100 = arith.addf %34, %99 : vector<16x128xf32>
    %c0_40 = arith.constant 0 : index
    %c0_41 = arith.constant 0 : index
    %c0_42 = arith.constant 0 : index
    %101 = vector.load %arg9[%c0_40, %c0_41, %c0_42] : memref<2x1x128xf32, #tpu.memory_space<vmem>>, vector<1x1x128xf32>
    %102 = vector.shape_cast %101 : vector<1x1x128xf32> to vector<1x128xf32>
    %c0_43 = arith.constant 0 : index
    %c0_44 = arith.constant 0 : index
    %c0_45 = arith.constant 0 : index
    %103 = vector.load %arg10[%c0_43, %c0_44, %c0_45] : memref<2x1x128xf32, #tpu.memory_space<vmem>>, vector<1x1x128xf32>
    %104 = vector.shape_cast %103 : vector<1x1x128xf32> to vector<1x128xf32>
    %cst_46 = arith.constant dense<0.000000e+00> : vector<16xf32>
    %105 = vector.multi_reduction <add>, %100, %cst_46 [1] : vector<16x128xf32> to vector<16xf32>
    %106 = vector.shape_cast %105 : vector<16xf32> to vector<16x1xf32>
    %cst_47 = arith.constant 3.125000e-02 : f32
    %107 = vector.broadcast %cst_47 : f32 to vector<16x1xf32>
    %108 = arith.mulf %106, %107 : vector<16x1xf32>
    %109 = vector.broadcast %108 : vector<16x1xf32> to vector<16x128xf32>
    %110 = arith.subf %100, %109 : vector<16x128xf32>
    %cst_48 = arith.constant 0.000000e+00 : f32
    %111 = vector.broadcast %cst_48 : f32 to vector<16x128xf32>
    %112 = arith.select %10, %110, %111 : vector<16x128xi1>, vector<16x128xf32>
    %113 = arith.mulf %112, %112 : vector<16x128xf32>
    %cst_49 = arith.constant dense<0.000000e+00> : vector<16xf32>
    %114 = vector.multi_reduction <add>, %113, %cst_49 [1] : vector<16x128xf32> to vector<16xf32>
    %115 = vector.shape_cast %114 : vector<16xf32> to vector<16x1xf32>
    %cst_50 = arith.constant 3.125000e-02 : f32
    %116 = vector.broadcast %cst_50 : f32 to vector<16x1xf32>
    %117 = arith.mulf %115, %116 : vector<16x1xf32>
    %cst_51 = arith.constant 9.99999996E-13 : f32
    %118 = vector.broadcast %cst_51 : f32 to vector<16x1xf32>
    %119 = arith.addf %117, %118 : vector<16x1xf32>
    %120 = math.rsqrt %119 : vector<16x1xf32>
    %121 = vector.broadcast %120 : vector<16x1xf32> to vector<16x128xf32>
    %122 = arith.mulf %112, %121 : vector<16x128xf32>
    %123 = vector.broadcast %102 : vector<1x128xf32> to vector<16x128xf32>
    %124 = arith.mulf %122, %123 : vector<16x128xf32>
    %125 = vector.broadcast %104 : vector<1x128xf32> to vector<16x128xf32>
    %126 = arith.addf %124, %125 : vector<16x128xf32>
    %c0_52 = arith.constant 0 : index
    %c0_53 = arith.constant 0 : index
    %c0_54 = arith.constant 0 : index
    %127 = vector.load %arg11[%c0_52, %c0_53, %c0_54] : memref<2x128x128xbf16, #tpu.memory_space<vmem>>, vector<1x128x128xbf16>
    %128 = vector.shape_cast %127 : vector<1x128x128xbf16> to vector<128x128xbf16>
    %129 = arith.truncf %126 : vector<16x128xf32> to vector<16x128xbf16>
    %cst_55 = arith.constant dense<0.000000e+00> : vector<16x128xf32>
    %130 = tpu.matmul %129, %128, %cst_55 {dimension_numbers = #tpu.dot_dimension_numbers<[1], [0], [0], [1], [0, 0, 1, 1], [], []>} : vector<16x128xbf16>, vector<128x128xbf16>, vector<16x128xf32> -> vector<16x128xf32>
    %c0_56 = arith.constant 0 : index
    %c0_57 = arith.constant 0 : index
    %c0_58 = arith.constant 0 : index
    %131 = vector.load %arg12[%c0_56, %c0_57, %c0_58] : memref<2x1x128xf32, #tpu.memory_space<vmem>>, vector<1x1x128xf32>
    %132 = vector.shape_cast %131 : vector<1x1x128xf32> to vector<1x128xf32>
    %133 = vector.broadcast %132 : vector<1x128xf32> to vector<16x128xf32>
    %134 = arith.addf %130, %133 : vector<16x128xf32>
    %135 = arith.mulf %134, %134 : vector<16x128xf32>
    %136 = arith.mulf %134, %135 : vector<16x128xf32>
    %cst_59 = arith.constant 4.471500e-02 : f32
    %137 = vector.broadcast %cst_59 : f32 to vector<16x128xf32>
    %138 = arith.mulf %137, %136 : vector<16x128xf32>
    %139 = arith.addf %134, %138 : vector<16x128xf32>
    %cst_60 = arith.constant 0.797884583 : f32
    %140 = vector.broadcast %cst_60 : f32 to vector<16x128xf32>
    %141 = arith.mulf %140, %139 : vector<16x128xf32>
    %142 = math.tanh %141 : vector<16x128xf32>
    %cst_61 = arith.constant 1.000000e+00 : f32
    %143 = vector.broadcast %cst_61 : f32 to vector<16x128xf32>
    %144 = arith.addf %143, %142 : vector<16x128xf32>
    %cst_62 = arith.constant 5.000000e-01 : f32
    %145 = vector.broadcast %cst_62 : f32 to vector<16x128xf32>
    %146 = arith.mulf %145, %144 : vector<16x128xf32>
    %147 = arith.mulf %134, %146 : vector<16x128xf32>
    %c0_63 = arith.constant 0 : index
    %c0_64 = arith.constant 0 : index
    %c0_65 = arith.constant 0 : index
    %148 = vector.load %arg13[%c0_63, %c0_64, %c0_65] : memref<2x128x128xbf16, #tpu.memory_space<vmem>>, vector<1x128x128xbf16>
    %149 = vector.shape_cast %148 : vector<1x128x128xbf16> to vector<128x128xbf16>
    %150 = arith.truncf %147 : vector<16x128xf32> to vector<16x128xbf16>
    %cst_66 = arith.constant dense<0.000000e+00> : vector<16x128xf32>
    %151 = tpu.matmul %150, %149, %cst_66 {dimension_numbers = #tpu.dot_dimension_numbers<[1], [0], [0], [1], [0, 0, 1, 1], [], []>} : vector<16x128xbf16>, vector<128x128xbf16>, vector<16x128xf32> -> vector<16x128xf32>
    %c0_67 = arith.constant 0 : index
    %c0_68 = arith.constant 0 : index
    %c0_69 = arith.constant 0 : index
    %152 = vector.load %arg14[%c0_67, %c0_68, %c0_69] : memref<2x1x128xf32, #tpu.memory_space<vmem>>, vector<1x1x128xf32>
    %153 = vector.shape_cast %152 : vector<1x1x128xf32> to vector<1x128xf32>
    %154 = vector.broadcast %153 : vector<1x128xf32> to vector<16x128xf32>
    %155 = arith.addf %151, %154 : vector<16x128xf32>
    %156 = arith.addf %126, %155 : vector<16x128xf32>
    %c0_70 = arith.constant 0 : index
    %c0_71 = arith.constant 0 : index
    %c0_72 = arith.constant 0 : index
    %157 = vector.load %arg15[%c0_70, %c0_71, %c0_72] : memref<2x1x128xf32, #tpu.memory_space<vmem>>, vector<1x1x128xf32>
    %158 = vector.shape_cast %157 : vector<1x1x128xf32> to vector<1x128xf32>
    %c0_73 = arith.constant 0 : index
    %c0_74 = arith.constant 0 : index
    %c0_75 = arith.constant 0 : index
    %159 = vector.load %arg16[%c0_73, %c0_74, %c0_75] : memref<2x1x128xf32, #tpu.memory_space<vmem>>, vector<1x1x128xf32>
    %160 = vector.shape_cast %159 : vector<1x1x128xf32> to vector<1x128xf32>
    %cst_76 = arith.constant dense<0.000000e+00> : vector<16xf32>
    %161 = vector.multi_reduction <add>, %156, %cst_76 [1] : vector<16x128xf32> to vector<16xf32>
    %162 = vector.shape_cast %161 : vector<16xf32> to vector<16x1xf32>
    %cst_77 = arith.constant 3.125000e-02 : f32
    %163 = vector.broadcast %cst_77 : f32 to vector<16x1xf32>
    %164 = arith.mulf %162, %163 : vector<16x1xf32>
    %165 = vector.broadcast %164 : vector<16x1xf32> to vector<16x128xf32>
    %166 = arith.subf %156, %165 : vector<16x128xf32>
    %cst_78 = arith.constant 0.000000e+00 : f32
    %167 = vector.broadcast %cst_78 : f32 to vector<16x128xf32>
    %168 = arith.select %10, %166, %167 : vector<16x128xi1>, vector<16x128xf32>
    %169 = arith.mulf %168, %168 : vector<16x128xf32>
    %cst_79 = arith.constant dense<0.000000e+00> : vector<16xf32>
    %170 = vector.multi_reduction <add>, %169, %cst_79 [1] : vector<16x128xf32> to vector<16xf32>
    %171 = vector.shape_cast %170 : vector<16xf32> to vector<16x1xf32>
    %cst_80 = arith.constant 3.125000e-02 : f32
    %172 = vector.broadcast %cst_80 : f32 to vector<16x1xf32>
    %173 = arith.mulf %171, %172 : vector<16x1xf32>
    %cst_81 = arith.constant 9.99999996E-13 : f32
    %174 = vector.broadcast %cst_81 : f32 to vector<16x1xf32>
    %175 = arith.addf %173, %174 : vector<16x1xf32>
    %176 = math.rsqrt %175 : vector<16x1xf32>
    %177 = vector.broadcast %176 : vector<16x1xf32> to vector<16x128xf32>
    %178 = arith.mulf %168, %177 : vector<16x128xf32>
    %179 = vector.broadcast %158 : vector<1x128xf32> to vector<16x128xf32>
    %180 = arith.mulf %178, %179 : vector<16x128xf32>
    %181 = vector.broadcast %160 : vector<1x128xf32> to vector<16x128xf32>
    %182 = arith.addf %180, %181 : vector<16x128xf32>
    %c1 = arith.constant 1 : index
    %c0_82 = arith.constant 0 : index
    %c0_83 = arith.constant 0 : index
    %183 = vector.load %arg5[%c1, %c0_82, %c0_83] : memref<2x128x768xbf16, #tpu.memory_space<vmem>>, vector<1x128x768xbf16>
    %184 = vector.shape_cast %183 : vector<1x128x768xbf16> to vector<128x768xbf16>
    %c1_84 = arith.constant 1 : index
    %c0_85 = arith.constant 0 : index
    %c0_86 = arith.constant 0 : index
    %185 = vector.load %arg6[%c1_84, %c0_85, %c0_86] : memref<2x1x768xf32, #tpu.memory_space<vmem>>, vector<1x1x768xf32>
    %186 = vector.shape_cast %185 : vector<1x1x768xf32> to vector<1x768xf32>
    %c1_87 = arith.constant 1 : index
    %c0_88 = arith.constant 0 : index
    %c0_89 = arith.constant 0 : index
    %c0_90 = arith.constant 0 : index
    %187 = vector.load %arg7[%c1_87, %c0_88, %c0_89, %c0_90] : memref<2x2x128x128xbf16, #tpu.memory_space<vmem>>, vector<1x2x128x128xbf16>
    %188 = vector.shape_cast %187 : vector<1x2x128x128xbf16> to vector<2x128x128xbf16>
    %189 = arith.truncf %182 : vector<16x128xf32> to vector<16x128xbf16>
    %cst_91 = arith.constant dense<0.000000e+00> : vector<16x768xf32>
    %190 = tpu.matmul %189, %184, %cst_91 {dimension_numbers = #tpu.dot_dimension_numbers<[1], [0], [0], [1], [0, 0, 1, 1], [], []>} : vector<16x128xbf16>, vector<128x768xbf16>, vector<16x768xf32> -> vector<16x768xf32>
    %191 = vector.broadcast %186 : vector<1x768xf32> to vector<16x768xf32>
    %192 = arith.addf %190, %191 : vector<16x768xf32>
    %193 = vector.extract_strided_slice %192 {offsets = [0, 0], sizes = [16, 128], strides = [1, 1]} : vector<16x768xf32> to vector<16x128xf32>
    %194 = arith.truncf %193 : vector<16x128xf32> to vector<16x128xbf16>
    %195 = vector.extract_strided_slice %192 {offsets = [0, 128], sizes = [16, 128], strides = [1, 1]} : vector<16x768xf32> to vector<16x128xf32>
    %196 = arith.truncf %195 : vector<16x128xf32> to vector<16x128xbf16>
    %197 = vector.extract_strided_slice %192 {offsets = [0, 256], sizes = [16, 128], strides = [1, 1]} : vector<16x768xf32> to vector<16x128xf32>
    %198 = arith.truncf %197 : vector<16x128xf32> to vector<16x128xbf16>
    %cst_92 = arith.constant dense<0.000000e+00> : vector<16x16xf32>
    %199 = tpu.matmul %194, %196, %cst_92 {dimension_numbers = #tpu.dot_dimension_numbers<[1], [1], [0], [0], [0, 0, 1, 0], [], []>} : vector<16x128xbf16>, vector<16x128xbf16>, vector<16x16xf32> -> vector<16x16xf32>
    %200 = vector.broadcast %7 : vector<1x16xf32> to vector<16x16xf32>
    %201 = arith.addf %199, %200 : vector<16x16xf32>
    %cst_93 = arith.constant dense<0xFF800000> : vector<16xf32>
    %202 = vector.multi_reduction <maximumf>, %201, %cst_93 [1] : vector<16x16xf32> to vector<16xf32>
    %203 = vector.shape_cast %202 : vector<16xf32> to vector<16x1xf32>
    %204 = vector.broadcast %203 : vector<16x1xf32> to vector<16x16xf32>
    %205 = arith.subf %201, %204 : vector<16x16xf32>
    %206 = math.exp %205 : vector<16x16xf32>
    %cst_94 = arith.constant dense<0.000000e+00> : vector<16xf32>
    %207 = vector.multi_reduction <add>, %206, %cst_94 [1] : vector<16x16xf32> to vector<16xf32>
    %208 = vector.shape_cast %207 : vector<16xf32> to vector<16x1xf32>
    %209 = tpu.reciprocal %208 : vector<16x1xf32> -> vector<16x1xf32>
    %210 = vector.broadcast %209 : vector<16x1xf32> to vector<16x16xf32>
    %211 = arith.mulf %206, %210 : vector<16x16xf32>
    %212 = arith.truncf %211 : vector<16x16xf32> to vector<16x16xbf16>
    %cst_95 = arith.constant dense<0.000000e+00> : vector<16x128xf32>
    %213 = tpu.matmul %212, %198, %cst_95 {dimension_numbers = #tpu.dot_dimension_numbers<[1], [0], [0], [1], [0, 0, 1, 1], [], []>} : vector<16x16xbf16>, vector<16x128xbf16>, vector<16x128xf32> -> vector<16x128xf32>
    %214 = arith.truncf %213 : vector<16x128xf32> to vector<16x128xbf16>
    %215 = vector.extract_strided_slice %188 {offsets = [0, 0, 0], sizes = [1, 128, 128], strides = [1, 1, 1]} : vector<2x128x128xbf16> to vector<1x128x128xbf16>
    %216 = vector.shape_cast %215 : vector<1x128x128xbf16> to vector<128x128xbf16>
    %cst_96 = arith.constant dense<0.000000e+00> : vector<16x128xf32>
    %217 = tpu.matmul %214, %216, %cst_96 {dimension_numbers = #tpu.dot_dimension_numbers<[1], [0], [0], [1], [0, 0, 1, 1], [], []>} : vector<16x128xbf16>, vector<128x128xbf16>, vector<16x128xf32> -> vector<16x128xf32>
    %218 = vector.extract_strided_slice %192 {offsets = [0, 384], sizes = [16, 128], strides = [1, 1]} : vector<16x768xf32> to vector<16x128xf32>
    %219 = arith.truncf %218 : vector<16x128xf32> to vector<16x128xbf16>
    %220 = vector.extract_strided_slice %192 {offsets = [0, 512], sizes = [16, 128], strides = [1, 1]} : vector<16x768xf32> to vector<16x128xf32>
    %221 = arith.truncf %220 : vector<16x128xf32> to vector<16x128xbf16>
    %222 = vector.extract_strided_slice %192 {offsets = [0, 640], sizes = [16, 128], strides = [1, 1]} : vector<16x768xf32> to vector<16x128xf32>
    %223 = arith.truncf %222 : vector<16x128xf32> to vector<16x128xbf16>
    %cst_97 = arith.constant dense<0.000000e+00> : vector<16x16xf32>
    %224 = tpu.matmul %219, %221, %cst_97 {dimension_numbers = #tpu.dot_dimension_numbers<[1], [1], [0], [0], [0, 0, 1, 0], [], []>} : vector<16x128xbf16>, vector<16x128xbf16>, vector<16x16xf32> -> vector<16x16xf32>
    %225 = vector.broadcast %7 : vector<1x16xf32> to vector<16x16xf32>
    %226 = arith.addf %224, %225 : vector<16x16xf32>
    %cst_98 = arith.constant dense<0xFF800000> : vector<16xf32>
    %227 = vector.multi_reduction <maximumf>, %226, %cst_98 [1] : vector<16x16xf32> to vector<16xf32>
    %228 = vector.shape_cast %227 : vector<16xf32> to vector<16x1xf32>
    %229 = vector.broadcast %228 : vector<16x1xf32> to vector<16x16xf32>
    %230 = arith.subf %226, %229 : vector<16x16xf32>
    %231 = math.exp %230 : vector<16x16xf32>
    %cst_99 = arith.constant dense<0.000000e+00> : vector<16xf32>
    %232 = vector.multi_reduction <add>, %231, %cst_99 [1] : vector<16x16xf32> to vector<16xf32>
    %233 = vector.shape_cast %232 : vector<16xf32> to vector<16x1xf32>
    %234 = tpu.reciprocal %233 : vector<16x1xf32> -> vector<16x1xf32>
    %235 = vector.broadcast %234 : vector<16x1xf32> to vector<16x16xf32>
    %236 = arith.mulf %231, %235 : vector<16x16xf32>
    %237 = arith.truncf %236 : vector<16x16xf32> to vector<16x16xbf16>
    %cst_100 = arith.constant dense<0.000000e+00> : vector<16x128xf32>
    %238 = tpu.matmul %237, %223, %cst_100 {dimension_numbers = #tpu.dot_dimension_numbers<[1], [0], [0], [1], [0, 0, 1, 1], [], []>} : vector<16x16xbf16>, vector<16x128xbf16>, vector<16x128xf32> -> vector<16x128xf32>
    %239 = arith.truncf %238 : vector<16x128xf32> to vector<16x128xbf16>
    %240 = vector.extract_strided_slice %188 {offsets = [1, 0, 0], sizes = [1, 128, 128], strides = [1, 1, 1]} : vector<2x128x128xbf16> to vector<1x128x128xbf16>
    %241 = vector.shape_cast %240 : vector<1x128x128xbf16> to vector<128x128xbf16>
    %cst_101 = arith.constant dense<0.000000e+00> : vector<16x128xf32>
    %242 = tpu.matmul %239, %241, %cst_101 {dimension_numbers = #tpu.dot_dimension_numbers<[1], [0], [0], [1], [0, 0, 1, 1], [], []>} : vector<16x128xbf16>, vector<128x128xbf16>, vector<16x128xf32> -> vector<16x128xf32>
    %243 = arith.addf %217, %242 : vector<16x128xf32>
    %c1_102 = arith.constant 1 : index
    %c0_103 = arith.constant 0 : index
    %c0_104 = arith.constant 0 : index
    %244 = vector.load %arg8[%c1_102, %c0_103, %c0_104] : memref<2x1x128xf32, #tpu.memory_space<vmem>>, vector<1x1x128xf32>
    %245 = vector.shape_cast %244 : vector<1x1x128xf32> to vector<1x128xf32>
    %246 = vector.broadcast %245 : vector<1x128xf32> to vector<16x128xf32>
    %247 = arith.addf %243, %246 : vector<16x128xf32>
    %248 = arith.addf %182, %247 : vector<16x128xf32>
    %c1_105 = arith.constant 1 : index
    %c0_106 = arith.constant 0 : index
    %c0_107 = arith.constant 0 : index
    %249 = vector.load %arg9[%c1_105, %c0_106, %c0_107] : memref<2x1x128xf32, #tpu.memory_space<vmem>>, vector<1x1x128xf32>
    %250 = vector.shape_cast %249 : vector<1x1x128xf32> to vector<1x128xf32>
    %c1_108 = arith.constant 1 : index
    %c0_109 = arith.constant 0 : index
    %c0_110 = arith.constant 0 : index
    %251 = vector.load %arg10[%c1_108, %c0_109, %c0_110] : memref<2x1x128xf32, #tpu.memory_space<vmem>>, vector<1x1x128xf32>
    %252 = vector.shape_cast %251 : vector<1x1x128xf32> to vector<1x128xf32>
    %cst_111 = arith.constant dense<0.000000e+00> : vector<16xf32>
    %253 = vector.multi_reduction <add>, %248, %cst_111 [1] : vector<16x128xf32> to vector<16xf32>
    %254 = vector.shape_cast %253 : vector<16xf32> to vector<16x1xf32>
    %cst_112 = arith.constant 3.125000e-02 : f32
    %255 = vector.broadcast %cst_112 : f32 to vector<16x1xf32>
    %256 = arith.mulf %254, %255 : vector<16x1xf32>
    %257 = vector.broadcast %256 : vector<16x1xf32> to vector<16x128xf32>
    %258 = arith.subf %248, %257 : vector<16x128xf32>
    %cst_113 = arith.constant 0.000000e+00 : f32
    %259 = vector.broadcast %cst_113 : f32 to vector<16x128xf32>
    %260 = arith.select %10, %258, %259 : vector<16x128xi1>, vector<16x128xf32>
    %261 = arith.mulf %260, %260 : vector<16x128xf32>
    %cst_114 = arith.constant dense<0.000000e+00> : vector<16xf32>
    %262 = vector.multi_reduction <add>, %261, %cst_114 [1] : vector<16x128xf32> to vector<16xf32>
    %263 = vector.shape_cast %262 : vector<16xf32> to vector<16x1xf32>
    %cst_115 = arith.constant 3.125000e-02 : f32
    %264 = vector.broadcast %cst_115 : f32 to vector<16x1xf32>
    %265 = arith.mulf %263, %264 : vector<16x1xf32>
    %cst_116 = arith.constant 9.99999996E-13 : f32
    %266 = vector.broadcast %cst_116 : f32 to vector<16x1xf32>
    %267 = arith.addf %265, %266 : vector<16x1xf32>
    %268 = math.rsqrt %267 : vector<16x1xf32>
    %269 = vector.broadcast %268 : vector<16x1xf32> to vector<16x128xf32>
    %270 = arith.mulf %260, %269 : vector<16x128xf32>
    %271 = vector.broadcast %250 : vector<1x128xf32> to vector<16x128xf32>
    %272 = arith.mulf %270, %271 : vector<16x128xf32>
    %273 = vector.broadcast %252 : vector<1x128xf32> to vector<16x128xf32>
    %274 = arith.addf %272, %273 : vector<16x128xf32>
    %c1_117 = arith.constant 1 : index
    %c0_118 = arith.constant 0 : index
    %c0_119 = arith.constant 0 : index
    %275 = vector.load %arg11[%c1_117, %c0_118, %c0_119] : memref<2x128x128xbf16, #tpu.memory_space<vmem>>, vector<1x128x128xbf16>
    %276 = vector.shape_cast %275 : vector<1x128x128xbf16> to vector<128x128xbf16>
    %277 = arith.truncf %274 : vector<16x128xf32> to vector<16x128xbf16>
    %cst_120 = arith.constant dense<0.000000e+00> : vector<16x128xf32>
    %278 = tpu.matmul %277, %276, %cst_120 {dimension_numbers = #tpu.dot_dimension_numbers<[1], [0], [0], [1], [0, 0, 1, 1], [], []>} : vector<16x128xbf16>, vector<128x128xbf16>, vector<16x128xf32> -> vector<16x128xf32>
    %c1_121 = arith.constant 1 : index
    %c0_122 = arith.constant 0 : index
    %c0_123 = arith.constant 0 : index
    %279 = vector.load %arg12[%c1_121, %c0_122, %c0_123] : memref<2x1x128xf32, #tpu.memory_space<vmem>>, vector<1x1x128xf32>
    %280 = vector.shape_cast %279 : vector<1x1x128xf32> to vector<1x128xf32>
    %281 = vector.broadcast %280 : vector<1x128xf32> to vector<16x128xf32>
    %282 = arith.addf %278, %281 : vector<16x128xf32>
    %283 = arith.mulf %282, %282 : vector<16x128xf32>
    %284 = arith.mulf %282, %283 : vector<16x128xf32>
    %cst_124 = arith.constant 4.471500e-02 : f32
    %285 = vector.broadcast %cst_124 : f32 to vector<16x128xf32>
    %286 = arith.mulf %285, %284 : vector<16x128xf32>
    %287 = arith.addf %282, %286 : vector<16x128xf32>
    %cst_125 = arith.constant 0.797884583 : f32
    %288 = vector.broadcast %cst_125 : f32 to vector<16x128xf32>
    %289 = arith.mulf %288, %287 : vector<16x128xf32>
    %290 = math.tanh %289 : vector<16x128xf32>
    %cst_126 = arith.constant 1.000000e+00 : f32
    %291 = vector.broadcast %cst_126 : f32 to vector<16x128xf32>
    %292 = arith.addf %291, %290 : vector<16x128xf32>
    %cst_127 = arith.constant 5.000000e-01 : f32
    %293 = vector.broadcast %cst_127 : f32 to vector<16x128xf32>
    %294 = arith.mulf %293, %292 : vector<16x128xf32>
    %295 = arith.mulf %282, %294 : vector<16x128xf32>
    %c1_128 = arith.constant 1 : index
    %c0_129 = arith.constant 0 : index
    %c0_130 = arith.constant 0 : index
    %296 = vector.load %arg13[%c1_128, %c0_129, %c0_130] : memref<2x128x128xbf16, #tpu.memory_space<vmem>>, vector<1x128x128xbf16>
    %297 = vector.shape_cast %296 : vector<1x128x128xbf16> to vector<128x128xbf16>
    %298 = arith.truncf %295 : vector<16x128xf32> to vector<16x128xbf16>
    %cst_131 = arith.constant dense<0.000000e+00> : vector<16x128xf32>
    %299 = tpu.matmul %298, %297, %cst_131 {dimension_numbers = #tpu.dot_dimension_numbers<[1], [0], [0], [1], [0, 0, 1, 1], [], []>} : vector<16x128xbf16>, vector<128x128xbf16>, vector<16x128xf32> -> vector<16x128xf32>
    %c1_132 = arith.constant 1 : index
    %c0_133 = arith.constant 0 : index
    %c0_134 = arith.constant 0 : index
    %300 = vector.load %arg14[%c1_132, %c0_133, %c0_134] : memref<2x1x128xf32, #tpu.memory_space<vmem>>, vector<1x1x128xf32>
    %301 = vector.shape_cast %300 : vector<1x1x128xf32> to vector<1x128xf32>
    %302 = vector.broadcast %301 : vector<1x128xf32> to vector<16x128xf32>
    %303 = arith.addf %299, %302 : vector<16x128xf32>
    %304 = arith.addf %274, %303 : vector<16x128xf32>
    %c1_135 = arith.constant 1 : index
    %c0_136 = arith.constant 0 : index
    %c0_137 = arith.constant 0 : index
    %305 = vector.load %arg15[%c1_135, %c0_136, %c0_137] : memref<2x1x128xf32, #tpu.memory_space<vmem>>, vector<1x1x128xf32>
    %306 = vector.shape_cast %305 : vector<1x1x128xf32> to vector<1x128xf32>
    %c1_138 = arith.constant 1 : index
    %c0_139 = arith.constant 0 : index
    %c0_140 = arith.constant 0 : index
    %307 = vector.load %arg16[%c1_138, %c0_139, %c0_140] : memref<2x1x128xf32, #tpu.memory_space<vmem>>, vector<1x1x128xf32>
    %308 = vector.shape_cast %307 : vector<1x1x128xf32> to vector<1x128xf32>
    %cst_141 = arith.constant dense<0.000000e+00> : vector<16xf32>
    %309 = vector.multi_reduction <add>, %304, %cst_141 [1] : vector<16x128xf32> to vector<16xf32>
    %310 = vector.shape_cast %309 : vector<16xf32> to vector<16x1xf32>
    %cst_142 = arith.constant 3.125000e-02 : f32
    %311 = vector.broadcast %cst_142 : f32 to vector<16x1xf32>
    %312 = arith.mulf %310, %311 : vector<16x1xf32>
    %313 = vector.broadcast %312 : vector<16x1xf32> to vector<16x128xf32>
    %314 = arith.subf %304, %313 : vector<16x128xf32>
    %cst_143 = arith.constant 0.000000e+00 : f32
    %315 = vector.broadcast %cst_143 : f32 to vector<16x128xf32>
    %316 = arith.select %10, %314, %315 : vector<16x128xi1>, vector<16x128xf32>
    %317 = arith.mulf %316, %316 : vector<16x128xf32>
    %cst_144 = arith.constant dense<0.000000e+00> : vector<16xf32>
    %318 = vector.multi_reduction <add>, %317, %cst_144 [1] : vector<16x128xf32> to vector<16xf32>
    %319 = vector.shape_cast %318 : vector<16xf32> to vector<16x1xf32>
    %cst_145 = arith.constant 3.125000e-02 : f32
    %320 = vector.broadcast %cst_145 : f32 to vector<16x1xf32>
    %321 = arith.mulf %319, %320 : vector<16x1xf32>
    %cst_146 = arith.constant 9.99999996E-13 : f32
    %322 = vector.broadcast %cst_146 : f32 to vector<16x1xf32>
    %323 = arith.addf %321, %322 : vector<16x1xf32>
    %324 = math.rsqrt %323 : vector<16x1xf32>
    %325 = vector.broadcast %324 : vector<16x1xf32> to vector<16x128xf32>
    %326 = arith.mulf %316, %325 : vector<16x128xf32>
    %327 = vector.broadcast %306 : vector<1x128xf32> to vector<16x128xf32>
    %328 = arith.mulf %326, %327 : vector<16x128xf32>
    %329 = vector.broadcast %308 : vector<1x128xf32> to vector<16x128xf32>
    %330 = arith.addf %328, %329 : vector<16x128xf32>
    %c0_147 = arith.constant 0 : index
    %c0_148 = arith.constant 0 : index
    %c0_149 = arith.constant 0 : index
    %331 = vector.load %arg17[%c0_147, %c0_148, %c0_149] : memref<1x16x128xf32, #tpu.memory_space<vmem>>, vector<1x16x128xf32>
    %332 = vector.shape_cast %331 : vector<1x16x128xf32> to vector<16x128xf32>
    %333 = vector.shape_cast %330 : vector<16x128xf32> to vector<1x16x128xf32>
    tpu.vector_store %arg17[%c0_147, %c0_148, %c0_149], %333 {strides = array<i32>} : memref<1x16x128xf32, #tpu.memory_space<vmem>>, vector<1x16x128xf32>,
    return
  }
  func.func @transform_0(%arg0: i32) -> (i32, i32, i32) {
    %c0_i32 = arith.constant 0 : i32
    %c0_i32_0 = arith.constant 0 : i32
    %c0_i32_1 = arith.constant 0 : i32
    return %arg0, %c0_i32, %c0_i32_0 : i32, i32, i32
  }
  func.func @transform_1(%arg0: i32) -> (i32, i32, i32) {
    %c0_i32 = arith.constant 0 : i32
    %c0_i32_0 = arith.constant 0 : i32
    %c0_i32_1 = arith.constant 0 : i32
    return %arg0, %c0_i32, %c0_i32_0 : i32, i32, i32
  }
  func.func @transform_2(%arg0: i32) -> (i32, i32) {
    %c0_i32 = arith.constant 0 : i32
    %c0_i32_0 = arith.constant 0 : i32
    %c0_i32_1 = arith.constant 0 : i32
    return %c0_i32, %c0_i32_0 : i32, i32
  }
  func.func @transform_3(%arg0: i32) -> (i32, i32) {
    %c0_i32 = arith.constant 0 : i32
    %c0_i32_0 = arith.constant 0 : i32
    %c0_i32_1 = arith.constant 0 : i32
    return %c0_i32, %c0_i32_0 : i32, i32
  }
  func.func @transform_4(%arg0: i32) -> (i32, i32, i32) {
    %c0_i32 = arith.constant 0 : i32
    %c0_i32_0 = arith.constant 0 : i32
    %c0_i32_1 = arith.constant 0 : i32
    %c0_i32_2 = arith.constant 0 : i32
    return %c0_i32, %c0_i32_0, %c0_i32_1 : i32, i32, i32
  }
  func.func @transform_5(%arg0: i32) -> (i32, i32, i32) {
    %c0_i32 = arith.constant 0 : i32
    %c0_i32_0 = arith.constant 0 : i32
    %c0_i32_1 = arith.constant 0 : i32
    %c0_i32_2 = arith.constant 0 : i32
    return %c0_i32, %c0_i32_0, %c0_i32_1 : i32, i32, i32
  }
  func.func @transform_6(%arg0: i32) -> (i32, i32, i32, i32) {
    %c0_i32 = arith.constant 0 : i32
    %c0_i32_0 = arith.constant 0 : i32
    %c0_i32_1 = arith.constant 0 : i32
    %c0_i32_2 = arith.constant 0 : i32
    %c0_i32_3 = arith.constant 0 : i32
    return %c0_i32, %c0_i32_0, %c0_i32_1, %c0_i32_2 : i32, i32, i32, i32
  }
  func.func @transform_7(%arg0: i32) -> (i32, i32, i32) {
    %c0_i32 = arith.constant 0 : i32
    %c0_i32_0 = arith.constant 0 : i32
    %c0_i32_1 = arith.constant 0 : i32
    %c0_i32_2 = arith.constant 0 : i32
    return %c0_i32, %c0_i32_0, %c0_i32_1 : i32, i32, i32
  }
  func.func @transform_8(%arg0: i32) -> (i32, i32, i32) {
    %c0_i32 = arith.constant 0 : i32
    %c0_i32_0 = arith.constant 0 : i32
    %c0_i32_1 = arith.constant 0 : i32
    %c0_i32_2 = arith.constant 0 : i32
    return %c0_i32, %c0_i32_0, %c0_i32_1 : i32, i32, i32
  }
  func.func @transform_9(%arg0: i32) -> (i32, i32, i32) {
    %c0_i32 = arith.constant 0 : i32
    %c0_i32_0 = arith.constant 0 : i32
    %c0_i32_1 = arith.constant 0 : i32
    %c0_i32_2 = arith.constant 0 : i32
    return %c0_i32, %c0_i32_0, %c0_i32_1 : i32, i32, i32
  }
  func.func @transform_10(%arg0: i32) -> (i32, i32, i32) {
    %c0_i32 = arith.constant 0 : i32
    %c0_i32_0 = arith.constant 0 : i32
    %c0_i32_1 = arith.constant 0 : i32
    %c0_i32_2 = arith.constant 0 : i32
    return %c0_i32, %c0_i32_0, %c0_i32_1 : i32, i32, i32
  }
  func.func @transform_11(%arg0: i32) -> (i32, i32, i32) {
    %c0_i32 = arith.constant 0 : i32
    %c0_i32_0 = arith.constant 0 : i32
    %c0_i32_1 = arith.constant 0 : i32
    %c0_i32_2 = arith.constant 0 : i32
    return %c0_i32, %c0_i32_0, %c0_i32_1 : i32, i32, i32
  }
  func.func @transform_12(%arg0: i32) -> (i32, i32, i32) {
    %c0_i32 = arith.constant 0 : i32
    %c0_i32_0 = arith.constant 0 : i32
    %c0_i32_1 = arith.constant 0 : i32
    %c0_i32_2 = arith.constant 0 : i32
    return %c0_i32, %c0_i32_0, %c0_i32_1 : i32, i32, i32
  }
  func.func @transform_13(%arg0: i32) -> (i32, i32, i32) {
    %c0_i32 = arith.constant 0 : i32
    %c0_i32_0 = arith.constant 0 : i32
    %c0_i32_1 = arith.constant 0 : i32
    %c0_i32_2 = arith.constant 0 : i32
    return %c0_i32, %c0_i32_0, %c0_i32_1 : i32, i32, i32
  }
  func.func @transform_14(%arg0: i32) -> (i32, i32, i32) {
    %c0_i32 = arith.constant 0 : i32
    %c0_i32_0 = arith.constant 0 : i32
    %c0_i32_1 = arith.constant 0 : i32
    %c0_i32_2 = arith.constant 0 : i32
    return %c0_i32, %c0_i32_0, %c0_i32_1 : i32, i32, i32
  }
  func.func @transform_15(%arg0: i32) -> (i32, i32, i32) {
    %c0_i32 = arith.constant 0 : i32
    %c0_i32_0 = arith.constant 0 : i32
    %c0_i32_1 = arith.constant 0 : i32
    %c0_i32_2 = arith.constant 0 : i32
    return %c0_i32, %c0_i32_0, %c0_i32_1 : i32, i32, i32
  }
  func.func @transform_16(%arg0: i32) -> (i32, i32, i32) {
    %c0_i32 = arith.constant 0 : i32
    %c0_i32_0 = arith.constant 0 : i32
    %c0_i32_1 = arith.constant 0 : i32
    return %arg0, %c0_i32, %c0_i32_0 : i32, i32, i32
  }
}

module attributes {stable_mosaic.version = 11 : i64} {
  func.func @_ext_encoder_kernel(%arg0: i32, %arg1: memref<1x8x128xf32, #tpu.memory_space<vmem>>, %arg2: memref<1x1x8xf32, #tpu.memory_space<vmem>>, %arg3: memref<2x1x128xf32, #tpu.memory_space<vmem>>, %arg4: memref<2x1x128xf32, #tpu.memory_space<vmem>>, %arg5: memref<2x128x768xbf16, #tpu.memory_space<vmem>>, %arg6: memref<2x1x768xf32, #tpu.memory_space<vmem>>, %arg7: memref<2x2x128x128xbf16, #tpu.memory_space<vmem>>, %arg8: memref<2x1x128xf32, #tpu.memory_space<vmem>>, %arg9: memref<2x1x128xf32, #tpu.memory_space<vmem>>, %arg10: memref<2x1x128xf32, #tpu.memory_space<vmem>>, %arg11: memref<2x128x128xbf16, #tpu.memory_space<vmem>>, %arg12: memref<2x1x128xf32, #tpu.memory_space<vmem>>, %arg13: memref<2x128x128xbf16, #tpu.memory_space<vmem>>, %arg14: memref<2x1x128xf32, #tpu.memory_space<vmem>>, %arg15: memref<1x128xf32, #tpu.memory_space<vmem>>, %arg16: memref<1x128xf32, #tpu.memory_space<vmem>>, %arg17: memref<128x128xbf16, #tpu.memory_space<vmem>>, %arg18: memref<1x1xf32, #tpu.memory_space<vmem>>, %arg19: memref<1x8x128xf32, #tpu.memory_space<vmem>>) attributes {dimension_semantics = [#tpu.dimension_semantics<parallel>], iteration_bounds = array<i64: 2>, scalar_prefetch = 0 : i64, scratch_operands = 0 : i64, tpu.core_type = #tpu.core_type<tc>, window_params = [{transform_indices = @transform_0, window_bounds = array<i64: 1, 8, 128>}, {transform_indices = @transform_1, window_bounds = array<i64: 1, 1, 8>}, {pipeline_mode = #tpu.pipeline_mode<synchronous>, transform_indices = @transform_2, window_bounds = array<i64: 2, 1, 128>}, {pipeline_mode = #tpu.pipeline_mode<synchronous>, transform_indices = @transform_3, window_bounds = array<i64: 2, 1, 128>}, {pipeline_mode = #tpu.pipeline_mode<synchronous>, transform_indices = @transform_4, window_bounds = array<i64: 2, 128, 768>}, {pipeline_mode = #tpu.pipeline_mode<synchronous>, transform_indices = @transform_5, window_bounds = array<i64: 2, 1, 768>}, {pipeline_mode = #tpu.pipeline_mode<synchronous>, transform_indices = @transform_6, window_bounds = array<i64: 2, 2, 128, 128>}, {pipeline_mode = #tpu.pipeline_mode<synchronous>, transform_indices = @transform_7, window_bounds = array<i64: 2, 1, 128>}, {pipeline_mode = #tpu.pipeline_mode<synchronous>, transform_indices = @transform_8, window_bounds = array<i64: 2, 1, 128>}, {pipeline_mode = #tpu.pipeline_mode<synchronous>, transform_indices = @transform_9, window_bounds = array<i64: 2, 1, 128>}, {pipeline_mode = #tpu.pipeline_mode<synchronous>, transform_indices = @transform_10, window_bounds = array<i64: 2, 128, 128>}, {pipeline_mode = #tpu.pipeline_mode<synchronous>, transform_indices = @transform_11, window_bounds = array<i64: 2, 1, 128>}, {pipeline_mode = #tpu.pipeline_mode<synchronous>, transform_indices = @transform_12, window_bounds = array<i64: 2, 128, 128>}, {pipeline_mode = #tpu.pipeline_mode<synchronous>, transform_indices = @transform_13, window_bounds = array<i64: 2, 1, 128>}, {pipeline_mode = #tpu.pipeline_mode<synchronous>, transform_indices = @transform_14, window_bounds = array<i64: 1, 128>}, {pipeline_mode = #tpu.pipeline_mode<synchronous>, transform_indices = @transform_15, window_bounds = array<i64: 1, 128>}, {pipeline_mode = #tpu.pipeline_mode<synchronous>, transform_indices = @transform_16, window_bounds = array<i64: 128, 128>}, {pipeline_mode = #tpu.pipeline_mode<synchronous>, transform_indices = @transform_17, window_bounds = array<i64: 1, 1>}, {transform_indices = @transform_18, window_bounds = array<i64: 1, 8, 128>}]} {
    %c0 = arith.constant 0 : index
    %c0_0 = arith.constant 0 : index
    %c0_1 = arith.constant 0 : index
    %0 = vector.load %arg1[%c0, %c0_0, %c0_1] : memref<1x8x128xf32, #tpu.memory_space<vmem>>, vector<1x8x128xf32>
    %1 = vector.shape_cast %0 : vector<1x8x128xf32> to vector<8x128xf32>
    %c0_2 = arith.constant 0 : index
    %c0_3 = arith.constant 0 : index
    %c0_4 = arith.constant 0 : index
    %2 = vector.load %arg2[%c0_2, %c0_3, %c0_4] : memref<1x1x8xf32, #tpu.memory_space<vmem>>, vector<1x1x8xf32>
    %3 = vector.shape_cast %2 : vector<1x1x8xf32> to vector<1x8xf32>
    %cst = arith.constant 1.000000e+00 : f32
    %4 = vector.broadcast %cst : f32 to vector<1x8xf32>
    %5 = arith.subf %4, %3 : vector<1x8xf32>
    %cst_5 = arith.constant -9.99999984E+17 : f32
    %6 = vector.broadcast %cst_5 : f32 to vector<1x8xf32>
    %7 = arith.mulf %5, %6 : vector<1x8xf32>
    %8 = tpu.iota {dimensions = array<i32: 1>} : vector<8x128xi32>
    %c32_i32 = arith.constant 32 : i32
    %9 = vector.broadcast %c32_i32 : i32 to vector<8x128xi32>
    %10 = arith.cmpi slt, %8, %9 : vector<8x128xi32>
    %c0_6 = arith.constant 0 : index
    %c0_7 = arith.constant 0 : index
    %c0_8 = arith.constant 0 : index
    %11 = vector.load %arg5[%c0_6, %c0_7, %c0_8] : memref<2x128x768xbf16, #tpu.memory_space<vmem>>, vector<1x128x768xbf16>
    %12 = vector.shape_cast %11 : vector<1x128x768xbf16> to vector<128x768xbf16>
    %c0_9 = arith.constant 0 : index
    %c0_10 = arith.constant 0 : index
    %c0_11 = arith.constant 0 : index
    %13 = vector.load %arg6[%c0_9, %c0_10, %c0_11] : memref<2x1x768xf32, #tpu.memory_space<vmem>>, vector<1x1x768xf32>
    %14 = vector.shape_cast %13 : vector<1x1x768xf32> to vector<1x768xf32>
    %c0_12 = arith.constant 0 : index
    %c0_13 = arith.constant 0 : index
    %c0_14 = arith.constant 0 : index
    %c0_15 = arith.constant 0 : index
    %15 = vector.load %arg7[%c0_12, %c0_13, %c0_14, %c0_15] : memref<2x2x128x128xbf16, #tpu.memory_space<vmem>>, vector<1x2x128x128xbf16>
    %16 = vector.shape_cast %15 : vector<1x2x128x128xbf16> to vector<2x128x128xbf16>
    %17 = arith.truncf %1 : vector<8x128xf32> to vector<8x128xbf16>
    %cst_16 = arith.constant dense<0.000000e+00> : vector<8x768xf32>
    %18 = tpu.matmul %17, %12, %cst_16 {dimension_numbers = #tpu.dot_dimension_numbers<[1], [0], [0], [1], [0, 0, 1, 1], [], []>} : vector<8x128xbf16>, vector<128x768xbf16>, vector<8x768xf32> -> vector<8x768xf32>
    %19 = vector.broadcast %14 : vector<1x768xf32> to vector<8x768xf32>
    %20 = arith.addf %18, %19 : vector<8x768xf32>
    %21 = vector.extract_strided_slice %20 {offsets = [0, 0], sizes = [8, 128], strides = [1, 1]} : vector<8x768xf32> to vector<8x128xf32>
    %22 = arith.truncf %21 : vector<8x128xf32> to vector<8x128xbf16>
    %23 = vector.extract_strided_slice %20 {offsets = [0, 128], sizes = [8, 128], strides = [1, 1]} : vector<8x768xf32> to vector<8x128xf32>
    %24 = arith.truncf %23 : vector<8x128xf32> to vector<8x128xbf16>
    %25 = vector.extract_strided_slice %20 {offsets = [0, 256], sizes = [8, 128], strides = [1, 1]} : vector<8x768xf32> to vector<8x128xf32>
    %26 = arith.truncf %25 : vector<8x128xf32> to vector<8x128xbf16>
    %cst_17 = arith.constant dense<0.000000e+00> : vector<8x8xf32>
    %27 = tpu.matmul %22, %24, %cst_17 {dimension_numbers = #tpu.dot_dimension_numbers<[1], [1], [0], [0], [0, 0, 1, 0], [], []>} : vector<8x128xbf16>, vector<8x128xbf16>, vector<8x8xf32> -> vector<8x8xf32>
    %28 = vector.broadcast %7 : vector<1x8xf32> to vector<8x8xf32>
    %29 = arith.addf %27, %28 : vector<8x8xf32>
    %cst_18 = arith.constant dense<0xFF800000> : vector<8xf32>
    %30 = vector.multi_reduction <maximumf>, %29, %cst_18 [1] : vector<8x8xf32> to vector<8xf32>
    %31 = vector.shape_cast %30 : vector<8xf32> to vector<8x1xf32>
    %32 = vector.broadcast %31 : vector<8x1xf32> to vector<8x8xf32>
    %33 = arith.subf %29, %32 : vector<8x8xf32>
    %34 = math.exp %33 : vector<8x8xf32>
    %cst_19 = arith.constant dense<0.000000e+00> : vector<8xf32>
    %35 = vector.multi_reduction <add>, %34, %cst_19 [1] : vector<8x8xf32> to vector<8xf32>
    %36 = vector.shape_cast %35 : vector<8xf32> to vector<8x1xf32>
    %37 = tpu.reciprocal %36 : vector<8x1xf32> -> vector<8x1xf32>
    %38 = vector.broadcast %37 : vector<8x1xf32> to vector<8x8xf32>
    %39 = arith.mulf %34, %38 : vector<8x8xf32>
    %40 = arith.truncf %39 : vector<8x8xf32> to vector<8x8xbf16>
    %cst_20 = arith.constant dense<0.000000e+00> : vector<8x128xf32>
    %41 = tpu.matmul %40, %26, %cst_20 {dimension_numbers = #tpu.dot_dimension_numbers<[1], [0], [0], [1], [0, 0, 1, 1], [], []>} : vector<8x8xbf16>, vector<8x128xbf16>, vector<8x128xf32> -> vector<8x128xf32>
    %42 = arith.truncf %41 : vector<8x128xf32> to vector<8x128xbf16>
    %43 = vector.extract_strided_slice %16 {offsets = [0, 0, 0], sizes = [1, 128, 128], strides = [1, 1, 1]} : vector<2x128x128xbf16> to vector<1x128x128xbf16>
    %44 = vector.shape_cast %43 : vector<1x128x128xbf16> to vector<128x128xbf16>
    %cst_21 = arith.constant dense<0.000000e+00> : vector<8x128xf32>
    %45 = tpu.matmul %42, %44, %cst_21 {dimension_numbers = #tpu.dot_dimension_numbers<[1], [0], [0], [1], [0, 0, 1, 1], [], []>} : vector<8x128xbf16>, vector<128x128xbf16>, vector<8x128xf32> -> vector<8x128xf32>
    %46 = vector.extract_strided_slice %20 {offsets = [0, 384], sizes = [8, 128], strides = [1, 1]} : vector<8x768xf32> to vector<8x128xf32>
    %47 = arith.truncf %46 : vector<8x128xf32> to vector<8x128xbf16>
    %48 = vector.extract_strided_slice %20 {offsets = [0, 512], sizes = [8, 128], strides = [1, 1]} : vector<8x768xf32> to vector<8x128xf32>
    %49 = arith.truncf %48 : vector<8x128xf32> to vector<8x128xbf16>
    %50 = vector.extract_strided_slice %20 {offsets = [0, 640], sizes = [8, 128], strides = [1, 1]} : vector<8x768xf32> to vector<8x128xf32>
    %51 = arith.truncf %50 : vector<8x128xf32> to vector<8x128xbf16>
    %cst_22 = arith.constant dense<0.000000e+00> : vector<8x8xf32>
    %52 = tpu.matmul %47, %49, %cst_22 {dimension_numbers = #tpu.dot_dimension_numbers<[1], [1], [0], [0], [0, 0, 1, 0], [], []>} : vector<8x128xbf16>, vector<8x128xbf16>, vector<8x8xf32> -> vector<8x8xf32>
    %53 = vector.broadcast %7 : vector<1x8xf32> to vector<8x8xf32>
    %54 = arith.addf %52, %53 : vector<8x8xf32>
    %cst_23 = arith.constant dense<0xFF800000> : vector<8xf32>
    %55 = vector.multi_reduction <maximumf>, %54, %cst_23 [1] : vector<8x8xf32> to vector<8xf32>
    %56 = vector.shape_cast %55 : vector<8xf32> to vector<8x1xf32>
    %57 = vector.broadcast %56 : vector<8x1xf32> to vector<8x8xf32>
    %58 = arith.subf %54, %57 : vector<8x8xf32>
    %59 = math.exp %58 : vector<8x8xf32>
    %cst_24 = arith.constant dense<0.000000e+00> : vector<8xf32>
    %60 = vector.multi_reduction <add>, %59, %cst_24 [1] : vector<8x8xf32> to vector<8xf32>
    %61 = vector.shape_cast %60 : vector<8xf32> to vector<8x1xf32>
    %62 = tpu.reciprocal %61 : vector<8x1xf32> -> vector<8x1xf32>
    %63 = vector.broadcast %62 : vector<8x1xf32> to vector<8x8xf32>
    %64 = arith.mulf %59, %63 : vector<8x8xf32>
    %65 = arith.truncf %64 : vector<8x8xf32> to vector<8x8xbf16>
    %cst_25 = arith.constant dense<0.000000e+00> : vector<8x128xf32>
    %66 = tpu.matmul %65, %51, %cst_25 {dimension_numbers = #tpu.dot_dimension_numbers<[1], [0], [0], [1], [0, 0, 1, 1], [], []>} : vector<8x8xbf16>, vector<8x128xbf16>, vector<8x128xf32> -> vector<8x128xf32>
    %67 = arith.truncf %66 : vector<8x128xf32> to vector<8x128xbf16>
    %68 = vector.extract_strided_slice %16 {offsets = [1, 0, 0], sizes = [1, 128, 128], strides = [1, 1, 1]} : vector<2x128x128xbf16> to vector<1x128x128xbf16>
    %69 = vector.shape_cast %68 : vector<1x128x128xbf16> to vector<128x128xbf16>
    %cst_26 = arith.constant dense<0.000000e+00> : vector<8x128xf32>
    %70 = tpu.matmul %67, %69, %cst_26 {dimension_numbers = #tpu.dot_dimension_numbers<[1], [0], [0], [1], [0, 0, 1, 1], [], []>} : vector<8x128xbf16>, vector<128x128xbf16>, vector<8x128xf32> -> vector<8x128xf32>
    %71 = arith.addf %45, %70 : vector<8x128xf32>
    %c0_27 = arith.constant 0 : index
    %c0_28 = arith.constant 0 : index
    %c0_29 = arith.constant 0 : index
    %72 = vector.load %arg8[%c0_27, %c0_28, %c0_29] : memref<2x1x128xf32, #tpu.memory_space<vmem>>, vector<1x1x128xf32>
    %73 = vector.shape_cast %72 : vector<1x1x128xf32> to vector<1x128xf32>
    %74 = vector.broadcast %73 : vector<1x128xf32> to vector<8x128xf32>
    %75 = arith.addf %71, %74 : vector<8x128xf32>
    %76 = arith.addf %75, %1 : vector<8x128xf32>
    %c0_30 = arith.constant 0 : index
    %c0_31 = arith.constant 0 : index
    %c0_32 = arith.constant 0 : index
    %77 = vector.load %arg9[%c0_30, %c0_31, %c0_32] : memref<2x1x128xf32, #tpu.memory_space<vmem>>, vector<1x1x128xf32>
    %78 = vector.shape_cast %77 : vector<1x1x128xf32> to vector<1x128xf32>
    %c0_33 = arith.constant 0 : index
    %c0_34 = arith.constant 0 : index
    %c0_35 = arith.constant 0 : index
    %79 = vector.load %arg10[%c0_33, %c0_34, %c0_35] : memref<2x1x128xf32, #tpu.memory_space<vmem>>, vector<1x1x128xf32>
    %80 = vector.shape_cast %79 : vector<1x1x128xf32> to vector<1x128xf32>
    %cst_36 = arith.constant dense<0.000000e+00> : vector<8xf32>
    %81 = vector.multi_reduction <add>, %76, %cst_36 [1] : vector<8x128xf32> to vector<8xf32>
    %82 = vector.shape_cast %81 : vector<8xf32> to vector<8x1xf32>
    %cst_37 = arith.constant 3.125000e-02 : f32
    %83 = vector.broadcast %cst_37 : f32 to vector<8x1xf32>
    %84 = arith.mulf %82, %83 : vector<8x1xf32>
    %85 = vector.broadcast %84 : vector<8x1xf32> to vector<8x128xf32>
    %86 = arith.subf %76, %85 : vector<8x128xf32>
    %cst_38 = arith.constant 0.000000e+00 : f32
    %87 = vector.broadcast %cst_38 : f32 to vector<8x128xf32>
    %88 = arith.select %10, %86, %87 : vector<8x128xi1>, vector<8x128xf32>
    %89 = arith.mulf %88, %88 : vector<8x128xf32>
    %cst_39 = arith.constant dense<0.000000e+00> : vector<8xf32>
    %90 = vector.multi_reduction <add>, %89, %cst_39 [1] : vector<8x128xf32> to vector<8xf32>
    %91 = vector.shape_cast %90 : vector<8xf32> to vector<8x1xf32>
    %cst_40 = arith.constant 3.125000e-02 : f32
    %92 = vector.broadcast %cst_40 : f32 to vector<8x1xf32>
    %93 = arith.mulf %91, %92 : vector<8x1xf32>
    %cst_41 = arith.constant 9.99999997E-7 : f32
    %94 = vector.broadcast %cst_41 : f32 to vector<8x1xf32>
    %95 = arith.addf %93, %94 : vector<8x1xf32>
    %96 = math.rsqrt %95 : vector<8x1xf32>
    %97 = vector.broadcast %96 : vector<8x1xf32> to vector<8x128xf32>
    %98 = arith.mulf %88, %97 : vector<8x128xf32>
    %99 = vector.broadcast %78 : vector<1x128xf32> to vector<8x128xf32>
    %100 = arith.mulf %98, %99 : vector<8x128xf32>
    %101 = vector.broadcast %80 : vector<1x128xf32> to vector<8x128xf32>
    %102 = arith.addf %100, %101 : vector<8x128xf32>
    %c0_42 = arith.constant 0 : index
    %c0_43 = arith.constant 0 : index
    %c0_44 = arith.constant 0 : index
    %103 = vector.load %arg11[%c0_42, %c0_43, %c0_44] : memref<2x128x128xbf16, #tpu.memory_space<vmem>>, vector<1x128x128xbf16>
    %104 = vector.shape_cast %103 : vector<1x128x128xbf16> to vector<128x128xbf16>
    %105 = arith.truncf %102 : vector<8x128xf32> to vector<8x128xbf16>
    %cst_45 = arith.constant dense<0.000000e+00> : vector<8x128xf32>
    %106 = tpu.matmul %105, %104, %cst_45 {dimension_numbers = #tpu.dot_dimension_numbers<[1], [0], [0], [1], [0, 0, 1, 1], [], []>} : vector<8x128xbf16>, vector<128x128xbf16>, vector<8x128xf32> -> vector<8x128xf32>
    %c0_46 = arith.constant 0 : index
    %c0_47 = arith.constant 0 : index
    %c0_48 = arith.constant 0 : index
    %107 = vector.load %arg12[%c0_46, %c0_47, %c0_48] : memref<2x1x128xf32, #tpu.memory_space<vmem>>, vector<1x1x128xf32>
    %108 = vector.shape_cast %107 : vector<1x1x128xf32> to vector<1x128xf32>
    %109 = vector.broadcast %108 : vector<1x128xf32> to vector<8x128xf32>
    %110 = arith.addf %106, %109 : vector<8x128xf32>
    %111 = arith.mulf %110, %110 : vector<8x128xf32>
    %112 = arith.mulf %110, %111 : vector<8x128xf32>
    %cst_49 = arith.constant 4.471500e-02 : f32
    %113 = vector.broadcast %cst_49 : f32 to vector<8x128xf32>
    %114 = arith.mulf %113, %112 : vector<8x128xf32>
    %115 = arith.addf %110, %114 : vector<8x128xf32>
    %cst_50 = arith.constant 0.797884583 : f32
    %116 = vector.broadcast %cst_50 : f32 to vector<8x128xf32>
    %117 = arith.mulf %116, %115 : vector<8x128xf32>
    %118 = math.tanh %117 : vector<8x128xf32>
    %cst_51 = arith.constant 1.000000e+00 : f32
    %119 = vector.broadcast %cst_51 : f32 to vector<8x128xf32>
    %120 = arith.addf %119, %118 : vector<8x128xf32>
    %cst_52 = arith.constant 5.000000e-01 : f32
    %121 = vector.broadcast %cst_52 : f32 to vector<8x128xf32>
    %122 = arith.mulf %121, %120 : vector<8x128xf32>
    %123 = arith.mulf %110, %122 : vector<8x128xf32>
    %c0_53 = arith.constant 0 : index
    %c0_54 = arith.constant 0 : index
    %c0_55 = arith.constant 0 : index
    %124 = vector.load %arg13[%c0_53, %c0_54, %c0_55] : memref<2x128x128xbf16, #tpu.memory_space<vmem>>, vector<1x128x128xbf16>
    %125 = vector.shape_cast %124 : vector<1x128x128xbf16> to vector<128x128xbf16>
    %126 = arith.truncf %123 : vector<8x128xf32> to vector<8x128xbf16>
    %cst_56 = arith.constant dense<0.000000e+00> : vector<8x128xf32>
    %127 = tpu.matmul %126, %125, %cst_56 {dimension_numbers = #tpu.dot_dimension_numbers<[1], [0], [0], [1], [0, 0, 1, 1], [], []>} : vector<8x128xbf16>, vector<128x128xbf16>, vector<8x128xf32> -> vector<8x128xf32>
    %c0_57 = arith.constant 0 : index
    %c0_58 = arith.constant 0 : index
    %c0_59 = arith.constant 0 : index
    %128 = vector.load %arg14[%c0_57, %c0_58, %c0_59] : memref<2x1x128xf32, #tpu.memory_space<vmem>>, vector<1x1x128xf32>
    %129 = vector.shape_cast %128 : vector<1x1x128xf32> to vector<1x128xf32>
    %130 = vector.broadcast %129 : vector<1x128xf32> to vector<8x128xf32>
    %131 = arith.addf %127, %130 : vector<8x128xf32>
    %132 = arith.addf %131, %76 : vector<8x128xf32>
    %c1 = arith.constant 1 : index
    %c0_60 = arith.constant 0 : index
    %c0_61 = arith.constant 0 : index
    %133 = vector.load %arg3[%c1, %c0_60, %c0_61] : memref<2x1x128xf32, #tpu.memory_space<vmem>>, vector<1x1x128xf32>
    %134 = vector.shape_cast %133 : vector<1x1x128xf32> to vector<1x128xf32>
    %c1_62 = arith.constant 1 : index
    %c0_63 = arith.constant 0 : index
    %c0_64 = arith.constant 0 : index
    %135 = vector.load %arg4[%c1_62, %c0_63, %c0_64] : memref<2x1x128xf32, #tpu.memory_space<vmem>>, vector<1x1x128xf32>
    %136 = vector.shape_cast %135 : vector<1x1x128xf32> to vector<1x128xf32>
    %cst_65 = arith.constant dense<0.000000e+00> : vector<8xf32>
    %137 = vector.multi_reduction <add>, %132, %cst_65 [1] : vector<8x128xf32> to vector<8xf32>
    %138 = vector.shape_cast %137 : vector<8xf32> to vector<8x1xf32>
    %cst_66 = arith.constant 3.125000e-02 : f32
    %139 = vector.broadcast %cst_66 : f32 to vector<8x1xf32>
    %140 = arith.mulf %138, %139 : vector<8x1xf32>
    %141 = vector.broadcast %140 : vector<8x1xf32> to vector<8x128xf32>
    %142 = arith.subf %132, %141 : vector<8x128xf32>
    %cst_67 = arith.constant 0.000000e+00 : f32
    %143 = vector.broadcast %cst_67 : f32 to vector<8x128xf32>
    %144 = arith.select %10, %142, %143 : vector<8x128xi1>, vector<8x128xf32>
    %145 = arith.mulf %144, %144 : vector<8x128xf32>
    %cst_68 = arith.constant dense<0.000000e+00> : vector<8xf32>
    %146 = vector.multi_reduction <add>, %145, %cst_68 [1] : vector<8x128xf32> to vector<8xf32>
    %147 = vector.shape_cast %146 : vector<8xf32> to vector<8x1xf32>
    %cst_69 = arith.constant 3.125000e-02 : f32
    %148 = vector.broadcast %cst_69 : f32 to vector<8x1xf32>
    %149 = arith.mulf %147, %148 : vector<8x1xf32>
    %cst_70 = arith.constant 9.99999997E-7 : f32
    %150 = vector.broadcast %cst_70 : f32 to vector<8x1xf32>
    %151 = arith.addf %149, %150 : vector<8x1xf32>
    %152 = math.rsqrt %151 : vector<8x1xf32>
    %153 = vector.broadcast %152 : vector<8x1xf32> to vector<8x128xf32>
    %154 = arith.mulf %144, %153 : vector<8x128xf32>
    %155 = vector.broadcast %134 : vector<1x128xf32> to vector<8x128xf32>
    %156 = arith.mulf %154, %155 : vector<8x128xf32>
    %157 = vector.broadcast %136 : vector<1x128xf32> to vector<8x128xf32>
    %158 = arith.addf %156, %157 : vector<8x128xf32>
    %c1_71 = arith.constant 1 : index
    %c0_72 = arith.constant 0 : index
    %c0_73 = arith.constant 0 : index
    %159 = vector.load %arg5[%c1_71, %c0_72, %c0_73] : memref<2x128x768xbf16, #tpu.memory_space<vmem>>, vector<1x128x768xbf16>
    %160 = vector.shape_cast %159 : vector<1x128x768xbf16> to vector<128x768xbf16>
    %c1_74 = arith.constant 1 : index
    %c0_75 = arith.constant 0 : index
    %c0_76 = arith.constant 0 : index
    %161 = vector.load %arg6[%c1_74, %c0_75, %c0_76] : memref<2x1x768xf32, #tpu.memory_space<vmem>>, vector<1x1x768xf32>
    %162 = vector.shape_cast %161 : vector<1x1x768xf32> to vector<1x768xf32>
    %c1_77 = arith.constant 1 : index
    %c0_78 = arith.constant 0 : index
    %c0_79 = arith.constant 0 : index
    %c0_80 = arith.constant 0 : index
    %163 = vector.load %arg7[%c1_77, %c0_78, %c0_79, %c0_80] : memref<2x2x128x128xbf16, #tpu.memory_space<vmem>>, vector<1x2x128x128xbf16>
    %164 = vector.shape_cast %163 : vector<1x2x128x128xbf16> to vector<2x128x128xbf16>
    %165 = arith.truncf %158 : vector<8x128xf32> to vector<8x128xbf16>
    %cst_81 = arith.constant dense<0.000000e+00> : vector<8x768xf32>
    %166 = tpu.matmul %165, %160, %cst_81 {dimension_numbers = #tpu.dot_dimension_numbers<[1], [0], [0], [1], [0, 0, 1, 1], [], []>} : vector<8x128xbf16>, vector<128x768xbf16>, vector<8x768xf32> -> vector<8x768xf32>
    %167 = vector.broadcast %162 : vector<1x768xf32> to vector<8x768xf32>
    %168 = arith.addf %166, %167 : vector<8x768xf32>
    %169 = vector.extract_strided_slice %168 {offsets = [0, 0], sizes = [8, 128], strides = [1, 1]} : vector<8x768xf32> to vector<8x128xf32>
    %170 = arith.truncf %169 : vector<8x128xf32> to vector<8x128xbf16>
    %171 = vector.extract_strided_slice %168 {offsets = [0, 128], sizes = [8, 128], strides = [1, 1]} : vector<8x768xf32> to vector<8x128xf32>
    %172 = arith.truncf %171 : vector<8x128xf32> to vector<8x128xbf16>
    %173 = vector.extract_strided_slice %168 {offsets = [0, 256], sizes = [8, 128], strides = [1, 1]} : vector<8x768xf32> to vector<8x128xf32>
    %174 = arith.truncf %173 : vector<8x128xf32> to vector<8x128xbf16>
    %cst_82 = arith.constant dense<0.000000e+00> : vector<8x8xf32>
    %175 = tpu.matmul %170, %172, %cst_82 {dimension_numbers = #tpu.dot_dimension_numbers<[1], [1], [0], [0], [0, 0, 1, 0], [], []>} : vector<8x128xbf16>, vector<8x128xbf16>, vector<8x8xf32> -> vector<8x8xf32>
    %176 = vector.broadcast %7 : vector<1x8xf32> to vector<8x8xf32>
    %177 = arith.addf %175, %176 : vector<8x8xf32>
    %cst_83 = arith.constant dense<0xFF800000> : vector<8xf32>
    %178 = vector.multi_reduction <maximumf>, %177, %cst_83 [1] : vector<8x8xf32> to vector<8xf32>
    %179 = vector.shape_cast %178 : vector<8xf32> to vector<8x1xf32>
    %180 = vector.broadcast %179 : vector<8x1xf32> to vector<8x8xf32>
    %181 = arith.subf %177, %180 : vector<8x8xf32>
    %182 = math.exp %181 : vector<8x8xf32>
    %cst_84 = arith.constant dense<0.000000e+00> : vector<8xf32>
    %183 = vector.multi_reduction <add>, %182, %cst_84 [1] : vector<8x8xf32> to vector<8xf32>
    %184 = vector.shape_cast %183 : vector<8xf32> to vector<8x1xf32>
    %185 = tpu.reciprocal %184 : vector<8x1xf32> -> vector<8x1xf32>
    %186 = vector.broadcast %185 : vector<8x1xf32> to vector<8x8xf32>
    %187 = arith.mulf %182, %186 : vector<8x8xf32>
    %188 = arith.truncf %187 : vector<8x8xf32> to vector<8x8xbf16>
    %cst_85 = arith.constant dense<0.000000e+00> : vector<8x128xf32>
    %189 = tpu.matmul %188, %174, %cst_85 {dimension_numbers = #tpu.dot_dimension_numbers<[1], [0], [0], [1], [0, 0, 1, 1], [], []>} : vector<8x8xbf16>, vector<8x128xbf16>, vector<8x128xf32> -> vector<8x128xf32>
    %190 = arith.truncf %189 : vector<8x128xf32> to vector<8x128xbf16>
    %191 = vector.extract_strided_slice %164 {offsets = [0, 0, 0], sizes = [1, 128, 128], strides = [1, 1, 1]} : vector<2x128x128xbf16> to vector<1x128x128xbf16>
    %192 = vector.shape_cast %191 : vector<1x128x128xbf16> to vector<128x128xbf16>
    %cst_86 = arith.constant dense<0.000000e+00> : vector<8x128xf32>
    %193 = tpu.matmul %190, %192, %cst_86 {dimension_numbers = #tpu.dot_dimension_numbers<[1], [0], [0], [1], [0, 0, 1, 1], [], []>} : vector<8x128xbf16>, vector<128x128xbf16>, vector<8x128xf32> -> vector<8x128xf32>
    %194 = vector.extract_strided_slice %168 {offsets = [0, 384], sizes = [8, 128], strides = [1, 1]} : vector<8x768xf32> to vector<8x128xf32>
    %195 = arith.truncf %194 : vector<8x128xf32> to vector<8x128xbf16>
    %196 = vector.extract_strided_slice %168 {offsets = [0, 512], sizes = [8, 128], strides = [1, 1]} : vector<8x768xf32> to vector<8x128xf32>
    %197 = arith.truncf %196 : vector<8x128xf32> to vector<8x128xbf16>
    %198 = vector.extract_strided_slice %168 {offsets = [0, 640], sizes = [8, 128], strides = [1, 1]} : vector<8x768xf32> to vector<8x128xf32>
    %199 = arith.truncf %198 : vector<8x128xf32> to vector<8x128xbf16>
    %cst_87 = arith.constant dense<0.000000e+00> : vector<8x8xf32>
    %200 = tpu.matmul %195, %197, %cst_87 {dimension_numbers = #tpu.dot_dimension_numbers<[1], [1], [0], [0], [0, 0, 1, 0], [], []>} : vector<8x128xbf16>, vector<8x128xbf16>, vector<8x8xf32> -> vector<8x8xf32>
    %201 = vector.broadcast %7 : vector<1x8xf32> to vector<8x8xf32>
    %202 = arith.addf %200, %201 : vector<8x8xf32>
    %cst_88 = arith.constant dense<0xFF800000> : vector<8xf32>
    %203 = vector.multi_reduction <maximumf>, %202, %cst_88 [1] : vector<8x8xf32> to vector<8xf32>
    %204 = vector.shape_cast %203 : vector<8xf32> to vector<8x1xf32>
    %205 = vector.broadcast %204 : vector<8x1xf32> to vector<8x8xf32>
    %206 = arith.subf %202, %205 : vector<8x8xf32>
    %207 = math.exp %206 : vector<8x8xf32>
    %cst_89 = arith.constant dense<0.000000e+00> : vector<8xf32>
    %208 = vector.multi_reduction <add>, %207, %cst_89 [1] : vector<8x8xf32> to vector<8xf32>
    %209 = vector.shape_cast %208 : vector<8xf32> to vector<8x1xf32>
    %210 = tpu.reciprocal %209 : vector<8x1xf32> -> vector<8x1xf32>
    %211 = vector.broadcast %210 : vector<8x1xf32> to vector<8x8xf32>
    %212 = arith.mulf %207, %211 : vector<8x8xf32>
    %213 = arith.truncf %212 : vector<8x8xf32> to vector<8x8xbf16>
    %cst_90 = arith.constant dense<0.000000e+00> : vector<8x128xf32>
    %214 = tpu.matmul %213, %199, %cst_90 {dimension_numbers = #tpu.dot_dimension_numbers<[1], [0], [0], [1], [0, 0, 1, 1], [], []>} : vector<8x8xbf16>, vector<8x128xbf16>, vector<8x128xf32> -> vector<8x128xf32>
    %215 = arith.truncf %214 : vector<8x128xf32> to vector<8x128xbf16>
    %216 = vector.extract_strided_slice %164 {offsets = [1, 0, 0], sizes = [1, 128, 128], strides = [1, 1, 1]} : vector<2x128x128xbf16> to vector<1x128x128xbf16>
    %217 = vector.shape_cast %216 : vector<1x128x128xbf16> to vector<128x128xbf16>
    %cst_91 = arith.constant dense<0.000000e+00> : vector<8x128xf32>
    %218 = tpu.matmul %215, %217, %cst_91 {dimension_numbers = #tpu.dot_dimension_numbers<[1], [0], [0], [1], [0, 0, 1, 1], [], []>} : vector<8x128xbf16>, vector<128x128xbf16>, vector<8x128xf32> -> vector<8x128xf32>
    %219 = arith.addf %193, %218 : vector<8x128xf32>
    %c1_92 = arith.constant 1 : index
    %c0_93 = arith.constant 0 : index
    %c0_94 = arith.constant 0 : index
    %220 = vector.load %arg8[%c1_92, %c0_93, %c0_94] : memref<2x1x128xf32, #tpu.memory_space<vmem>>, vector<1x1x128xf32>
    %221 = vector.shape_cast %220 : vector<1x1x128xf32> to vector<1x128xf32>
    %222 = vector.broadcast %221 : vector<1x128xf32> to vector<8x128xf32>
    %223 = arith.addf %219, %222 : vector<8x128xf32>
    %224 = arith.addf %223, %132 : vector<8x128xf32>
    %c1_95 = arith.constant 1 : index
    %c0_96 = arith.constant 0 : index
    %c0_97 = arith.constant 0 : index
    %225 = vector.load %arg9[%c1_95, %c0_96, %c0_97] : memref<2x1x128xf32, #tpu.memory_space<vmem>>, vector<1x1x128xf32>
    %226 = vector.shape_cast %225 : vector<1x1x128xf32> to vector<1x128xf32>
    %c1_98 = arith.constant 1 : index
    %c0_99 = arith.constant 0 : index
    %c0_100 = arith.constant 0 : index
    %227 = vector.load %arg10[%c1_98, %c0_99, %c0_100] : memref<2x1x128xf32, #tpu.memory_space<vmem>>, vector<1x1x128xf32>
    %228 = vector.shape_cast %227 : vector<1x1x128xf32> to vector<1x128xf32>
    %cst_101 = arith.constant dense<0.000000e+00> : vector<8xf32>
    %229 = vector.multi_reduction <add>, %224, %cst_101 [1] : vector<8x128xf32> to vector<8xf32>
    %230 = vector.shape_cast %229 : vector<8xf32> to vector<8x1xf32>
    %cst_102 = arith.constant 3.125000e-02 : f32
    %231 = vector.broadcast %cst_102 : f32 to vector<8x1xf32>
    %232 = arith.mulf %230, %231 : vector<8x1xf32>
    %233 = vector.broadcast %232 : vector<8x1xf32> to vector<8x128xf32>
    %234 = arith.subf %224, %233 : vector<8x128xf32>
    %cst_103 = arith.constant 0.000000e+00 : f32
    %235 = vector.broadcast %cst_103 : f32 to vector<8x128xf32>
    %236 = arith.select %10, %234, %235 : vector<8x128xi1>, vector<8x128xf32>
    %237 = arith.mulf %236, %236 : vector<8x128xf32>
    %cst_104 = arith.constant dense<0.000000e+00> : vector<8xf32>
    %238 = vector.multi_reduction <add>, %237, %cst_104 [1] : vector<8x128xf32> to vector<8xf32>
    %239 = vector.shape_cast %238 : vector<8xf32> to vector<8x1xf32>
    %cst_105 = arith.constant 3.125000e-02 : f32
    %240 = vector.broadcast %cst_105 : f32 to vector<8x1xf32>
    %241 = arith.mulf %239, %240 : vector<8x1xf32>
    %cst_106 = arith.constant 9.99999997E-7 : f32
    %242 = vector.broadcast %cst_106 : f32 to vector<8x1xf32>
    %243 = arith.addf %241, %242 : vector<8x1xf32>
    %244 = math.rsqrt %243 : vector<8x1xf32>
    %245 = vector.broadcast %244 : vector<8x1xf32> to vector<8x128xf32>
    %246 = arith.mulf %236, %245 : vector<8x128xf32>
    %247 = vector.broadcast %226 : vector<1x128xf32> to vector<8x128xf32>
    %248 = arith.mulf %246, %247 : vector<8x128xf32>
    %249 = vector.broadcast %228 : vector<1x128xf32> to vector<8x128xf32>
    %250 = arith.addf %248, %249 : vector<8x128xf32>
    %c1_107 = arith.constant 1 : index
    %c0_108 = arith.constant 0 : index
    %c0_109 = arith.constant 0 : index
    %251 = vector.load %arg11[%c1_107, %c0_108, %c0_109] : memref<2x128x128xbf16, #tpu.memory_space<vmem>>, vector<1x128x128xbf16>
    %252 = vector.shape_cast %251 : vector<1x128x128xbf16> to vector<128x128xbf16>
    %253 = arith.truncf %250 : vector<8x128xf32> to vector<8x128xbf16>
    %cst_110 = arith.constant dense<0.000000e+00> : vector<8x128xf32>
    %254 = tpu.matmul %253, %252, %cst_110 {dimension_numbers = #tpu.dot_dimension_numbers<[1], [0], [0], [1], [0, 0, 1, 1], [], []>} : vector<8x128xbf16>, vector<128x128xbf16>, vector<8x128xf32> -> vector<8x128xf32>
    %c1_111 = arith.constant 1 : index
    %c0_112 = arith.constant 0 : index
    %c0_113 = arith.constant 0 : index
    %255 = vector.load %arg12[%c1_111, %c0_112, %c0_113] : memref<2x1x128xf32, #tpu.memory_space<vmem>>, vector<1x1x128xf32>
    %256 = vector.shape_cast %255 : vector<1x1x128xf32> to vector<1x128xf32>
    %257 = vector.broadcast %256 : vector<1x128xf32> to vector<8x128xf32>
    %258 = arith.addf %254, %257 : vector<8x128xf32>
    %259 = arith.mulf %258, %258 : vector<8x128xf32>
    %260 = arith.mulf %258, %259 : vector<8x128xf32>
    %cst_114 = arith.constant 4.471500e-02 : f32
    %261 = vector.broadcast %cst_114 : f32 to vector<8x128xf32>
    %262 = arith.mulf %261, %260 : vector<8x128xf32>
    %263 = arith.addf %258, %262 : vector<8x128xf32>
    %cst_115 = arith.constant 0.797884583 : f32
    %264 = vector.broadcast %cst_115 : f32 to vector<8x128xf32>
    %265 = arith.mulf %264, %263 : vector<8x128xf32>
    %266 = math.tanh %265 : vector<8x128xf32>
    %cst_116 = arith.constant 1.000000e+00 : f32
    %267 = vector.broadcast %cst_116 : f32 to vector<8x128xf32>
    %268 = arith.addf %267, %266 : vector<8x128xf32>
    %cst_117 = arith.constant 5.000000e-01 : f32
    %269 = vector.broadcast %cst_117 : f32 to vector<8x128xf32>
    %270 = arith.mulf %269, %268 : vector<8x128xf32>
    %271 = arith.mulf %258, %270 : vector<8x128xf32>
    %c1_118 = arith.constant 1 : index
    %c0_119 = arith.constant 0 : index
    %c0_120 = arith.constant 0 : index
    %272 = vector.load %arg13[%c1_118, %c0_119, %c0_120] : memref<2x128x128xbf16, #tpu.memory_space<vmem>>, vector<1x128x128xbf16>
    %273 = vector.shape_cast %272 : vector<1x128x128xbf16> to vector<128x128xbf16>
    %274 = arith.truncf %271 : vector<8x128xf32> to vector<8x128xbf16>
    %cst_121 = arith.constant dense<0.000000e+00> : vector<8x128xf32>
    %275 = tpu.matmul %274, %273, %cst_121 {dimension_numbers = #tpu.dot_dimension_numbers<[1], [0], [0], [1], [0, 0, 1, 1], [], []>} : vector<8x128xbf16>, vector<128x128xbf16>, vector<8x128xf32> -> vector<8x128xf32>
    %c1_122 = arith.constant 1 : index
    %c0_123 = arith.constant 0 : index
    %c0_124 = arith.constant 0 : index
    %276 = vector.load %arg14[%c1_122, %c0_123, %c0_124] : memref<2x1x128xf32, #tpu.memory_space<vmem>>, vector<1x1x128xf32>
    %277 = vector.shape_cast %276 : vector<1x1x128xf32> to vector<1x128xf32>
    %278 = vector.broadcast %277 : vector<1x128xf32> to vector<8x128xf32>
    %279 = arith.addf %275, %278 : vector<8x128xf32>
    %280 = arith.addf %279, %224 : vector<8x128xf32>
    %c0_125 = arith.constant 0 : index
    %c0_126 = arith.constant 0 : index
    %281 = vector.load %arg15[%c0_125, %c0_126] : memref<1x128xf32, #tpu.memory_space<vmem>>, vector<1x128xf32>
    %c0_127 = arith.constant 0 : index
    %c0_128 = arith.constant 0 : index
    %282 = vector.load %arg16[%c0_127, %c0_128] : memref<1x128xf32, #tpu.memory_space<vmem>>, vector<1x128xf32>
    %cst_129 = arith.constant dense<0.000000e+00> : vector<8xf32>
    %283 = vector.multi_reduction <add>, %280, %cst_129 [1] : vector<8x128xf32> to vector<8xf32>
    %284 = vector.shape_cast %283 : vector<8xf32> to vector<8x1xf32>
    %cst_130 = arith.constant 3.125000e-02 : f32
    %285 = vector.broadcast %cst_130 : f32 to vector<8x1xf32>
    %286 = arith.mulf %284, %285 : vector<8x1xf32>
    %287 = vector.broadcast %286 : vector<8x1xf32> to vector<8x128xf32>
    %288 = arith.subf %280, %287 : vector<8x128xf32>
    %cst_131 = arith.constant 0.000000e+00 : f32
    %289 = vector.broadcast %cst_131 : f32 to vector<8x128xf32>
    %290 = arith.select %10, %288, %289 : vector<8x128xi1>, vector<8x128xf32>
    %291 = arith.mulf %290, %290 : vector<8x128xf32>
    %cst_132 = arith.constant dense<0.000000e+00> : vector<8xf32>
    %292 = vector.multi_reduction <add>, %291, %cst_132 [1] : vector<8x128xf32> to vector<8xf32>
    %293 = vector.shape_cast %292 : vector<8xf32> to vector<8x1xf32>
    %cst_133 = arith.constant 3.125000e-02 : f32
    %294 = vector.broadcast %cst_133 : f32 to vector<8x1xf32>
    %295 = arith.mulf %293, %294 : vector<8x1xf32>
    %cst_134 = arith.constant 9.99999997E-7 : f32
    %296 = vector.broadcast %cst_134 : f32 to vector<8x1xf32>
    %297 = arith.addf %295, %296 : vector<8x1xf32>
    %298 = math.rsqrt %297 : vector<8x1xf32>
    %299 = vector.broadcast %298 : vector<8x1xf32> to vector<8x128xf32>
    %300 = arith.mulf %290, %299 : vector<8x128xf32>
    %301 = vector.broadcast %281 : vector<1x128xf32> to vector<8x128xf32>
    %302 = arith.mulf %300, %301 : vector<8x128xf32>
    %303 = vector.broadcast %282 : vector<1x128xf32> to vector<8x128xf32>
    %304 = arith.addf %302, %303 : vector<8x128xf32>
    %c0_135 = arith.constant 0 : index
    %c0_136 = arith.constant 0 : index
    %305 = vector.load %arg17[%c0_135, %c0_136] : memref<128x128xbf16, #tpu.memory_space<vmem>>, vector<128x128xbf16>
    %306 = arith.truncf %304 : vector<8x128xf32> to vector<8x128xbf16>
    %cst_137 = arith.constant dense<0.000000e+00> : vector<8x128xf32>
    %307 = tpu.matmul %306, %305, %cst_137 {dimension_numbers = #tpu.dot_dimension_numbers<[1], [0], [0], [1], [0, 0, 1, 1], [], []>} : vector<8x128xbf16>, vector<128x128xbf16>, vector<8x128xf32> -> vector<8x128xf32>
    %c0_138 = arith.constant 0 : index
    %c0_139 = arith.constant 0 : index
    %308 = vector.load %arg18[%c0_138, %c0_139] : memref<1x1xf32, #tpu.memory_space<vmem>>, vector<1x1xf32>
    %309 = vector.broadcast %308 : vector<1x1xf32> to vector<8x128xf32>
    %310 = arith.addf %307, %309 : vector<8x128xf32>
    %311 = arith.negf %310 : vector<8x128xf32>
    %312 = math.exp %311 : vector<8x128xf32>
    %cst_140 = arith.constant 1.000000e+00 : f32
    %313 = vector.broadcast %cst_140 : f32 to vector<8x128xf32>
    %314 = arith.addf %313, %312 : vector<8x128xf32>
    %315 = arith.divf %313, %314 : vector<8x128xf32>
    %c0_141 = arith.constant 0 : index
    %c0_142 = arith.constant 0 : index
    %c0_143 = arith.constant 0 : index
    %316 = vector.load %arg19[%c0_141, %c0_142, %c0_143] : memref<1x8x128xf32, #tpu.memory_space<vmem>>, vector<1x8x128xf32>
    %317 = vector.shape_cast %316 : vector<1x8x128xf32> to vector<8x128xf32>
    %318 = vector.shape_cast %315 : vector<8x128xf32> to vector<1x8x128xf32>
    tpu.vector_store %arg19[%c0_141, %c0_142, %c0_143], %318 {strides = array<i32>} : memref<1x8x128xf32, #tpu.memory_space<vmem>>, vector<1x8x128xf32>,
    return
  }
  func.func @transform_0(%arg0: i32) -> (i32, i32, i32) {
    %c0_i32 = arith.constant 0 : i32
    %c0_i32_0 = arith.constant 0 : i32
    %c0_i32_1 = arith.constant 0 : i32
    return %arg0, %c0_i32, %c0_i32_0 : i32, i32, i32
  }
  func.func @transform_1(%arg0: i32) -> (i32, i32, i32) {
    %c0_i32 = arith.constant 0 : i32
    %c0_i32_0 = arith.constant 0 : i32
    %c0_i32_1 = arith.constant 0 : i32
    return %arg0, %c0_i32, %c0_i32_0 : i32, i32, i32
  }
  func.func @transform_2(%arg0: i32) -> (i32, i32, i32) {
    %c0_i32 = arith.constant 0 : i32
    %c0_i32_0 = arith.constant 0 : i32
    %c0_i32_1 = arith.constant 0 : i32
    %c0_i32_2 = arith.constant 0 : i32
    return %c0_i32, %c0_i32_0, %c0_i32_1 : i32, i32, i32
  }
  func.func @transform_3(%arg0: i32) -> (i32, i32, i32) {
    %c0_i32 = arith.constant 0 : i32
    %c0_i32_0 = arith.constant 0 : i32
    %c0_i32_1 = arith.constant 0 : i32
    %c0_i32_2 = arith.constant 0 : i32
    return %c0_i32, %c0_i32_0, %c0_i32_1 : i32, i32, i32
  }
  func.func @transform_4(%arg0: i32) -> (i32, i32, i32) {
    %c0_i32 = arith.constant 0 : i32
    %c0_i32_0 = arith.constant 0 : i32
    %c0_i32_1 = arith.constant 0 : i32
    %c0_i32_2 = arith.constant 0 : i32
    return %c0_i32, %c0_i32_0, %c0_i32_1 : i32, i32, i32
  }
  func.func @transform_5(%arg0: i32) -> (i32, i32, i32) {
    %c0_i32 = arith.constant 0 : i32
    %c0_i32_0 = arith.constant 0 : i32
    %c0_i32_1 = arith.constant 0 : i32
    %c0_i32_2 = arith.constant 0 : i32
    return %c0_i32, %c0_i32_0, %c0_i32_1 : i32, i32, i32
  }
  func.func @transform_6(%arg0: i32) -> (i32, i32, i32, i32) {
    %c0_i32 = arith.constant 0 : i32
    %c0_i32_0 = arith.constant 0 : i32
    %c0_i32_1 = arith.constant 0 : i32
    %c0_i32_2 = arith.constant 0 : i32
    %c0_i32_3 = arith.constant 0 : i32
    return %c0_i32, %c0_i32_0, %c0_i32_1, %c0_i32_2 : i32, i32, i32, i32
  }
  func.func @transform_7(%arg0: i32) -> (i32, i32, i32) {
    %c0_i32 = arith.constant 0 : i32
    %c0_i32_0 = arith.constant 0 : i32
    %c0_i32_1 = arith.constant 0 : i32
    %c0_i32_2 = arith.constant 0 : i32
    return %c0_i32, %c0_i32_0, %c0_i32_1 : i32, i32, i32
  }
  func.func @transform_8(%arg0: i32) -> (i32, i32, i32) {
    %c0_i32 = arith.constant 0 : i32
    %c0_i32_0 = arith.constant 0 : i32
    %c0_i32_1 = arith.constant 0 : i32
    %c0_i32_2 = arith.constant 0 : i32
    return %c0_i32, %c0_i32_0, %c0_i32_1 : i32, i32, i32
  }
  func.func @transform_9(%arg0: i32) -> (i32, i32, i32) {
    %c0_i32 = arith.constant 0 : i32
    %c0_i32_0 = arith.constant 0 : i32
    %c0_i32_1 = arith.constant 0 : i32
    %c0_i32_2 = arith.constant 0 : i32
    return %c0_i32, %c0_i32_0, %c0_i32_1 : i32, i32, i32
  }
  func.func @transform_10(%arg0: i32) -> (i32, i32, i32) {
    %c0_i32 = arith.constant 0 : i32
    %c0_i32_0 = arith.constant 0 : i32
    %c0_i32_1 = arith.constant 0 : i32
    %c0_i32_2 = arith.constant 0 : i32
    return %c0_i32, %c0_i32_0, %c0_i32_1 : i32, i32, i32
  }
  func.func @transform_11(%arg0: i32) -> (i32, i32, i32) {
    %c0_i32 = arith.constant 0 : i32
    %c0_i32_0 = arith.constant 0 : i32
    %c0_i32_1 = arith.constant 0 : i32
    %c0_i32_2 = arith.constant 0 : i32
    return %c0_i32, %c0_i32_0, %c0_i32_1 : i32, i32, i32
  }
  func.func @transform_12(%arg0: i32) -> (i32, i32, i32) {
    %c0_i32 = arith.constant 0 : i32
    %c0_i32_0 = arith.constant 0 : i32
    %c0_i32_1 = arith.constant 0 : i32
    %c0_i32_2 = arith.constant 0 : i32
    return %c0_i32, %c0_i32_0, %c0_i32_1 : i32, i32, i32
  }
  func.func @transform_13(%arg0: i32) -> (i32, i32, i32) {
    %c0_i32 = arith.constant 0 : i32
    %c0_i32_0 = arith.constant 0 : i32
    %c0_i32_1 = arith.constant 0 : i32
    %c0_i32_2 = arith.constant 0 : i32
    return %c0_i32, %c0_i32_0, %c0_i32_1 : i32, i32, i32
  }
  func.func @transform_14(%arg0: i32) -> (i32, i32) {
    %c0_i32 = arith.constant 0 : i32
    %c0_i32_0 = arith.constant 0 : i32
    %c0_i32_1 = arith.constant 0 : i32
    return %c0_i32, %c0_i32_0 : i32, i32
  }
  func.func @transform_15(%arg0: i32) -> (i32, i32) {
    %c0_i32 = arith.constant 0 : i32
    %c0_i32_0 = arith.constant 0 : i32
    %c0_i32_1 = arith.constant 0 : i32
    return %c0_i32, %c0_i32_0 : i32, i32
  }
  func.func @transform_16(%arg0: i32) -> (i32, i32) {
    %c0_i32 = arith.constant 0 : i32
    %c0_i32_0 = arith.constant 0 : i32
    %c0_i32_1 = arith.constant 0 : i32
    return %c0_i32, %c0_i32_0 : i32, i32
  }
  func.func @transform_17(%arg0: i32) -> (i32, i32) {
    %c0_i32 = arith.constant 0 : i32
    %c0_i32_0 = arith.constant 0 : i32
    %c0_i32_1 = arith.constant 0 : i32
    return %c0_i32, %c0_i32_0 : i32, i32
  }
  func.func @transform_18(%arg0: i32) -> (i32, i32, i32) {
    %c0_i32 = arith.constant 0 : i32
    %c0_i32_0 = arith.constant 0 : i32
    %c0_i32_1 = arith.constant 0 : i32
    return %arg0, %c0_i32, %c0_i32_0 : i32, i32, i32
  }
}

</mosaic_0001>

<bundles_post_ra>
// kernel: ext_summarizer_forward.3
= control target key start
LH: loop header
LB: loop body
LE: loop exit
PB: predicated region body
PF: predicated region fallthrough
CT: control target
= control target key end

     0   :  { %s4158_s0 = inlined_call_operand.vmem [shape: f32[2,8,128], index: 0, kind: input, shape index: {}]   ;;  %s4159_s1 = inlined_call_operand.vmem [shape: f32[2,1,8], index: 1, kind: input, shape index: {}]   ;;  %s4160_s2 = inlined_call_operand.vmem [shape: f32[2,1,128], index: 2, kind: input, shape index: {}]   ;;  %s4161_s3 = inlined_call_operand.vmem [shape: f32[2,1,128], index: 3, kind: input, shape index: {}]   ;;  %s4162_s4 = inlined_call_operand.hbm [shape: bf16[2,128,768], index: 4, kind: input, shape index: {}]   ;;  %s4163_s5 = inlined_call_operand.vmem [shape: f32[2,1,768], index: 5, kind: input, shape index: {}]   ;;  %s4164_s6 = inlined_call_operand.vmem [shape: bf16[2,2,128,128], index: 6, kind: input, shape index: {}]   ;;  %s4165_s7 = inlined_call_operand.vmem [shape: f32[2,1,128], index: 7, kind: input, shape index: {}]   ;;  %s4166_s8 = inlined_call_operand.vmem [shape: f32[2,1,128], index: 8, kind: input, shape index: {}]   ;;  %s4167_s9 = inlined_call_operand.vmem [shape: f32[2,1,128], index: 9, kind: input, shape index: {}]   ;;  %s4168_s10 = inlined_call_operand.vmem [shape: bf16[2,128,128], index: 10, kind: input, shape index: {}]   ;;  %s4169_s11 = inlined_call_operand.vmem [shape: f32[2,1,128], index: 11, kind: input, shape index: {}]   ;;  %s4170_s12 = inlined_call_operand.hbm [shape: bf16[2,128,128], index: 12, kind: input, shape index: {}]   ;;  %s4171_s13 = inlined_call_operand.vmem [shape: f32[2,1,128], index: 13, kind: input, shape index: {}]   ;;  %s4172_s14 = inlined_call_operand.vmem [shape: f32[1,128], index: 14, kind: input, shape index: {}]   ;;  %s4173_s15 = inlined_call_operand.vmem [shape: f32[1,128], index: 15, kind: input, shape index: {}]   ;;  %s4174_s16 = inlined_call_operand.vmem [shape: bf16[128,128], index: 16, kind: input, shape index: {}]   ;;  %s4175_s17 = inlined_call_operand.<no memory space> [shape: f32[1,1], index: 17, kind: input, shape index: {}]   ;;  %s4176_s18 = inlined_call_operand.vmem [shape: f32[2,8,128], index: 18, kind: output, shape index: {}]  }
   0x1   :  { %4177 = sst [smem:[#allocation9_spill]] %s4158_s0  ;;  %v23_v0 = vstv %s4175_s17 }
   0x2   :  { %4178 = sst [smem:[#allocation10_spill]] %s4159_s1  ;;  %24 = vst [vmem:[#allocation2] sm:$0x1] %v23_v0 }
   0x3   :  { %4179 = sst [smem:[#allocation11_spill]] %s4160_s2 }
   0x4   :  { %25 = vsyncpa [#allocation4], 0 }
   0x5   :  { %26 = vsyncpa [#allocation6], 0  ;;  %s3811_s29 = smov 0  }
   0x6 LB: > { %s468_s19 = sshll.u32 %s4162_s4, 4  ;;  %s3820_s1 = sadd.s32 4294967295, %s3704_s29   ;;  %s3704_s29 = sphi %s3811_s29, %s32_s29   ;;  %s469_s19 = int_to_ptr.hbm [resolvable:$true] %s468_s19 }
   0x7   : > { %p2635_p0 = scmp.ge.s32.totalorder %s3704_s29, 1  ;;  %p451_p1 = scmp.lt.s32.totalorder %s3704_s29, 3 }
   0x8   : > { %p3562_p2 = scmp.eq.s32.totalorder %s3820_s1, 0  ;;  %s3706_s20 = smov [#allocation3]  }
   0x9   : > { %p3825_p3 = pnand %p2635_p0, %p451_p1  ;;  %s470_s21 = sshll.u32 %s3706_s20, 4  ;;  %s471_s21 = int_to_ptr.vmem [resolvable:$true] %s470_s21 }
   0xa   : > { %s503_s23 = sshll.u32 %s4170_s12, 4  ;;  %s3707_s24 = smov [#allocation5]   ;;  %s504_s23 = int_to_ptr.hbm [resolvable:$true] %s503_s23 }
   0xb   : > { %p3555_p4 = pneg %p3825_p3  ;;  %s505_s25 = sshll.u32 %s3707_s24, 4  ;;  %s506_s25 = int_to_ptr.vmem [resolvable:$true] %s505_s25 }
   0xc   : > { %s3708_s26 = smov 384   ;;  %s3709_s27 = smov 24  }
   0xd   : > { %p3556_p5 = pnand %p3562_p2, %p3555_p4  ;;  %s3710_s28 = smov 64  }
   0xe   : > { %s3711_s30 = smov 4   ;;  %549 = sbr.rel (%p3825_p3) target bundleno = 3533 (0xdcd), region = 92 }
   0xf   : > { %3558 = dma.hbm_to_vmem [thread:$0]  (!%p3556_p5), %s469_s19, 12288, %s471_s21, [#allocation4], %s3708_s26, %s3708_s26, %s3709_s27  }
  0x10   : > { %3561 = dma.hbm_to_vmem [thread:$0]  (!%p3556_p5), %s504_s23, 2048, %s506_s25, [#allocation6], %s3710_s28, %s3710_s28, %s3711_s30  }
  0x13   : > { %3695 = dma.done.wait (%p3562_p2), [#allocation4], 12288  }
  0x14   : > { %3697 = vsyncadd (%p3562_p2), [#allocation4], 4294955008 }
  0x15   : > { %3699 = dma.done.wait (%p3562_p2), [#allocation6], 2048  }
  0x16   : > { %3701 = vsyncadd (%p3562_p2), [#allocation6], 4294965248  ;;  %v2814_v1 = vld [vmem:[#allocation3 + $0x150] sm:$0xf]  ;;  %v3424_v2 = vld [vmem:[#allocation3 + $0x164] sm:$0xf0] }
  0x17   : > { %v3421_v3 = vld [vmem:[#allocation3 + $0x154] sm:$0xf]  ;;  %v2815_v4 = vor.u32 %v3424_v2, %v2814_v1  ;;  %v2816_v5 = vld [vmem:[#allocation3 + $0x168] sm:$0xf0]  ;;  %v2790_v6 = vld [vmem:[#allocation3 + $0x120] sm:$0xf] }
  0x18   : > { %v3418_v7 = vld [vmem:[#allocation3 + $0x134] sm:$0xf0]  ;;  %v2819_v8 = vor.u32 %v3421_v3, %v2816_v5  ;;  %v3415_v9 = vld [vmem:[#allocation3 + $0x124] sm:$0xf]  ;;  %v2792_v10 = vld [vmem:[#allocation3 + $0x138] sm:$0xf0] }
  0x19   : > { %964 = vmatpush.bf16.msra.mxu0 %v2815_v4  ;;  %v2791_v11 = vor.u32 %v3418_v7, %v2790_v6  ;;  %v2795_v12 = vor.u32 %v3415_v9, %v2792_v10  ;;  %v2766_v13 = vld [vmem:[#allocation3 + $0xf0] sm:$0xf]  ;;  %v3412_v14 = vld [vmem:[#allocation3 + $0x104] sm:$0xf0]  ;;  %v3409_v15 = vld [vmem:[#allocation3 + $0xf4] sm:$0xf] }
  0x1a   : > { %977 = vmatpush.bf16.msra.mxu1 %v2819_v8  ;;  %v2768_v16 = vld [vmem:[#allocation3 + $0x108] sm:$0xf0]  ;;  %v2767_v17 = vor.u32 %v3412_v14, %v2766_v13  ;;  %v2742_v18 = vld [vmem:[#allocation3 + $0xc0] sm:$0xf]  ;;  %v3406_v20 = vld [vmem:[#allocation3 + $0xd4] sm:$0xf0] }
  0x1b   : > { %v2771_v19 = vor.u32 %v3409_v15, %v2768_v16  ;;  %v3422_v21 = vld [vmem:[#allocation3 + $0x15c] sm:$0xf]  ;;  %v2824_v22 = vld [vmem:[#allocation3 + $0x170] sm:$0xf0]  ;;  %v3403_v23 = vld [vmem:[#allocation3 + $0xc4] sm:$0xf]  ;;  %v2743_v28 = vor.u32 %v3406_v20, %v2742_v18 }
  0x1c   : > { %v2744_v24 = vld [vmem:[#allocation3 + $0xd8] sm:$0xf0]  ;;  %v2827_v25 = vor.u32 %v3422_v21, %v2824_v22  ;;  %v3416_v26 = vld [vmem:[#allocation3 + $0x12c] sm:$0xf]  ;;  %v2800_v27 = vld [vmem:[#allocation3 + $0x140] sm:$0xf0] }
  0x1d   : > { %965 = vmatpush.bf16.msra.mxu0 %v2791_v11  ;;  %p610_p6 = scmp.lt.s32.totalorder %s3820_s1, 1  ;;  %v2803_v29 = vor.u32 %v3416_v26, %v2800_v27  ;;  %v2747_v30 = vor.u32 %v3403_v23, %v2744_v24  ;;  %v2718_v31 = vld [vmem:[#allocation3 + $0x90] sm:$0xf]  ;;  %v3400_v32 = vld [vmem:[#allocation3 + $0xa4] sm:$0xf0]  ;;  %s4181_s20 = sld [smem:[#allocation9_spill]] }
  0x1e   : > { %978 = vmatpush.bf16.msra.mxu1 %v2795_v12  ;;  %1003 = vmatpush.bf16.msra.mxu3 %v2827_v25  ;;  %v3410_v33 = vld [vmem:[#allocation3 + $0xfc] sm:$0xf]  ;;  %v3397_v34 = vld [vmem:[#allocation3 + $0x94] sm:$0xf]  ;;  %v2720_v35 = vld [vmem:[#allocation3 + $0xa8] sm:$0xf0]  ;;  %v2719_v37 = vor.u32 %v3400_v32, %v2718_v31 }
  0x1f   : > { %v2776_v36 = vld [vmem:[#allocation3 + $0x110] sm:$0xf0]  ;;  %s4185_s1 = smov (!%p610_p6, %s3820_s1), 1  ;;  %v2694_v38 = vld [vmem:[#allocation3 + $0x60] sm:$0xf]  ;;  %v2723_v40 = vor.u32 %v3397_v34, %v2720_v35  ;;  %vm1090_vm0 = vcmask 1043456  }
  0x20   : > { %v2779_v39 = vor.u32 %v3410_v33, %v2776_v36  ;;  %v3394_v41 = vld [vmem:[#allocation3 + $0x74] sm:$0xf0]  ;;  %v3404_v42 = vld [vmem:[#allocation3 + $0xcc] sm:$0xf]  ;;  %v2752_v43 = vld [vmem:[#allocation3 + $0xe0] sm:$0xf0] }
  0x21   : > { %966 = vmatpush.bf16.msra.mxu0 %v2767_v17  ;;  %v3391_v44 = vld [vmem:[#allocation3 + $0x64] sm:$0xf]  ;;  %v2696_v45 = vld [vmem:[#allocation3 + $0x78] sm:$0xf0]  ;;  %s2642_s0 = sshll.u32 %s4185_s1, 3  ;;  %v2695_v46 = vor.u32 %v3394_v41, %v2694_v38  ;;  %v2755_v50 = vor.u32 %v3404_v42, %v2752_v43  ;;  %s4182_s25 = sld [smem:[#allocation10_spill]] }
  0x22   : > { %979 = vmatpush.bf16.msra.mxu1 %v2771_v19  ;;  %1004 = vmatpush.bf16.msra.mxu3 %v2803_v29  ;;  %v2670_v47 = vld [vmem:[#allocation3 + $0x30] sm:$0xf]  ;;  %v3388_v48 = vld [vmem:[#allocation3 + $0x44] sm:$0xf0]  ;;  %v3385_v49 = vld [vmem:[#allocation3 + $0x34] sm:$0xf]  ;;  %v2699_v51 = vor.u32 %v3391_v44, %v2696_v45  ;;  %s620_s30 = scalar_lea.vmem %s4176_s18, %s2642_s0 }
  0x23   : > { %v2672_v52 = vld [vmem:[#allocation3 + $0x48] sm:$0xf0]  ;;  %v3398_v53 = vld [vmem:[#allocation3 + $0x9c] sm:$0xf]  ;;  %v2728_v54 = vld [vmem:[#allocation3 + $0xb0] sm:$0xf0]  ;;  %v2671_v57 = vor.u32 %v3388_v48, %v2670_v47  ;;  %s613_s21 = scalar_lea.vmem %s4181_s20, %s2642_s0 }
  0x24   : > { %v2646_v55 = vld [vmem:[#allocation3] sm:$0xf]  ;;  %v3382_v56 = vld [vmem:[#allocation3 + $0x14] sm:$0xf0]  ;;  %v3379_v58 = vld [vmem:[#allocation3 + $0x4] sm:$0xf]  ;;  %v2731_v62 = vor.u32 %v3398_v53, %v2728_v54  ;;  %v2675_v63 = vor.u32 %v3385_v49, %v2672_v52 }
  0x25   : > { %967 = vmatpush.bf16.msra.mxu0 %v2743_v28  ;;  %v2648_v59 = vld [vmem:[#allocation3 + $0x18] sm:$0xf0]  ;;  %v2830_v60 = vld [vmem:[#allocation3 + $0x160] sm:$0xf]  ;;  %v3426_v61 = vld [vmem:[#allocation3 + $0x174] sm:$0xf0]  ;;  %v2647_v2 = vor.u32 %v3382_v56, %v2646_v55 }
  0x26   : > { %980 = vmatpush.bf16.msra.mxu1 %v2747_v30  ;;  %1005 = vmatpush.bf16.msra.mxu3 %v2779_v39  ;;  %v3392_v0 = vld [vmem:[#allocation3 + $0x6c] sm:$0xf]  ;;  %v2704_v1 = vld [vmem:[#allocation3 + $0x80] sm:$0xf0]  ;;  %v2651_v4 = vor.u32 %v3379_v58, %v2648_v59  ;;  %v2831_v5 = vor.u32 %v3426_v61, %v2830_v60  ;;  %v3386_v7 = vld [vmem:[#allocation3 + $0x3c] sm:$0xf] }
  0x27   : > { %v2707_v3 = vor.u32 %v3392_v0, %v2704_v1  ;;  %v3856_v6 = vld [vmem:[%s613_s21] sm:$0xff]  ;;  %v2680_v8 = vld [vmem:[#allocation3 + $0x50] sm:$0xf0]  ;;  %v2806_v9 = vld [vmem:[#allocation3 + $0x130] sm:$0xf]  ;;  %s616_s26 = scalar_lea.vmem %s4182_s25, %s4185_s1  ;;  %vm1061_vm1 = vcmask 64512  }
  0x28   : > { %v3420_v10 = vld [vmem:[#allocation3 + $0x144] sm:$0xf0]  ;;  %v3860_v11 = vpack.c.bf16 %v3856_v6, %v3856_v6  ;;  %v2683_v12 = vor.u32 %v3386_v7, %v2680_v8  ;;  %v2822_v13 = vld [vmem:[#allocation3 + $0x158] sm:$0xf]  ;;  %v3425_v14 = vld [vmem:[#allocation3 + $0x16c] sm:$0xf0] }
  0x29   : > { %968 = vmatpush.bf16.msra.mxu0 %v2719_v37  ;;  %v2798_v15 = vld [vmem:[#allocation3 + $0x128] sm:$0xf]  ;;  %v2807_v16 = vor.u32 %v3420_v10, %v2806_v9  ;;  %v3380_v17 = vld [vmem:[#allocation3 + $0xc] sm:$0xf]  ;;  %v2656_v18 = vld [vmem:[#allocation3 + $0x20] sm:$0xf0]  ;;  %v2823_v19 = vor.u32 %v3425_v14, %v2822_v13 }
  0x2a   : > { %981 = vmatpush.bf16.msra.mxu1 %v2723_v40  ;;  %1006 = vmatpush.bf16.msra.mxu3 %v2755_v50  ;;  %v3419_v20 = vld [vmem:[#allocation3 + $0x13c] sm:$0xf0]  ;;  %v3414_v22 = vld [vmem:[#allocation3 + $0x114] sm:$0xf0]  ;;  %v2659_v24 = vor.u32 %v3380_v17, %v2656_v18  ;;  %v3413_v26 = vld [vmem:[#allocation3 + $0x10c] sm:$0xf0] }
  0x2b   : > { %v2782_v21 = vld [vmem:[#allocation3 + $0x100] sm:$0xf]  ;;  %990 = vmatpush.bf16.msra.mxu2 %v2823_v19  ;;  %v2799_v23 = vor.u32 %v3419_v20, %v2798_v15  ;;  %v2774_v25 = vld [vmem:[#allocation3 + $0xf8] sm:$0xf]  ;;  %v2758_v28 = vld [vmem:[#allocation3 + $0xd0] sm:$0xf] }
  0x2c   : > { %v2783_v27 = vor.u32 %v3414_v22, %v2782_v21  ;;  %v3408_v29 = vld [vmem:[#allocation3 + $0xe4] sm:$0xf0]  ;;  %v2775_v30 = vor.u32 %v3413_v26, %v2774_v25  ;;  %v3407_v32 = vld [vmem:[#allocation3 + $0xdc] sm:$0xf0]  ;;  %v3402_v35 = vld [vmem:[#allocation3 + $0xb4] sm:$0xf0] }
  0x2d   : > { %969 = vmatpush.bf16.msra.mxu0 %v2695_v46  ;;  %v2750_v31 = vld [vmem:[#allocation3 + $0xc8] sm:$0xf]  ;;  %v2759_v33 = vor.u32 %v3408_v29, %v2758_v28  ;;  %v2734_v34 = vld [vmem:[#allocation3 + $0xa0] sm:$0xf]  ;;  %v2726_v37 = vld [vmem:[#allocation3 + $0x98] sm:$0xf] }
  0x2e   : > { %982 = vmatpush.bf16.msra.mxu1 %v2699_v51  ;;  %1007 = vmatpush.bf16.msra.mxu3 %v2731_v62  ;;  %v2751_v36 = vor.u32 %v3407_v32, %v2750_v31  ;;  %v3401_v38 = vld [vmem:[#allocation3 + $0xac] sm:$0xf0]  ;;  %v2735_v39 = vor.u32 %v3402_v35, %v2734_v34  ;;  %v3396_v41 = vld [vmem:[#allocation3 + $0x84] sm:$0xf0]  ;;  %v3395_v44 = vld [vmem:[#allocation3 + $0x7c] sm:$0xf0] }
  0x2f   : > { %991 = vmatpush.bf16.msra.mxu2 %v2799_v23  ;;  %v2710_v40 = vld [vmem:[#allocation3 + $0x70] sm:$0xf]  ;;  %v2727_v42 = vor.u32 %v3401_v38, %v2726_v37  ;;  %v2702_v43 = vld [vmem:[#allocation3 + $0x68] sm:$0xf]  ;;  %v2686_v46 = vld [vmem:[#allocation3 + $0x40] sm:$0xf] }
  0x30   : > { %v2711_v45 = vor.u32 %v3396_v41, %v2710_v40  ;;  %v3390_v47 = vld [vmem:[#allocation3 + $0x54] sm:$0xf0]  ;;  %v2703_v48 = vor.u32 %v3395_v44, %v2702_v43  ;;  %v3389_v50 = vld [vmem:[#allocation3 + $0x4c] sm:$0xf0]  ;;  %v3384_v53 = vld [vmem:[#allocation3 + $0x24] sm:$0xf0] }
  0x31   : > { %970 = vmatpush.bf16.msra.mxu0 %v2671_v57  ;;  %v2678_v49 = vld [vmem:[#allocation3 + $0x38] sm:$0xf]  ;;  %v2687_v51 = vor.u32 %v3390_v47, %v2686_v46  ;;  %v2662_v52 = vld [vmem:[#allocation3 + $0x10] sm:$0xf]  ;;  %v2654_v55 = vld [vmem:[#allocation3 + $0x8] sm:$0xf] }
  0x32   : > { %983 = vmatpush.bf16.msra.mxu1 %v2675_v63  ;;  %1008 = vmatpush.bf16.msra.mxu3 %v2707_v3  ;;  %v2679_v54 = vor.u32 %v3389_v50, %v2678_v49  ;;  %v3383_v56 = vld [vmem:[#allocation3 + $0x1c] sm:$0xf0]  ;;  %v2663_v57 = vor.u32 %v3384_v53, %v2662_v52  ;;  %v2832_v37 = vld [vmem:[#allocation3 + $0x178] sm:$0xf0]  ;;  %v2808_v40 = vld [vmem:[#allocation3 + $0x148] sm:$0xf0] }
  0x33   : > { %992 = vmatpush.bf16.msra.mxu2 %v2775_v30  ;;  %v2655_v58 = vor.u32 %v3383_v56, %v2654_v55  ;;  %v3870_v59 = vld [vmem:[%s4163_s5] sm:$0x3f]  ;;  %v2760_v46 = vld [vmem:[#allocation3 + $0xe8] sm:$0xf0]  ;;  %s4183_s2 = sld [smem:[#allocation11_spill]] }
  0x34   : > { %v713_v60 = vperm.slane %v3870_v59, 1  ;;  %v712_v63 = vperm.slane %v3870_v59, 0  ;;  %v716_v9 = vperm.slane %v3870_v59, 4  ;;  %v715_v10 = vperm.slane %v3870_v59, 3  ;;  %v2784_v43 = vld [vmem:[#allocation3 + $0x118] sm:$0xf0] }
  0x35   : > { %971 = vmatpush.bf16.msra.mxu0 %v2647_v2  ;;  %v714_v20 = vperm.slane %v3870_v59, 2  ;;  %v2736_v49 = vld [vmem:[#allocation3 + $0xb8] sm:$0xf0]  ;;  %v2712_v52 = vld [vmem:[#allocation3 + $0x88] sm:$0xf0] }
  0x36   : > { %984 = vmatpush.bf16.msra.mxu1 %v2651_v4  ;;  %1009 = vmatpush.bf16.msra.mxu3 %v2683_v12  ;;  %v2688_v55 = vld [vmem:[#allocation3 + $0x58] sm:$0xf0] }
  0x37   : > { %993 = vmatpush.bf16.msra.mxu2 %v2751_v36  ;;  %v3423_v36 = vld [vmem:[#allocation3 + $0x164] sm:$0xf] }
  0x38   : > { %972 = vmatmul.bf16.vlgmr.msra.gmra.mxu0 %v3860_v11  ;;  %v2835_v38 = vor.u32 %v3423_v36, %v2832_v37 }
  0x39   : > { %1016 = vmatpush.bf16.msrb.mxu0 %v2831_v5  ;;  %985 = vmatmul.bf16.vlgmr.msra.gmra.mxu1 %v3860_v11 }
  0x3a   : > { %1010 = vmatpush.bf16.msra.mxu3 %v2659_v24  ;;  %v623_v24 = vld [vmem:[%s616_s26] sm:$0x1]  ;;  %1029 = vmatpush.bf16.msrb.mxu1 %v2835_v38 }
  0x3b   : > { %994 = vmatpush.bf16.msra.mxu2 %v2727_v42  ;;  %v624_v25 = vsub.f32 1.0, %v623_v24  ;;  %v3411_v42 = vld [vmem:[#allocation3 + $0x104] sm:$0xf] }
  0x3c   : > { %v2787_v44 = vor.u32 %v3411_v42, %v2784_v43 }
  0x3d   : > { %1017 = vmatpush.bf16.msrb.mxu0 %v2807_v16  ;;  %1011 = vmatmul.bf16.vlgmr.msra.gmra.mxu3 %v3860_v11  ;;  %v625_v26 = vmul.f32 -1e+18, %v624_v25 }
  0x3f   : > { %995 = vmatpush.bf16.msra.mxu2 %v2703_v48  ;;  %v3399_v48 = vld [vmem:[#allocation3 + $0xa4] sm:$0xf] }
  0x40   : > { %v2739_v50 = vor.u32 %v3399_v48, %v2736_v49  ;;  %v3442_v48 = vld [vmem:[%s4164_s6 + $0x78] sm:$0xff]  ;;  %v3441_v49 = vld [vmem:[%s4164_s6 + $0x70] sm:$0xff] }
  0x41   : > { %1018 = vmatpush.bf16.msrb.mxu0 %v2783_v27  ;;  %v3882_v27 = vperm.slane %v625_v26, 0 }
  0x43   : > { %996 = vmatpush.bf16.msra.mxu2 %v2679_v54  ;;  %v3387_v54 = vld [vmem:[#allocation3 + $0x44] sm:$0xf] }
  0x44   : > { %v2691_v56 = vor.u32 %v3387_v54, %v2688_v55  ;;  %v3436_v54 = vld [vmem:[%s4164_s6 + $0x48] sm:$0xff]  ;;  %v3435_v55 = vld [vmem:[%s4164_s6 + $0x40] sm:$0xff] }
  0x45   : > { %1019 = vmatpush.bf16.msrb.mxu0 %v2759_v33 }
  0x47   : > { %997 = vmatpush.bf16.msra.mxu2 %v2655_v58  ;;  %v2664_v58 = vld [vmem:[#allocation3 + $0x28] sm:$0xf0] }
  0x49   : > { %1020 = vmatpush.bf16.msrb.mxu0 %v2735_v39  ;;  %v3417_v39 = vld [vmem:[#allocation3 + $0x134] sm:$0xf] }
  0x4a   : > { %998 = vmatmul.bf16.vlgmr.msra.gmra.mxu2 %v3860_v11  ;;  %v2811_v41 = vor.u32 %v3417_v39, %v2808_v40  ;;  %v3428_v40 = vld [vmem:[%s4164_s6 + $0x8] sm:$0xff] }
  0x4c   : > { %1030 = vmatpush.bf16.msrb.mxu1 %v2811_v41 }
  0x4d   : > { %1021 = vmatpush.bf16.msrb.mxu0 %v2711_v45  ;;  %v3405_v45 = vld [vmem:[#allocation3 + $0xd4] sm:$0xf] }
  0x4e   : > { %v2763_v47 = vor.u32 %v3405_v45, %v2760_v46 }
  0x50   : > { %1031 = vmatpush.bf16.msrb.mxu1 %v2787_v44 }
  0x51   : > { %1022 = vmatpush.bf16.msrb.mxu0 %v2687_v51  ;;  %v3393_v51 = vld [vmem:[#allocation3 + $0x74] sm:$0xf] }
  0x52   : > { %v2715_v53 = vor.u32 %v3393_v51, %v2712_v52  ;;  %v3439_v51 = vld [vmem:[%s4164_s6 + $0x60] sm:$0xff]  ;;  %v3438_v52 = vld [vmem:[%s4164_s6 + $0x58] sm:$0xff] }
  0x54   : > { %1032 = vmatpush.bf16.msrb.mxu1 %v2763_v47  ;;  %v3427_v47 = vld [vmem:[%s4164_s6] sm:$0xff] }
  0x55   : > { %1023 = vmatpush.bf16.msrb.mxu0 %v2663_v57  ;;  %v3381_v57 = vld [vmem:[#allocation3 + $0x14] sm:$0xf] }
  0x58   : > { %1024 = vmatmul.bf16.vlgmr.msrb.gmra.mxu0 %v3860_v11  ;;  %1033 = vmatpush.bf16.msrb.mxu1 %v2739_v50  ;;  %v3440_v50 = vld [vmem:[%s4164_s6 + $0x68] sm:$0xff] }
  0x59   : > { %1217 = vmatpush.bf16.msra.mxu0 %v3442_v48 }
  0x5c   : > { %1034 = vmatpush.bf16.msrb.mxu1 %v2715_v53  ;;  %v3437_v53 = vld [vmem:[%s4164_s6 + $0x50] sm:$0xff] }
  0x5d   : > { %1218 = vmatpush.bf16.msra.mxu0 %v3441_v49 }
  0x60   : > { %1035 = vmatpush.bf16.msrb.mxu1 %v2691_v56 }
  0x61   : > { %1219 = vmatpush.bf16.msra.mxu0 %v3440_v50 }
  0x65   : > { %1220 = vmatpush.bf16.msra.mxu0 %v3439_v51 }
  0x69   : > { %1221 = vmatpush.bf16.msra.mxu0 %v3438_v52 }
  0x6d   : > { %1222 = vmatpush.bf16.msra.mxu0 %v3437_v53 }
  0x71   : > { %1223 = vmatpush.bf16.msra.mxu0 %v3436_v54 }
  0x75   : > { %1224 = vmatpush.bf16.msra.mxu0 %v3435_v55 }
  0xb5   : > { %v973_v61 = vpop.f32.mrf.mxu0 }
  0xb6   : > { %v986_v62 = vpop.f32.mrf.mxu1  ;;  %v974_v2 = vadd.f32 %v973_v61, %v712_v63  ;;  %v2667_v61 = vor.u32 %v3381_v57, %v2664_v58 }
  0xb7   : > { %v987_v0 = vadd.f32 %v986_v62, %v713_v60 }
  0xb8   : > { %v1042_v4 = vpack.c.bf16 %v974_v2, %v974_v2  ;;  %1036 = vmatpush.bf16.msrb.mxu1 %v2667_v61 }
  0xb9   : > { %v1043_v1 = vpack.c.bf16 %v987_v0, %v987_v0 }
  0xbb   : > { %1055 = vmatpush.bf16.xpose.msrb.mxu2 %v1043_v1  ;;  %1037 = vmatmul.bf16.vlgmr.msrb.gmra.mxu1 %v3860_v11 }
  0xbd   : > { %v975_v3 = vpop.f32.mrf.mxu0 }
  0xbe   : > { %v988_v5 = vpop.f32.mrf.mxu1 }
  0xc0   : > { %v1012_v7 = vpop.f32.mrf.mxu3 }
  0xc1   : > { %v1013_v15 = vadd.f32 %v1012_v7, %v715_v10 }
  0xc2   : > { %1056 = vmatmul.bf16.vlgmr.msrb.gmra.mxu2 %v1042_v4 }
  0xc3   : > { %v1108_v16 = vpack.c.bf16 %v1013_v15, %v1013_v15 }
  0xc8   : > { %v1014_v8 = vpop.f32.mrf.mxu3 }
  0xcd   : > { %v999_v18 = vpop.f32.mrf.mxu2 }
  0xce   : > { %v1000_v21 = vadd.f32 %v999_v18, %v714_v20 }
  0xd0   : > { %v1044_v22 = vpack.c.bf16 %v1000_v21, %v1000_v21 }
  0xd2   : > { %v1092_v23 = vsel %vm1090_vm0, %v1044_v22, 0 }
  0xd3   : > { %1101 = vmatpush.bf16.msrb.mxu3 %v1092_v23 }
  0xd5   : > { %v1025_v12 = vpop.f32.mrf.mxu0  ;;  %v1001_v19 = vpop.f32.mrf.mxu2 }
  0xd6   : > { %v1026_v13 = vadd.f32 %v1025_v12, %v716_v9 }
  0xd8   : > { %v1109_v14 = vpack.c.bf16 %v1026_v13, %v1026_v13  ;;  %v717_v13 = vperm.slane %v3870_v59, 5  ;;  %v3434_v59 = vld [vmem:[%s4164_s6 + $0x38] sm:$0xff] }
  0xd9   : > { %1278 = vmatpush.bf16.msra.mxu1 %v3434_v59 }
  0xda   : > { %1118 = vmatpush.bf16.xpose.msra.mxu2 %v1109_v14 }
  0xdd   : > { %v1027_v17 = vpop.f32.mrf.mxu0 }
  0xe1   : > { %1119 = vmatmul.bf16.vlgmr.msra.gmra.mxu2 %v1108_v16 }
 0x138   : > { %v1038_v9 = vpop.f32.mrf.mxu1 }
 0x139   : > { %v1039_v16 = vadd.f32 %v1038_v9, %v717_v13  ;;  %v626_v9 = vlaneseq }
 0x13b   : > { %v1110_v19 = vpack.c.bf16 %v1039_v16, %v1039_v16  ;;  %v3448_v16 = vld [vmem:[%s4168_s10 + $0x28] sm:$0xff] }
 0x13d   : > { %v1153_v22 = vsel %vm1090_vm0, %v1110_v19, 0  ;;  %v3445_v19 = vld [vmem:[%s4168_s10 + $0x10] sm:$0xff] }
 0x13e   : > { %1162 = vmatpush.bf16.msra.mxu3 %v1153_v22  ;;  %v3458_v22 = vld [vmem:[#allocation5 + $0x38] sm:$0xff] }
 0x140   : > { %v1040_v14 = vpop.f32.mrf.mxu1 }
 0x145   : > { %v1057_v28 = vpop.f32.mrf.mxu2 }
 0x146   : > { %v1058_v29 = vadd.f32 %v1057_v28, %v3882_v27  ;;  %v3433_v28 = vld [vmem:[%s4164_s6 + $0x30] sm:$0xff] }
 0x147   : > { %1279 = vmatpush.bf16.msra.mxu1 %v3433_v28 }
 0x148   : > { %v1062_v30 = vsel %vm1061_vm1, %v1058_v29, -inf }
 0x149   : > { %1063 = vmax.xlane.f32.xlu0 %v1062_v30 }
 0x14d   : > { %v1059_v31 = vpop.f32.mrf.mxu2 }
 0x14e   : > { %v3431_v31 = vld [vmem:[%s4164_s6 + $0x20] sm:$0xff] }
 0x164   : > { %v1120_v32 = vpop.f32.mrf.mxu2 }
 0x165   : > { %v1121_v33 = vadd.f32 %v1120_v32, %v3882_v27  ;;  %v3430_v32 = vld [vmem:[%s4164_s6 + $0x18] sm:$0xff] }
 0x167   : > { %v1124_v34 = vsel %vm1061_vm1, %v1121_v33, -inf }
 0x168   : > { %1125 = vmax.xlane.f32.xlu0 %v1124_v34 }
 0x16c   : > { %v1122_v35 = vpop.f32.mrf.mxu2 }
 0x16d   : > { %v3429_v35 = vld [vmem:[%s4164_s6 + $0x10] sm:$0xff] }
 0x1bc   : > { %v1064_v60 = vpop.xlane.xlu0 %1063 }
 0x1bd   : > { %v1065_v62 = vsub.f32 %v1058_v29, %v1064_v60  ;;  %v3432_v29 = vld [vmem:[%s4164_s6 + $0x28] sm:$0xff] }
 0x1be   : > { %1280 = vmatpush.bf16.msra.mxu1 %v3432_v29 }
 0x1bf   : > { %v1066_v63 = vmul.f32 1.442695, %v1065_v62 }
 0x1c1   : > { %3598 = vpow2.f32 %v1066_v63 }
 0x1c2   : > { %1281 = vmatpush.bf16.msra.mxu1 %v3431_v31 }
 0x1c6   : > { %1282 = vmatpush.bf16.msra.mxu1 %v3430_v32  ;;  %v3584_v32 = vld [vmem:[%s4166_s8] ss:$0 sm:$0xff] }
 0x1c7   : > { %v3599_v0 = vpop.eup %3598 }
 0x1c8   : > { %v1068_v1 = vsel %vm1061_vm1, %v3599_v0, 0.0 }
 0x1c9   : > { %1069 = vadd.xlane.f32.xlu1 %v1068_v1  ;;  %v3583_v1 = vld [vmem:[%s4165_s7] ss:$0 sm:$0xff] }
 0x1ca   : > { %1283 = vmatpush.bf16.msra.mxu1 %v3429_v35  ;;  %v3585_v35 = vld [vmem:[%s4167_s9] ss:$0 sm:$0xff] }
 0x1ce   : > { %1284 = vmatpush.bf16.msra.mxu1 %v3428_v40  ;;  %v3456_v40 = vld [vmem:[#allocation5 + $0x28] sm:$0xff] }
 0x1d2   : > { %1285 = vmatpush.bf16.msra.mxu1 %v3427_v47 }
 0x1db   : > { %v1126_v2 = vpop.xlane.xlu0 %1125 }
 0x1dc   : > { %v1127_v3 = vsub.f32 %v1121_v33, %v1126_v2 }
 0x1de   : > { %v1128_v4 = vmul.f32 1.442695, %v1127_v3 }
 0x1e0   : > { %3600 = vpow2.f32 %v1128_v4 }
 0x1e6   : > { %v3601_v5 = vpop.eup %3600 }
 0x1e7   : > { %v1130_v7 = vsel %vm1061_vm1, %v3601_v5, 0.0 }
 0x1e8   : > { %1131 = vadd.xlane.f32.xlu1 %v1130_v7 }
 0x23c   : > { %v1070_v8 = vpop.xlane.xlu1 %1069 }
 0x23d   : > { %3602 = vrcp.f32 %v1070_v8  ;;  %v1082_v15 = vand.u32 2147483648, %v1070_v8  ;;  %v1080_v18 = vand.u32 2147483647, %v1070_v8  ;;  %vm1076_vm3 = vweird.f32 %v1070_v8 }
 0x23f   : > { %v1083_v21 = vor.u32 1.1754944e-38, %v1082_v15  ;;  %vm1081_vm5 = vcmp.eq.f32.partialorder %v1080_v18, 8.507059e+37  ;;  %v3449_v15 = vld [vmem:[%s4168_s10 + $0x30] sm:$0xff]  ;;  %v3446_v18 = vld [vmem:[%s4168_s10 + $0x18] sm:$0xff] }
 0x243   : > { %v3603_v10 = vpop.eup %3602 }
 0x244   : > { %v1072_v12 = vmul.f32 %v3603_v10, %v1070_v8  ;;  %vm1077_vm2 = vweird.f32 %v3603_v10  ;;  %v3450_v8 = vld [vmem:[%s4168_s10 + $0x38] sm:$0xff] }
 0x245   : > { %vm1078_vm4 = vmor %vm1076_vm3, %vm1077_vm2  ;;  %1397 = vmatpush.bf16.msrb.mxu2 %v3450_v8  ;;  %v3173_v8 = vld [vmem:[#allocation3 + $0x2e8] sm:$0xf0] }
 0x246   : > { %v1073_v11 = vsub.f32 1.0, %v1072_v12 }
 0x248   : > { %v1074_v17 = vmul.f32 %v3603_v10, %v1073_v11 }
 0x249   : > { %1398 = vmatpush.bf16.msrb.mxu2 %v3449_v15 }
 0x24a   : > { %v1075_v20 = vadd.f32 %v3603_v10, %v1074_v17  ;;  %v3447_v17 = vld [vmem:[%s4168_s10 + $0x20] sm:$0xff] }
 0x24c   : > { %v1079_v23 = vsel %vm1078_vm4, %v3603_v10, %v1075_v20  ;;  %v3953_v10 = vand.u32 127, %v626_v9  ;;  %v3444_v20 = vld [vmem:[%s4168_s10 + $0x8] sm:$0xff]  ;;  %v3147_v9 = vld [vmem:[#allocation3 + $0x2a0] sm:$0xf] }
 0x24d   : > { %v1084_v24 = vsel %vm1081_vm5, %v1083_v21, %v1079_v23  ;;  %1399 = vmatpush.bf16.msrb.mxu2 %v3448_v16  ;;  %v3443_v21 = vld [vmem:[%s4168_s10] sm:$0xff]  ;;  %v3123_v16 = vld [vmem:[#allocation3 + $0x270] sm:$0xf] }
 0x24e   : > { %v1085_v25 = vmul.f32 %v3599_v0, %v1084_v24  ;;  %vm628_vm10 = vcmp.lt.s32.totalorder %v3953_v10, 32  ;;  %v3542_v10 = vld [vmem:[%s4174_s16 + $0x18] sm:$0xff] }
 0x250   : > { %v1086_v26 = vpack.c.bf16 %v1085_v25, %v1085_v25 }
 0x251   : > { %1400 = vmatpush.bf16.msrb.mxu2 %v3447_v17  ;;  %v3489_v17 = vld [vmem:[#allocation3 + $0x274] sm:$0xf] }
 0x252   : > { %2836 = vmatmul.msk.bf16.vlgmr.msrb.gmra.mxu3 %vm1061_vm1, %v1086_v26 }
 0x253   : > { %1488 = vmatpush.bf16.msrb.mxu3 %v3458_v22  ;;  %v3502_v22 = vld [vmem:[#allocation3 + $0x2dc] sm:$0xf] }
 0x255   : > { %1401 = vmatpush.bf16.msrb.mxu2 %v3446_v18  ;;  %v3125_v18 = vld [vmem:[#allocation3 + $0x288] sm:$0xf0] }
 0x259   : > { %1402 = vmatpush.bf16.msrb.mxu2 %v3445_v19  ;;  %v3179_v19 = vld [vmem:[#allocation3 + $0x2d8] sm:$0xf] }
 0x25b   : > { %v1132_v30 = vpop.xlane.xlu1 %1131 }
 0x25c   : > { %3604 = vrcp.f32 %v1132_v30  ;;  %v1144_v37 = vand.u32 2147483648, %v1132_v30  ;;  %v1142_v39 = vand.u32 2147483647, %v1132_v30  ;;  %vm1138_vm7 = vweird.f32 %v1132_v30 }
 0x25d   : > { %1403 = vmatpush.bf16.msrb.mxu2 %v3444_v20  ;;  %v3505_v20 = vld [vmem:[#allocation3 + $0x2ec] sm:$0xf0] }
 0x25e   : > { %v1145_v42 = vor.u32 1.1754944e-38, %v1144_v37  ;;  %vm1143_vm9 = vcmp.eq.f32.partialorder %v1142_v39, 8.507059e+37  ;;  %v3457_v39 = vld [vmem:[#allocation5 + $0x30] sm:$0xff] }
 0x25f   : > { %1489 = vmatpush.bf16.msrb.mxu3 %v3457_v39  ;;  %v3480_v39 = vld [vmem:[#allocation3 + $0x224] sm:$0xf0] }
 0x261   : > { %1404 = vmatpush.bf16.msrb.mxu2 %v3443_v21  ;;  %v3180_v21 = vor.u32 %v3505_v20, %v3179_v19  ;;  %v3481_v19 = vld [vmem:[#allocation3 + $0x22c] sm:$0xf0] }
 0x262   : > { %v3605_v33 = vpop.eup %3604 }
 0x263   : > { %v1134_v34 = vmul.f32 %v3605_v33, %v1132_v30  ;;  %vm1139_vm6 = vweird.f32 %v3605_v33  ;;  %1490 = vmatpush.bf16.msrb.mxu3 %v3456_v40  ;;  %v3477_v40 = vld [vmem:[#allocation3 + $0x214] sm:$0xf] }
 0x264   : > { %vm1140_vm8 = vmor %vm1138_vm7, %vm1139_vm6 }
 0x265   : > { %v1135_v36 = vsub.f32 1.0, %v1134_v34  ;;  %1899 = vmatpush.bf16.msra.mxu2 %v3180_v21 }
 0x267   : > { %v1136_v38 = vmul.f32 %v3605_v33, %v1135_v36 }
 0x269   : > { %v1137_v41 = vadd.f32 %v3605_v33, %v1136_v38 }
 0x26b   : > { %v1141_v43 = vsel %vm1140_vm8, %v3605_v33, %v1137_v41  ;;  %v3455_v41 = vld [vmem:[#allocation5 + $0x20] sm:$0xff] }
 0x26c   : > { %v1146_v44 = vsel %vm1143_vm9, %v1145_v42, %v1141_v43  ;;  %1491 = vmatpush.bf16.msrb.mxu3 %v3455_v41  ;;  %v3454_v42 = vld [vmem:[#allocation5 + $0x18] sm:$0xff]  ;;  %v3453_v43 = vld [vmem:[#allocation5 + $0x10] sm:$0xff] }
 0x26d   : > { %v1147_v45 = vmul.f32 %v3601_v5, %v1146_v44  ;;  %v3452_v44 = vld [vmem:[#allocation5 + $0x8] sm:$0xff] }
 0x26f   : > { %v1148_v46 = vpack.c.bf16 %v1147_v45, %v1147_v45  ;;  %v3451_v45 = vld [vmem:[#allocation5] sm:$0xff] }
 0x270   : > { %1492 = vmatpush.bf16.msrb.mxu3 %v3454_v42  ;;  %v3077_v42 = vld [vmem:[#allocation3 + $0x228] sm:$0xf0] }
 0x271   : > { %2837 = vmatmul.msk.bf16.vlgmr.msra.gmra.mxu3 %vm1061_vm1, %v1148_v46  ;;  %v3586_v46 = vld [vmem:[%s4169_s11] ss:$0 sm:$0xff] }
 0x274   : > { %1493 = vmatpush.bf16.msrb.mxu3 %v3453_v43  ;;  %v3155_v43 = vld [vmem:[#allocation3 + $0x2a8] sm:$0xf] }
 0x278   : > { %1494 = vmatpush.bf16.msrb.mxu3 %v3452_v44  ;;  %v3499_v44 = vld [vmem:[#allocation3 + $0x2bc] sm:$0xf0] }
 0x27c   : > { %1495 = vmatpush.bf16.msrb.mxu3 %v3451_v45  ;;  %v3080_v45 = vor.u32 %v3477_v40, %v3077_v42  ;;  %v3165_v42 = vld [vmem:[#allocation3 + $0x2c8] sm:$0xf0] }
 0x2d5   : > { %v1103_v56 = vpop.f32.mrf.mxu3 }
 0x2d6   : > { %v1107_v57 = vpack.c.bf16 %v1103_v56, %v1103_v56 }
 0x2d8   : > { %1286 = vmatmul.bf16.vlgmr.msra.gmra.mxu1 %v1107_v57 }
 0x2dd   : > { %v1105_v58 = vpop.f32.mrf.mxu3 }
 0x2f4   : > { %v1164_v60 = vpop.f32.mrf.mxu3 }
 0x2f5   : > { %v1168_v61 = vpack.c.bf16 %v1164_v60, %v1164_v60 }
 0x2f7   : > { %1225 = vmatmul.bf16.vlgmr.msra.gmra.mxu0 %v1168_v61  ;;  %v3587_v61 = vld [vmem:[%s4171_s13] ss:$0 sm:$0xff] }
 0x2fc   : > { %v1166_v62 = vpop.f32.mrf.mxu3 }
 0x355   : > { %v1287_v63 = vpop.f32.mrf.mxu1 }
 0x35d   : > { %v1289_v0 = vpop.f32.mrf.mxu1 }
 0x374   : > { %v1226_v2 = vpop.f32.mrf.mxu0 }
 0x375   : > { %v1288_v3 = vadd.f32 %v1287_v63, %v1226_v2  ;;  %v3171_v2 = vld [vmem:[#allocation3 + $0x2d0] sm:$0xf] }
 0x377   : > { %v1295_v4 = vadd.f32 %v3583_v1, %v1288_v3  ;;  %v3504_v3 = vld [vmem:[#allocation3 + $0x2e4] sm:$0xf0] }
 0x379   : > { %v3947_v5 = vadd.f32 %v1295_v4, %v3856_v6  ;;  %v3501_v4 = vld [vmem:[#allocation3 + $0x2d4] sm:$0xf] }
 0x37b   : > { %1299 = vadd.xlane.f32.xlu2 %v3947_v5 }
 0x37c   : > { %v1228_v7 = vpop.f32.mrf.mxu0 }
 0x37d   : > { %v3172_v7 = vor.u32 %v3504_v3, %v3171_v2  ;;  %v3465_v2 = vld [vmem:[#allocation3 + $0x1b4] sm:$0xf] }
 0x37f   : > { %1873 = vmatpush.bf16.msrb.mxu0 %v3172_v7  ;;  %v3107_v7 = vld [vmem:[#allocation3 + $0x248] sm:$0xf] }
 0x3ee   : > { %v1300_v12 = vpop.xlane.xlu2 %1299 }
 0x3ef   : > { %v1301_v13 = vmul.f32 0.03125, %v1300_v12  ;;  %v3498_v12 = vld [vmem:[#allocation3 + $0x2b4] sm:$0xf0] }
 0x3f1   : > { %v1302_v11 = vsub.f32 %v3947_v5, %v1301_v13  ;;  %v3176_v13 = vor.u32 %v3501_v4, %v3173_v8  ;;  %v3029_v4 = vld [vmem:[#allocation3 + $0x1c8] sm:$0xf0]  ;;  %v3487_v8 = vld [vmem:[#allocation3 + $0x25c] sm:$0xf0] }
 0x3f3   : > { %v1303_v6 = vsel %vm628_vm10, %v1302_v11, 0.0  ;;  %v3495_v11 = vld [vmem:[#allocation3 + $0x2a4] sm:$0xf]  ;;  %1886 = vmatpush.bf16.msrb.mxu1 %v3176_v13  ;;  %v3484_v13 = vld [vmem:[#allocation3 + $0x24c] sm:$0xf] }
 0x3f4   : > { %v1304_v14 = vmul.f32 %v1303_v6, %v1303_v6 }
 0x3f6   : > { %1305 = vadd.xlane.f32.xlu2 %v1304_v14  ;;  %v3148_v14 = vor.u32 %v3498_v12, %v3147_v9  ;;  %v3032_v9 = vor.u32 %v3465_v2, %v3029_v4  ;;  %v3108_v12 = vor.u32 %v3487_v8, %v3107_v7  ;;  %v3117_v4 = vld [vmem:[#allocation3 + $0x268] sm:$0xf0]  ;;  %v3091_v8 = vld [vmem:[#allocation3 + $0x220] sm:$0xf] }
 0x3f8   : > { %1874 = vmatpush.bf16.msrb.mxu0 %v3148_v14  ;;  %v3003_v14 = vld [vmem:[#allocation3 + $0x180] sm:$0xf] }
 0x469   : > { %v1306_v23 = vpop.xlane.xlu2 %1305 }
 0x46a   : > { %v1307_v24 = vmul.f32 0.03125, %v1306_v23  ;;  %v3181_v23 = vld [vmem:[#allocation3 + $0x2f0] sm:$0xf0] }
 0x46c   : > { %v1308_v25 = vadd.f32 1e-06, %v1307_v24 }
 0x46e   : > { %3606 = vrsqrt.f32 %v1308_v25  ;;  %vm1315_vm12 = vweird.f32 %v1308_v25 }
 0x474   : > { %v3607_v59 = vpop.eup %3606 }
 0x475   : > { %v1310_v26 = vmul.f32 %v3607_v59, %v1308_v25  ;;  %vm1316_vm11 = vweird.f32 %v3607_v59  ;;  %v3184_v25 = vor.u32 %v3502_v22, %v3181_v23  ;;  %v3478_v22 = vld [vmem:[#allocation3 + $0x21c] sm:$0xf]  ;;  %v3085_v23 = vld [vmem:[#allocation3 + $0x230] sm:$0xf0] }
 0x476   : > { %vm1317_vm13 = vmor %vm1315_vm12, %vm1316_vm11 }
 0x477   : > { %v1311_v28 = vmul.f32 %v3607_v59, %v1310_v26  ;;  %v3099_v26 = vld [vmem:[#allocation3 + $0x240] sm:$0xf]  ;;  %1912 = vmatpush.bf16.msra.mxu3 %v3184_v25  ;;  %v3088_v25 = vor.u32 %v3478_v22, %v3085_v23  ;;  %v3470_v23 = vld [vmem:[#allocation3 + $0x1d4] sm:$0xf0] }
 0x478   : > { %v3043_v22 = vld [vmem:[#allocation3 + $0x1c0] sm:$0xf] }
 0x479   : > { %v1312_v29 = vmul.f32 0.5, %v1311_v28  ;;  %v3486_v28 = vld [vmem:[#allocation3 + $0x254] sm:$0xf0] }
 0x47b   : > { %v1313_v30 = vsub.f32 1.5, %v1312_v29  ;;  %v3483_v29 = vld [vmem:[#allocation3 + $0x244] sm:$0xf] }
 0x47d   : > { %v1314_v31 = vmul.f32 %v3607_v59, %v1313_v30  ;;  %v3101_v30 = vld [vmem:[#allocation3 + $0x258] sm:$0xf0] }
 0x47f   : > { %v1318_v33 = vsel %vm1317_vm13, %v3607_v59, %v1314_v31  ;;  %v3128_v59 = vor.u32 %v3489_v17, %v3125_v18  ;;  %v3100_v31 = vor.u32 %v3486_v28, %v3099_v26  ;;  %v3005_v17 = vld [vmem:[#allocation3 + $0x198] sm:$0xf0]  ;;  %v3083_v18 = vld [vmem:[#allocation3 + $0x218] sm:$0xf]  ;;  %v3503_v26 = vld [vmem:[#allocation3 + $0x2e4] sm:$0xf] }
 0x480   : > { %v1319_v34 = vmul.f32 %v1318_v33, %v1303_v6  ;;  %v3149_v6 = vld [vmem:[#allocation3 + $0x2b8] sm:$0xf0]  ;;  %v3084_v21 = vor.u32 %v3481_v19, %v3083_v18  ;;  %v3069_v18 = vld [vmem:[#allocation3 + $0x208] sm:$0xf0] }
 0x481   : > { %v3152_v15 = vor.u32 %v3495_v11, %v3149_v6  ;;  %v3109_v11 = vld [vmem:[#allocation3 + $0x260] sm:$0xf0]  ;;  %v3189_v28 = vld [vmem:[#allocation3 + $0x2f8] sm:$0xf0] }
 0x482   : > { %v1323_v36 = vmul.f32 %v3584_v32, %v1319_v34  ;;  %v3104_v32 = vor.u32 %v3483_v29, %v3101_v30  ;;  %v3112_v6 = vor.u32 %v3484_v13, %v3109_v11  ;;  %v3192_v30 = vor.u32 %v3503_v26, %v3189_v28  ;;  %v3093_v11 = vld [vmem:[#allocation3 + $0x238] sm:$0xf0]  ;;  %v3019_v28 = vld [vmem:[#allocation3 + $0x190] sm:$0xf] }
 0x483   : > { %1887 = vmatpush.bf16.msrb.mxu1 %v3152_v15  ;;  %v3462_v15 = vld [vmem:[#allocation3 + $0x194] sm:$0xf0] }
 0x484   : > { %v1327_v37 = vadd.f32 %v3585_v35, %v1323_v36 }
 0x486   : > { %v1344_v38 = vpack.c.bf16 %v1327_v37, %v1327_v37 }
 0x487   : > { %1888 = vmatpush.bf16.msrb.mxu1 %v3128_v59  ;;  %v3506_v59 = vld [vmem:[#allocation3 + $0x2f4] sm:$0xf0] }
 0x488   : > { %1405 = vmatmul.bf16.vlgmr.msrb.gmra.mxu2 %v1344_v38  ;;  %v3075_v38 = vld [vmem:[#allocation3 + $0x210] sm:$0xf] }
 0x489   : > { %v3076_v41 = vor.u32 %v3480_v39, %v3075_v38  ;;  %v3500_v38 = vld [vmem:[#allocation3 + $0x2c4] sm:$0xf0] }
 0x48b   : > { %1889 = vmatpush.bf16.msrb.mxu1 %v3104_v32  ;;  %v3475_v32 = vld [vmem:[#allocation3 + $0x1fc] sm:$0xf0] }
 0x48f   : > { %1890 = vmatpush.bf16.msrb.mxu1 %v3080_v45  ;;  %v3469_v45 = vld [vmem:[#allocation3 + $0x1cc] sm:$0xf0] }
 0x50b   : > { %v1406_v47 = vpop.f32.mrf.mxu2 }
 0x50c   : > { %v1407_v48 = vadd.f32 %v3586_v46, %v1406_v47  ;;  %v3156_v46 = vor.u32 %v3499_v44, %v3155_v43  ;;  %v3496_v47 = vld [vmem:[#allocation3 + $0x2ac] sm:$0xf]  ;;  %v3035_v44 = vld [vmem:[#allocation3 + $0x1b8] sm:$0xf] }
 0x50e   : > { %v1410_v49 = vmul.f32 %v1407_v48, %v1407_v48  ;;  %1900 = vmatpush.bf16.msra.mxu2 %v3156_v46  ;;  %v3466_v46 = vld [vmem:[#allocation3 + $0x1bc] sm:$0xf] }
 0x510   : > { %v1411_v50 = vmul.f32 %v1410_v49, %v1407_v48 }
 0x512   : > { %v1412_v51 = vmul.f32 0.044715, %v1411_v50  ;;  %v3051_v50 = vld [vmem:[#allocation3 + $0x1e0] sm:$0xf] }
 0x513   : > { %v1408_v52 = vpop.f32.mrf.mxu2 }
 0x514   : > { %v1413_v53 = vadd.f32 %v1412_v51, %v1407_v48  ;;  %v3474_v51 = vld [vmem:[#allocation3 + $0x1f4] sm:$0xf0]  ;;  %v3471_v52 = vld [vmem:[#allocation3 + $0x1e4] sm:$0xf] }
 0x516   : > { %v1414_v54 = vmul.f32 0.7978846, %v1413_v53  ;;  %v3052_v53 = vor.u32 %v3474_v51, %v3051_v50  ;;  %v3494_v50 = vld [vmem:[#allocation3 + $0x294] sm:$0xf0] }
 0x518   : > { %3608 = vtanh.f32 %v1414_v54  ;;  %v3053_v54 = vld [vmem:[#allocation3 + $0x1f8] sm:$0xf0] }
 0x51e   : > { %v3609_v55 = vpop.eup %3608 }
 0x51f   : > { %v1416_v56 = vadd.f32 1.0, %v3609_v55  ;;  %v3131_v55 = vld [vmem:[#allocation3 + $0x278] sm:$0xf] }
 0x521   : > { %v1417_v57 = vmul.f32 0.5, %v1416_v56  ;;  %v3493_v56 = vld [vmem:[#allocation3 + $0x28c] sm:$0xf0] }
 0x523   : > { %v1418_v58 = vmul.f32 %v1417_v57, %v1407_v48  ;;  %v3157_v48 = vld [vmem:[#allocation3 + $0x2c0] sm:$0xf0]  ;;  %v3056_v57 = vor.u32 %v3471_v52, %v3053_v54  ;;  %v3141_v54 = vld [vmem:[#allocation3 + $0x298] sm:$0xf0] }
 0x524   : > { %v3160_v49 = vor.u32 %v3496_v47, %v3157_v48  ;;  %v3036_v47 = vor.u32 %v3469_v45, %v3035_v44  ;;  %v3037_v48 = vld [vmem:[#allocation3 + $0x1d0] sm:$0xf0] }
 0x525   : > { %v1435_v60 = vpack.c.bf16 %v1418_v58, %v1418_v58  ;;  %v3132_v58 = vor.u32 %v3493_v56, %v3131_v55  ;;  %1891 = vmatpush.bf16.msrb.mxu1 %v3056_v57  ;;  %v3040_v51 = vor.u32 %v3466_v46, %v3037_v48  ;;  %v3011_v56 = vld [vmem:[#allocation3 + $0x188] sm:$0xf]  ;;  %v3463_v57 = vld [vmem:[#allocation3 + $0x19c] sm:$0xf0] }
 0x526   : > { %1913 = vmatpush.bf16.msra.mxu3 %v3160_v49  ;;  %v3139_v49 = vld [vmem:[#allocation3 + $0x280] sm:$0xf]  ;;  %v2968_v48 = vld [vmem:[%s4163_s5 + $0x6] sm:$0x3f] }
 0x527   : > { %1496 = vmatmul.bf16.vlgmr.msrb.gmra.mxu3 %v1435_v60  ;;  %v3490_v60 = vld [vmem:[#allocation3 + $0x27c] sm:$0xf]  ;;  %1901 = vmatpush.bf16.msra.mxu2 %v3132_v58  ;;  %v3140_v52 = vor.u32 %v3494_v50, %v3139_v49  ;;  %v3460_v58 = vld [vmem:[#allocation3 + $0x18c] sm:$0xf]  ;;  %v1622_v49 = vperm.slane %v2968_v48, 1 }
 0x529   : > { %1892 = vmatpush.bf16.msrb.mxu1 %v3032_v9  ;;  %v3482_v9 = vld [vmem:[#allocation3 + $0x234] sm:$0xf0] }
 0x52a   : > { %v3092_v13 = vor.u32 %v3482_v9, %v3091_v8 }
 0x52b   : > { %1902 = vmatpush.bf16.msra.mxu2 %v3108_v12  ;;  %v3479_v12 = vld [vmem:[#allocation3 + $0x224] sm:$0xf] }
 0x52f   : > { %1903 = vmatpush.bf16.msra.mxu2 %v3084_v21 }
 0x5aa   : > { %v1497_v62 = vpop.f32.mrf.mxu3 }
 0x5ab   : > { %v1498_v63 = vadd.f32 %v3587_v61, %v1497_v62  ;;  %v3133_v61 = vld [vmem:[#allocation3 + $0x290] sm:$0xf0] }
 0x5ac   : > { %v3136_v62 = vor.u32 %v3490_v60, %v3133_v61  ;;  %v3012_v60 = vor.u32 %v3463_v57, %v3011_v56  ;;  %v3013_v61 = vld [vmem:[#allocation3 + $0x1a0] sm:$0xf0] }
 0x5ad   : > { %v3993_v0 = vadd.f32 %v1498_v63, %v3947_v5  ;;  %v3492_v5 = vld [vmem:[#allocation3 + $0x284] sm:$0xf0]  ;;  %v3027_v63 = vld [vmem:[#allocation3 + $0x1b0] sm:$0xf] }
 0x5ae   : > { %v3124_v24 = vor.u32 %v3492_v5, %v3123_v16  ;;  %1914 = vmatpush.bf16.msra.mxu3 %v3136_v62  ;;  %v3459_v16 = vld [vmem:[#allocation3 + $0x184] sm:$0xf]  ;;  %v3004_v5 = vor.u32 %v3462_v15, %v3003_v14  ;;  %v3115_v62 = vld [vmem:[#allocation3 + $0x250] sm:$0xf]  ;;  %v3096_v14 = vor.u32 %v3479_v12, %v3093_v11  ;;  %v1624_v11 = vperm.slane %v2968_v48, 3 }
 0x5af   : > { %1506 = vadd.xlane.f32.xlu0 %v3993_v0  ;;  %v3008_v20 = vor.u32 %v3459_v16, %v3005_v17  ;;  %v3067_v15 = vld [vmem:[#allocation3 + $0x1f0] sm:$0xf]  ;;  %v3476_v16 = vld [vmem:[#allocation3 + $0x204] sm:$0xf0] }
 0x5b0   : > { %1875 = vmatpush.bf16.msrb.mxu0 %v3124_v24  ;;  %v3187_v24 = vld [vmem:[#allocation3 + $0x2e0] sm:$0xf] }
 0x5b1   : > { %1893 = vmatpush.bf16.msrb.mxu1 %v3008_v20  ;;  %v3188_v29 = vor.u32 %v3506_v59, %v3187_v24  ;;  %v3068_v20 = vor.u32 %v3476_v16, %v3067_v15  ;;  %v3467_v24 = vld [vmem:[#allocation3 + $0x1c4] sm:$0xf]  ;;  %v3044_v59 = vor.u32 %v3470_v23, %v3043_v22 }
 0x5b2   : > { %v1499_v1 = vpop.f32.mrf.mxu3  ;;  %1915 = vmatpush.bf16.msra.mxu3 %v3112_v6 }
 0x5b3   : > { %v3468_v1 = vld [vmem:[#allocation3 + $0x1c4] sm:$0xf0] }
 0x5b4   : > { %1876 = vmatpush.bf16.msrb.mxu0 %v3100_v31  ;;  %v3028_v3 = vor.u32 %v3468_v1, %v3027_v63  ;;  %v3059_v31 = vld [vmem:[#allocation3 + $0x1e8] sm:$0xf]  ;;  %v3016_v1 = vor.u32 %v3460_v58, %v3013_v61 }
 0x5b5   : > { %1938 = vmatpush.bf16.msra.mxu1 %v3192_v30  ;;  %v3488_v63 = vld [vmem:[#allocation3 + $0x264] sm:$0xf0]  ;;  %v3461_v30 = vld [vmem:[#allocation3 + $0x194] sm:$0xf] }
 0x5b6   : > { %1916 = vmatpush.bf16.msra.mxu3 %v3088_v25  ;;  %v3116_v2 = vor.u32 %v3488_v63, %v3115_v62  ;;  %v3045_v25 = vld [vmem:[#allocation3 + $0x1d8] sm:$0xf0] }
 0x5b7   : > { %v3048_v26 = vor.u32 %v3467_v24, %v3045_v25 }
 0x5b8   : > { %1877 = vmatpush.bf16.msrb.mxu0 %v3076_v41  ;;  %v3497_v41 = vld [vmem:[#allocation3 + $0x2b4] sm:$0xf] }
 0x5b9   : > { %v3168_v43 = vor.u32 %v3497_v41, %v3165_v42  ;;  %v3588_v41 = vld [vmem:[%s4183_s2 + $0x1] ss:$0 sm:$0xff] }
 0x5bb   : > { %1939 = vmatpush.bf16.msra.mxu1 %v3168_v43  ;;  %v3589_v43 = vld [vmem:[%s4161_s3 + $0x1] ss:$0 sm:$0xff] }
 0x5bc   : > { %1878 = vmatpush.bf16.msrb.mxu0 %v3052_v53  ;;  %v3491_v53 = vld [vmem:[#allocation3 + $0x284] sm:$0xf] }
 0x5bd   : > { %v3144_v55 = vor.u32 %v3491_v53, %v3141_v54  ;;  %v1621_v53 = vperm.slane %v2968_v48, 0 }
 0x5bf   : > { %1940 = vmatpush.bf16.msra.mxu1 %v3144_v55 }
 0x5c0   : > { %1879 = vmatpush.bf16.msrb.mxu0 %v3028_v3  ;;  %v3485_v3 = vld [vmem:[#allocation3 + $0x254] sm:$0xf] }
 0x5c1   : > { %v3120_v7 = vor.u32 %v3485_v3, %v3117_v4  ;;  %v1626_v3 = vperm.slane %v2968_v48, 5 }
 0x5c3   : > { %1941 = vmatpush.bf16.msra.mxu1 %v3120_v7 }
 0x5c4   : > { %1880 = vmatpush.bf16.msrb.mxu0 %v3004_v5  ;;  %v3473_v5 = vld [vmem:[#allocation3 + $0x1f4] sm:$0xf] }
 0x5c5   : > { %v3072_v21 = vor.u32 %v3473_v5, %v3069_v18 }
 0x5c7   : > { %1942 = vmatpush.bf16.msra.mxu1 %v3096_v14 }
 0x5c8   : > { %1925 = vmatpush.bf16.msra.mxu0 %v3188_v29  ;;  %v3464_v29 = vld [vmem:[#allocation3 + $0x1a4] sm:$0xf0] }
 0x5cb   : > { %1943 = vmatpush.bf16.msra.mxu1 %v3072_v21 }
 0x5cf   : > { %1944 = vmatpush.bf16.msra.mxu1 %v3048_v26 }
 0x622   : > { %v1507_v33 = vpop.xlane.xlu0 %1506 }
 0x623   : > { %v1508_v34 = vmul.f32 0.03125, %v1507_v33  ;;  %v3472_v33 = vld [vmem:[#allocation3 + $0x1ec] sm:$0xf] }
 0x625   : > { %v1509_v35 = vsub.f32 %v3993_v0, %v1508_v34  ;;  %v3060_v34 = vor.u32 %v3475_v32, %v3059_v31  ;;  %v3021_v31 = vld [vmem:[#allocation3 + $0x1a8] sm:$0xf0] }
 0x627   : > { %v3999_v36 = vsel %vm628_vm10, %v1509_v35, 0.0  ;;  %v3061_v35 = vld [vmem:[#allocation3 + $0x200] sm:$0xf0]  ;;  %1904 = vmatpush.bf16.msra.mxu2 %v3060_v34  ;;  %v3024_v34 = vor.u32 %v3461_v30, %v3021_v31 }
 0x628   : > { %v1511_v37 = vmul.f32 %v3999_v36, %v3999_v36  ;;  %v3064_v39 = vor.u32 %v3472_v33, %v3061_v35  ;;  %v3020_v33 = vor.u32 %v3464_v29, %v3019_v28 }
 0x629   : > { %1945 = vmatpush.bf16.msra.mxu1 %v3024_v34 }
 0x62a   : > { %1512 = vadd.xlane.f32.xlu1 %v1511_v37  ;;  %v3163_v37 = vld [vmem:[#allocation3 + $0x2b0] sm:$0xf]  ;;  %1917 = vmatpush.bf16.msra.mxu3 %v3064_v39 }
 0x62b   : > { %v3164_v40 = vor.u32 %v3500_v38, %v3163_v37  ;;  %1905 = vmatpush.bf16.msra.mxu2 %v3036_v47 }
 0x62d   : > { %1926 = vmatpush.bf16.msra.mxu0 %v3164_v40 }
 0x62e   : > { %1918 = vmatpush.bf16.msra.mxu3 %v3040_v51 }
 0x62f   : > { %1906 = vmatpush.bf16.msra.mxu2 %v3012_v60 }
 0x631   : > { %1927 = vmatpush.bf16.msra.mxu0 %v3140_v52 }
 0x632   : > { %1919 = vmatpush.bf16.msra.mxu3 %v3016_v1 }
 0x635   : > { %1928 = vmatpush.bf16.msra.mxu0 %v3116_v2  ;;  %v1625_v2 = vperm.slane %v2968_v48, 4 }
 0x639   : > { %1929 = vmatpush.bf16.msra.mxu0 %v3092_v13 }
 0x63d   : > { %1930 = vmatpush.bf16.msra.mxu0 %v3068_v20 }
 0x641   : > { %1931 = vmatpush.bf16.msra.mxu0 %v3044_v59 }
 0x645   : > { %1932 = vmatpush.bf16.msra.mxu0 %v3020_v33 }
 0x69d   : > { %v1513_v6 = vpop.xlane.xlu1 %1512 }
 0x69e   : > { %v1514_v17 = vmul.f32 0.03125, %v1513_v6 }
 0x6a0   : > { %v1515_v19 = vadd.f32 1e-06, %v1514_v17 }
 0x6a2   : > { %3610 = vrsqrt.f32 %v1515_v19  ;;  %vm1522_vm15 = vweird.f32 %v1515_v19 }
 0x6a8   : > { %v3611_v32 = vpop.eup %3610 }
 0x6a9   : > { %v1517_v35 = vmul.f32 %v3611_v32, %v1515_v19  ;;  %vm1523_vm14 = vweird.f32 %v3611_v32 }
 0x6aa   : > { %vm1524_vm2 = vmor %vm1522_vm15, %vm1523_vm14 }
 0x6ab   : > { %v1518_v37 = vmul.f32 %v3611_v32, %v1517_v35 }
 0x6ad   : > { %v1519_v38 = vmul.f32 0.5, %v1518_v37 }
 0x6af   : > { %v1520_v39 = vsub.f32 1.5, %v1519_v38  ;;  %v3514_v38 = vld [vmem:[%s4164_s6 + $0xb8] sm:$0xff] }
 0x6b1   : > { %v1521_v40 = vmul.f32 %v3611_v32, %v1520_v39 }
 0x6b3   : > { %v1525_v42 = vsel %vm1524_vm2, %v3611_v32, %v1521_v40  ;;  %v3522_v40 = vld [vmem:[%s4164_s6 + $0xf8] sm:$0xff] }
 0x6b4   : > { %v1526_v44 = vmul.f32 %v1525_v42, %v3999_v36  ;;  %v1623_v36 = vperm.slane %v2968_v48, 2  ;;  %v3513_v42 = vld [vmem:[%s4164_s6 + $0xb0] sm:$0xff]  ;;  %v3512_v48 = vld [vmem:[%s4164_s6 + $0xa8] sm:$0xff] }
 0x6b6   : > { %v1530_v45 = vmul.f32 %v3588_v41, %v1526_v44 }
 0x6b8   : > { %v1534_v46 = vadd.f32 %v3589_v43, %v1530_v45  ;;  %v3521_v43 = vld [vmem:[%s4164_s6 + $0xf0] sm:$0xff] }
 0x6ba   : > { %v1619_v47 = vpack.c.bf16 %v1534_v46, %v1534_v46 }
 0x6bc   : > { %1881 = vmatmul.bf16.vlgmr.msrb.gmra.mxu0 %v1619_v47  ;;  %1894 = vmatmul.bf16.vlgmr.msrb.gmra.mxu1 %v1619_v47 }
 0x6bd   : > { %1907 = vmatmul.bf16.vlgmr.msra.gmra.mxu2 %v1619_v47  ;;  %1920 = vmatmul.bf16.vlgmr.msra.gmra.mxu3 %v1619_v47 }
 0x6be   : > { %2182 = vmatpush.bf16.msrb.mxu1 %v3514_v38  ;;  %2121 = vmatpush.bf16.msrb.mxu0 %v3522_v40  ;;  %v3527_v38 = vld [vmem:[%s4168_s10 + $0x60] sm:$0xff]  ;;  %v3525_v40 = vld [vmem:[%s4168_s10 + $0x50] sm:$0xff] }
 0x6c2   : > { %2183 = vmatpush.bf16.msrb.mxu1 %v3513_v42  ;;  %2122 = vmatpush.bf16.msrb.mxu0 %v3521_v43  ;;  %v3523_v42 = vld [vmem:[%s4168_s10 + $0x40] sm:$0xff] }
 0x6c3   : > { %v3538_v43 = vld [vmem:[#allocation5 + $0x78] sm:$0xff] }
 0x6c6   : > { %2184 = vmatpush.bf16.msrb.mxu1 %v3512_v48 }
 0x6cc   : > { %1933 = vmatmul.bf16.vlgmr.msra.gmra.mxu0 %v1619_v47  ;;  %1946 = vmatmul.bf16.vlgmr.msra.gmra.mxu1 %v1619_v47 }
 0x739   : > { %v1882_v50 = vpop.f32.mrf.mxu0  ;;  %v1895_v51 = vpop.f32.mrf.mxu1 }
 0x73a   : > { %v1896_v52 = vadd.f32 %v1895_v51, %v1622_v49  ;;  %v1883_v55 = vadd.f32 %v1882_v50, %v1621_v53  ;;  %v3520_v49 = vld [vmem:[%s4164_s6 + $0xe8] sm:$0xff] }
 0x73b   : > { %2123 = vmatpush.bf16.msrb.mxu0 %v3520_v49 }
 0x73c   : > { %v1952_v54 = vpack.c.bf16 %v1896_v52, %v1896_v52  ;;  %v1951_v62 = vpack.c.bf16 %v1883_v55, %v1883_v55 }
 0x73e   : > { %1961 = vmatpush.bf16.xpose.msrb.mxu2 %v1952_v54  ;;  %v3511_v54 = vld [vmem:[%s4164_s6 + $0xa0] sm:$0xff] }
 0x73f   : > { %2185 = vmatpush.bf16.msrb.mxu1 %v3511_v54 }
 0x740   : > { %v1908_v56 = vpop.f32.mrf.mxu2  ;;  %v1921_v57 = vpop.f32.mrf.mxu3 }
 0x741   : > { %v1909_v58 = vadd.f32 %v1908_v56, %v1623_v36  ;;  %v1884_v60 = vpop.f32.mrf.mxu0  ;;  %v1897_v61 = vpop.f32.mrf.mxu1  ;;  %v1922_v16 = vadd.f32 %v1921_v57, %v1624_v11  ;;  %v3510_v57 = vld [vmem:[%s4164_s6 + $0x98] sm:$0xff]  ;;  %v3519_v11 = vld [vmem:[%s4164_s6 + $0xe0] sm:$0xff] }
 0x742   : > { %v3509_v61 = vld [vmem:[%s4164_s6 + $0x90] sm:$0xff]  ;;  %2124 = vmatpush.bf16.msrb.mxu0 %v3519_v11 }
 0x743   : > { %v1953_v63 = vpack.c.bf16 %v1909_v58, %v1909_v58  ;;  %v2012_v18 = vpack.c.bf16 %v1922_v16, %v1922_v16  ;;  %2186 = vmatpush.bf16.msrb.mxu1 %v3510_v57  ;;  %v3516_v16 = vld [vmem:[%s4164_s6 + $0xc8] sm:$0xff] }
 0x745   : > { %v1996_v1 = vsel %vm1090_vm0, %v1953_v63, 0  ;;  %1962 = vmatmul.bf16.vlgmr.msrb.gmra.mxu2 %v1951_v62 }
 0x746   : > { %2005 = vmatpush.bf16.msrb.mxu3 %v1996_v1 }
 0x747   : > { %2187 = vmatpush.bf16.msrb.mxu1 %v3509_v61  ;;  %v3536_v61 = vld [vmem:[#allocation5 + $0x68] sm:$0xff] }
 0x748   : > { %v1910_v4 = vpop.f32.mrf.mxu2  ;;  %v1923_v7 = vpop.f32.mrf.mxu3 }
 0x749   : > { %v1934_v8 = vpop.f32.mrf.mxu0  ;;  %v1947_v9 = vpop.f32.mrf.mxu1 }
 0x74a   : > { %v1935_v12 = vadd.f32 %v1934_v8, %v1625_v2  ;;  %v1948_v13 = vadd.f32 %v1947_v9, %v1626_v3  ;;  %v3508_v3 = vld [vmem:[%s4164_s6 + $0x88] sm:$0xff] }
 0x74b   : > { %2188 = vmatpush.bf16.msrb.mxu1 %v3508_v3  ;;  %v3531_v3 = vld [vmem:[#allocation5 + $0x40] sm:$0xff] }
 0x74c   : > { %v2013_v6 = vpack.c.bf16 %v1935_v12, %v1935_v12  ;;  %v2014_v14 = vpack.c.bf16 %v1948_v13, %v1948_v13 }
 0x74e   : > { %v2057_v15 = vsel %vm1090_vm0, %v2014_v14, 0  ;;  %2022 = vmatpush.bf16.xpose.msra.mxu2 %v2013_v6  ;;  %v3507_v6 = vld [vmem:[%s4164_s6 + $0x80] sm:$0xff]  ;;  %v3518_v14 = vld [vmem:[%s4164_s6 + $0xd8] sm:$0xff] }
 0x74f   : > { %2066 = vmatpush.bf16.msra.mxu3 %v2057_v15  ;;  %2189 = vmatpush.bf16.msrb.mxu1 %v3507_v6  ;;  %v3517_v15 = vld [vmem:[%s4164_s6 + $0xd0] sm:$0xff] }
 0x750   : > { %2125 = vmatpush.bf16.msrb.mxu0 %v3518_v14 }
 0x751   : > { %v1936_v5 = vpop.f32.mrf.mxu0  ;;  %v1949_v17 = vpop.f32.mrf.mxu1 }
 0x752   : > { %v3515_v5 = vld [vmem:[%s4164_s6 + $0xc0] sm:$0xff] }
 0x754   : > { %2126 = vmatpush.bf16.msrb.mxu0 %v3517_v15 }
 0x755   : > { %2023 = vmatmul.bf16.vlgmr.msra.gmra.mxu2 %v2012_v18 }
 0x758   : > { %2127 = vmatpush.bf16.msrb.mxu0 %v3516_v16 }
 0x75c   : > { %2128 = vmatpush.bf16.msrb.mxu0 %v3515_v5 }
 0x7c8   : > { %v1963_v19 = vpop.f32.mrf.mxu2 }
 0x7c9   : > { %v1964_v20 = vadd.f32 %v1963_v19, %v3882_v27 }
 0x7cb   : > { %v1967_v21 = vsel %vm1061_vm1, %v1964_v20, -inf }
 0x7cc   : > { %1968 = vmax.xlane.f32.xlu2 %v1967_v21 }
 0x7d0   : > { %v1965_v22 = vpop.f32.mrf.mxu2 }
 0x7d8   : > { %v2024_v23 = vpop.f32.mrf.mxu2 }
 0x7d9   : > { %v2025_v24 = vadd.f32 %v2024_v23, %v3882_v27 }
 0x7db   : > { %v2028_v25 = vsel %vm1061_vm1, %v2025_v24, -inf }
 0x7dc   : > { %2029 = vmax.xlane.f32.xlu0 %v2028_v25  ;;  %v3590_v25 = vld [vmem:[%s4165_s7 + $0x1] ss:$0 sm:$0xff] }
 0x7e0   : > { %v2026_v59 = vpop.f32.mrf.mxu2 }
 0x83f   : > { %v1969_v26 = vpop.xlane.xlu2 %1968 }
 0x840   : > { %v1970_v28 = vsub.f32 %v1964_v20, %v1969_v26 }
 0x842   : > { %v1971_v29 = vmul.f32 1.442695, %v1970_v28 }
 0x844   : > { %3612 = vpow2.f32 %v1971_v29 }
 0x84a   : > { %v3613_v30 = vpop.eup %3612 }
 0x84b   : > { %v1973_v31 = vsel %vm1061_vm1, %v3613_v30, 0.0 }
 0x84c   : > { %1974 = vadd.xlane.f32.xlu1 %v1973_v31  ;;  %v3530_v31 = vld [vmem:[%s4168_s10 + $0x78] sm:$0xff] }
 0x84d   : > { %2306 = vmatpush.bf16.msrb.mxu2 %v3530_v31  ;;  %v3545_v31 = vld [vmem:[%s4174_s16 + $0x30] sm:$0xff] }
 0x84f   : > { %v2030_v32 = vpop.xlane.xlu0 %2029 }
 0x850   : > { %v2031_v33 = vsub.f32 %v2025_v24, %v2030_v32 }
 0x852   : > { %v2032_v34 = vmul.f32 1.442695, %v2031_v33 }
 0x854   : > { %3614 = vpow2.f32 %v2032_v34 }
 0x85a   : > { %v3615_v35 = vpop.eup %3614 }
 0x85b   : > { %v2034_v37 = vsel %vm1061_vm1, %v3615_v35, 0.0 }
 0x85c   : > { %2035 = vadd.xlane.f32.xlu2 %v2034_v37 }
 0x8bf   : > { %v1975_v27 = vpop.xlane.xlu1 %1974 }
 0x8c0   : > { %3616 = vrcp.f32 %v1975_v27  ;;  %v1987_v45 = vand.u32 2147483648, %v1975_v27  ;;  %v1985_v47 = vand.u32 2147483647, %v1975_v27  ;;  %vm1981_vm3 = vweird.f32 %v1975_v27 }
 0x8c2   : > { %v1988_v51 = vor.u32 1.1754944e-38, %v1987_v45  ;;  %vm1986_vm5 = vcmp.eq.f32.partialorder %v1985_v47, 8.507059e+37 }
 0x8c6   : > { %v3617_v39 = vpop.eup %3616 }
 0x8c7   : > { %v1977_v41 = vmul.f32 %v3617_v39, %v1975_v27  ;;  %vm1982_vm0 = vweird.f32 %v3617_v39  ;;  %v3528_v27 = vld [vmem:[%s4168_s10 + $0x68] sm:$0xff] }
 0x8c8   : > { %vm1983_vm4 = vmor %vm1981_vm3, %vm1982_vm0 }
 0x8c9   : > { %v1978_v44 = vsub.f32 1.0, %v1977_v41  ;;  %v3524_v41 = vld [vmem:[%s4168_s10 + $0x48] sm:$0xff] }
 0x8cb   : > { %v1979_v46 = vmul.f32 %v3617_v39, %v1978_v44 }
 0x8cd   : > { %v1980_v50 = vadd.f32 %v3617_v39, %v1979_v46 }
 0x8cf   : > { %v1984_v52 = vsel %vm1983_vm4, %v3617_v39, %v1980_v50  ;;  %v2036_v53 = vpop.xlane.xlu2 %2035  ;;  %v3526_v39 = vld [vmem:[%s4168_s10 + $0x58] sm:$0xff] }
 0x8d0   : > { %v1989_v36 = vsel %vm1986_vm5, %v1988_v51, %v1984_v52  ;;  %3618 = vrcp.f32 %v2036_v53  ;;  %v2048_v63 = vand.u32 2147483648, %v2036_v53  ;;  %v2046_v2 = vand.u32 2147483647, %v2036_v53 }
 0x8d1   : > { %v1990_v55 = vmul.f32 %v3613_v30, %v1989_v36  ;;  %vm2042_vm7 = vweird.f32 %v2036_v53 }
 0x8d2   : > { %v2049_v7 = vor.u32 1.1754944e-38, %v2048_v63  ;;  %vm2047_vm9 = vcmp.eq.f32.partialorder %v2046_v2, 8.507059e+37  ;;  %v3534_v63 = vld [vmem:[#allocation5 + $0x58] sm:$0xff]  ;;  %v3532_v2 = vld [vmem:[#allocation5 + $0x48] sm:$0xff] }
 0x8d3   : > { %v1991_v56 = vpack.c.bf16 %v1990_v55, %v1990_v55  ;;  %v3592_v55 = vld [vmem:[%s4167_s9 + $0x1] ss:$0 sm:$0xff] }
 0x8d5   : > { %3193 = vmatmul.msk.bf16.vlgmr.msrb.gmra.mxu3 %vm1061_vm1, %v1991_v56 }
 0x8d6   : > { %v3619_v58 = vpop.eup %3618  ;;  %2399 = vmatpush.bf16.msrb.mxu3 %v3538_v43 }
 0x8d7   : > { %v2038_v60 = vmul.f32 %v3619_v58, %v2036_v53  ;;  %vm2043_vm6 = vweird.f32 %v3619_v58  ;;  %v3591_v53 = vld [vmem:[%s4166_s8 + $0x1] ss:$0 sm:$0xff] }
 0x8d8   : > { %vm2044_vm8 = vmor %vm2042_vm7, %vm2043_vm6 }
 0x8d9   : > { %v2039_v62 = vsub.f32 1.0, %v2038_v60  ;;  %v3537_v60 = vld [vmem:[#allocation5 + $0x70] sm:$0xff] }
 0x8da   : > { %2400 = vmatpush.bf16.msrb.mxu3 %v3537_v60 }
 0x8db   : > { %v2040_v1 = vmul.f32 %v3619_v58, %v2039_v62  ;;  %v3535_v62 = vld [vmem:[#allocation5 + $0x60] sm:$0xff] }
 0x8dd   : > { %v2041_v4 = vadd.f32 %v3619_v58, %v2040_v1  ;;  %v3533_v1 = vld [vmem:[#allocation5 + $0x50] sm:$0xff] }
 0x8de   : > { %2401 = vmatpush.bf16.msrb.mxu3 %v3536_v61 }
 0x8df   : > { %v2045_v8 = vsel %vm2044_vm8, %v3619_v58, %v2041_v4  ;;  %v3593_v4 = vld [vmem:[%s4169_s11 + $0x1] ss:$0 sm:$0xff] }
 0x8e0   : > { %v2050_v9 = vsel %vm2047_vm9, %v2049_v7, %v2045_v8 }
 0x8e1   : > { %v2051_v12 = vmul.f32 %v3615_v35, %v2050_v9 }
 0x8e2   : > { %2402 = vmatpush.bf16.msrb.mxu3 %v3535_v62 }
 0x8e3   : > { %v2052_v13 = vpack.c.bf16 %v2051_v12, %v2051_v12 }
 0x8e5   : > { %3194 = vmatmul.msk.bf16.vlgmr.msra.gmra.mxu3 %vm1061_vm1, %v2052_v13 }
 0x8e6   : > { %2403 = vmatpush.bf16.msrb.mxu3 %v3534_v63 }
 0x8ea   : > { %2404 = vmatpush.bf16.msrb.mxu3 %v3533_v1 }
 0x8ee   : > { %2405 = vmatpush.bf16.msrb.mxu3 %v3532_v2 }
 0x8f2   : > { %2406 = vmatpush.bf16.msrb.mxu3 %v3531_v3 }
 0x958   : > { %v2007_v17 = vpop.f32.mrf.mxu3 }
 0x959   : > { %v2011_v18 = vpack.c.bf16 %v2007_v17, %v2007_v17 }
 0x95b   : > { %2190 = vmatmul.bf16.vlgmr.msrb.gmra.mxu1 %v2011_v18 }
 0x960   : > { %v2009_v19 = vpop.f32.mrf.mxu3 }
 0x961   : > { %v3594_v19 = vld [vmem:[%s4171_s13 + $0x1] ss:$0 sm:$0xff] }
 0x968   : > { %v2068_v20 = vpop.f32.mrf.mxu3 }
 0x969   : > { %v2072_v21 = vpack.c.bf16 %v2068_v20, %v2068_v20 }
 0x96b   : > { %2129 = vmatmul.bf16.vlgmr.msrb.gmra.mxu0 %v2072_v21 }
 0x970   : > { %v2070_v22 = vpop.f32.mrf.mxu3 }
 0x9d8   : > { %v2191_v23 = vpop.f32.mrf.mxu1 }
 0x9e0   : > { %v2193_v24 = vpop.f32.mrf.mxu1 }
 0x9e1   : > { %v3546_v24 = vld [vmem:[%s4174_s16 + $0x38] sm:$0xff] }
 0x9e2   : > { %2516 = vmatpush.bf16.msra.mxu0 %v3546_v24 }
 0x9e6   : > { %2517 = vmatpush.bf16.msra.mxu0 %v3545_v31 }
 0x9e8   : > { %v2130_v59 = vpop.f32.mrf.mxu0 }
 0x9e9   : > { %v2192_v26 = vadd.f32 %v2191_v23, %v2130_v59 }
 0x9eb   : > { %v2200_v28 = vadd.f32 %v3590_v25, %v2192_v26 }
 0x9ed   : > { %v4075_v29 = vadd.f32 %v2200_v28, %v3993_v0  ;;  %v3529_v0 = vld [vmem:[%s4168_s10 + $0x70] sm:$0xff] }
 0x9ee   : > { %2307 = vmatpush.bf16.msrb.mxu2 %v3529_v0 }
 0x9ef   : > { %2206 = vadd.xlane.f32.xlu0 %v4075_v29 }
 0x9f0   : > { %v2132_v30 = vpop.f32.mrf.mxu0 }
 0x9f2   : > { %2308 = vmatpush.bf16.msrb.mxu2 %v3528_v27  ;;  %v3712_v27 = vmov 0  }
 0x9f3   : > { %3581 = vset.pattern.permute.xlu1 %v3712_v27  ;;  %3582 = vset.pattern.permute.xlu0 %v3712_v27 }
 0x9f6   : > { %2309 = vmatpush.bf16.msrb.mxu2 %v3527_v38 }
 0x9fa   : > { %2310 = vmatpush.bf16.msrb.mxu2 %v3526_v39 }
 0x9fe   : > { %2311 = vmatpush.bf16.msrb.mxu2 %v3525_v40 }
 0xa02   : > { %2312 = vmatpush.bf16.msrb.mxu2 %v3524_v41 }
 0xa06   : > { %2313 = vmatpush.bf16.msrb.mxu2 %v3523_v42 }
 0xa62   : > { %v2207_v32 = vpop.xlane.xlu0 %2206 }
 0xa63   : > { %v2208_v33 = vmul.f32 0.03125, %v2207_v32  ;;  %v3543_v32 = vld [vmem:[%s4174_s16 + $0x20] sm:$0xff] }
 0xa65   : > { %v2209_v34 = vsub.f32 %v4075_v29, %v2208_v33  ;;  %v3541_v33 = vld [vmem:[%s4174_s16 + $0x10] sm:$0xff] }
 0xa67   : > { %v2210_v35 = vsel %vm628_vm10, %v2209_v34, 0.0  ;;  %v3540_v34 = vld [vmem:[%s4174_s16 + $0x8] sm:$0xff] }
 0xa68   : > { %v2211_v37 = vmul.f32 %v2210_v35, %v2210_v35 }
 0xa6a   : > { %2212 = vadd.xlane.f32.xlu1 %v2211_v37  ;;  %v3597_v37 = vld [vmem:[#allocation2] ss:$0 sm:$0xff] }
 0xa83   : > { %2465 = vperm.xlu1 %3581, %v3597_v37  }
 0xadd   : > { %v2213_v44 = vpop.xlane.xlu1 %2212 }
 0xade   : > { %v2214_v45 = vmul.f32 0.03125, %v2213_v44 }
 0xae0   : > { %v2215_v46 = vadd.f32 1e-06, %v2214_v45 }
 0xae2   : > { %3620 = vrsqrt.f32 %v2215_v46  ;;  %vm2222_vm11 = vweird.f32 %v2215_v46 }
 0xae8   : > { %v3621_v47 = vpop.eup %3620 }
 0xae9   : > { %v2217_v48 = vmul.f32 %v3621_v47, %v2215_v46  ;;  %vm2223_vm1 = vweird.f32 %v3621_v47  ;;  %v3595_v46 = vld [vmem:[%s4172_s14] ss:$0 sm:$0xff] }
 0xaea   : > { %vm2224_vm12 = vmor %vm2222_vm11, %vm2223_vm1 }
 0xaeb   : > { %v2218_v49 = vmul.f32 %v3621_v47, %v2217_v48 }
 0xaed   : > { %v2219_v50 = vmul.f32 0.5, %v2218_v49  ;;  %v3596_v49 = vld [vmem:[%s4173_s15] ss:$0 sm:$0xff] }
 0xaef   : > { %v2220_v51 = vsub.f32 1.5, %v2219_v50 }
 0xaf1   : > { %v2221_v52 = vmul.f32 %v3621_v47, %v2220_v51 }
 0xaf3   : > { %v2225_v54 = vsel %vm2224_vm12, %v3621_v47, %v2221_v52 }
 0xaf4   : > { %v2226_v36 = vmul.f32 %v2225_v54, %v2210_v35  ;;  %v3539_v35 = vld [vmem:[%s4174_s16] sm:$0xff] }
 0xaf6   : > { %v2230_v56 = vmul.f32 %v3591_v53, %v2226_v36  ;;  %v2466_v53 = vpop.permute.xlu1 %2465 }
 0xaf8   : > { %v2234_v57 = vadd.f32 %v3592_v55, %v2230_v56 }
 0xafa   : > { %v2252_v58 = vpack.c.bf16 %v2234_v57, %v2234_v57 }
 0xafc   : > { %2314 = vmatmul.bf16.vlgmr.msrb.gmra.mxu2 %v2252_v58 }
 0xb7f   : > { %v2315_v7 = vpop.f32.mrf.mxu2 }
 0xb80   : > { %v2316_v8 = vadd.f32 %v3593_v4, %v2315_v7 }
 0xb82   : > { %v2319_v9 = vmul.f32 %v2316_v8, %v2316_v8 }
 0xb84   : > { %v2320_v12 = vmul.f32 %v2319_v9, %v2316_v8 }
 0xb86   : > { %v2321_v13 = vmul.f32 0.044715, %v2320_v12 }
 0xb87   : > { %v2317_v11 = vpop.f32.mrf.mxu2 }
 0xb88   : > { %v2322_v6 = vadd.f32 %v2321_v13, %v2316_v8 }
 0xb8a   : > { %v2323_v14 = vmul.f32 0.7978846, %v2322_v6 }
 0xb8c   : > { %3622 = vtanh.f32 %v2323_v14 }
 0xb92   : > { %v3623_v15 = vpop.eup %3622 }
 0xb93   : > { %v2325_v16 = vadd.f32 1.0, %v3623_v15 }
 0xb95   : > { %v2326_v5 = vmul.f32 0.5, %v2325_v16 }
 0xb97   : > { %v2327_v17 = vmul.f32 %v2326_v5, %v2316_v8 }
 0xb99   : > { %v2345_v18 = vpack.c.bf16 %v2327_v17, %v2327_v17 }
 0xb9b   : > { %2407 = vmatmul.bf16.vlgmr.msrb.gmra.mxu3 %v2345_v18 }
 0xc1e   : > { %v2408_v20 = vpop.f32.mrf.mxu3 }
 0xc1f   : > { %v2409_v21 = vadd.f32 %v3594_v19, %v2408_v20 }
 0xc21   : > { %v2412_v22 = vadd.f32 %v2409_v21, %v4075_v29  ;;  %v3544_v29 = vld [vmem:[%s4174_s16 + $0x28] sm:$0xff] }
 0xc22   : > { %2518 = vmatpush.bf16.msra.mxu0 %v3544_v29 }
 0xc23   : > { %2415 = vadd.xlane.f32.xlu2 %v2412_v22 }
 0xc26   : > { %v2410_v23 = vpop.f32.mrf.mxu3  ;;  %2519 = vmatpush.bf16.msra.mxu0 %v3543_v32 }
 0xc2a   : > { %2520 = vmatpush.bf16.msra.mxu0 %v3542_v10 }
 0xc2e   : > { %2521 = vmatpush.bf16.msra.mxu0 %v3541_v33 }
 0xc32   : > { %2522 = vmatpush.bf16.msra.mxu0 %v3540_v34 }
 0xc36   : > { %2523 = vmatpush.bf16.msra.mxu0 %v3539_v35 }
 0xc96   : > { %v2416_v25 = vpop.xlane.xlu2 %2415 }
 0xc97   : > { %v2417_v59 = vmul.f32 0.03125, %v2416_v25 }
 0xc99   : > { %v2418_v26 = vsub.f32 %v2412_v22, %v2417_v59 }
 0xc9b   : > { %v2419_v28 = vsel %vm628_vm10, %v2418_v26, 0.0 }
 0xc9c   : > { %v2420_v30 = vmul.f32 %v2419_v28, %v2419_v28 }
 0xc9e   : > { %2421 = vadd.xlane.f32.xlu0 %v2420_v30 }
 0xd11   : > { %v2422_v0 = vpop.xlane.xlu0 %2421 }
 0xd12   : > { %v2423_v38 = vmul.f32 0.03125, %v2422_v0 }
 0xd14   : > { %v2424_v39 = vadd.f32 1e-06, %v2423_v38 }
 0xd16   : > { %3624 = vrsqrt.f32 %v2424_v39  ;;  %vm2431_vm13 = vweird.f32 %v2424_v39 }
 0xd1c   : > { %v3625_v40 = vpop.eup %3624 }
 0xd1d   : > { %v2426_v41 = vmul.f32 %v3625_v40, %v2424_v39  ;;  %vm2432_vm10 = vweird.f32 %v3625_v40 }
 0xd1e   : > { %vm2433_vm14 = vmor %vm2431_vm13, %vm2432_vm10 }
 0xd1f   : > { %v2427_v42 = vmul.f32 %v3625_v40, %v2426_v41 }
 0xd21   : > { %v2428_v43 = vmul.f32 0.5, %v2427_v42 }
 0xd23   : > { %v2429_v44 = vsub.f32 1.5, %v2428_v43 }
 0xd25   : > { %v2430_v45 = vmul.f32 %v3625_v40, %v2429_v44 }
 0xd27   : > { %v2434_v47 = vsel %vm2433_vm14, %v3625_v40, %v2430_v45 }
 0xd28   : > { %v2435_v48 = vmul.f32 %v2434_v47, %v2419_v28 }
 0xd2a   : > { %v2439_v50 = vmul.f32 %v3595_v46, %v2435_v48 }
 0xd2c   : > { %v2443_v51 = vadd.f32 %v3596_v49, %v2439_v50 }
 0xd2e   : > { %v2460_v52 = vpack.c.bf16 %v2443_v51, %v2443_v51 }
 0xd30   : > { %2524 = vmatmul.bf16.vlgmr.msra.gmra.mxu0 %v2460_v52 }
 0xdad   : > { %v2525_v54 = vpop.f32.mrf.mxu0 }
 0xdae   : > { %v2526_v36 = vadd.f32 %v2525_v54, %v2466_v53 }
 0xdb0   : > { %v3376_v55 = vmul.f32 -1.442695, %v2526_v36 }
 0xdb2   : > { %3626 = vpow2.f32 %v3376_v55 }
 0xdb5   : > { %v2527_v56 = vpop.f32.mrf.mxu0 }
 0xdb8   : > { %v3627_v57 = vpop.eup %3626 }
 0xdb9   : > { %v2532_v58 = vadd.f32 1.0, %v3627_v57 }
 0xdbb   : > { %3628 = vrcp.f32 %v2532_v58  ;;  %v2544_v63 = vand.u32 2147483648, %v2532_v58  ;;  %v2542_v2 = vand.u32 2147483647, %v2532_v58  ;;  %vm2538_vm2 = vweird.f32 %v2532_v58 }
 0xdbd   : > { %v2545_v4 = vor.u32 1.1754944e-38, %v2544_v63  ;;  %vm2543_vm3 = vcmp.eq.f32.partialorder %v2542_v2, 8.507059e+37 }
 0xdc1   : > { %v3629_v60 = vpop.eup %3628 }
 0xdc2   : > { %v2534_v61 = vmul.f32 %v3629_v60, %v2532_v58  ;;  %vm2539_vm15 = vweird.f32 %v3629_v60 }
 0xdc3   : > { %vm2540_vm0 = vmor %vm2538_vm2, %vm2539_vm15 }
 0xdc4   : > { %v2535_v62 = vsub.f32 1.0, %v2534_v61 }
 0xdc6   : > { %v2536_v1 = vmul.f32 %v3629_v60, %v2535_v62 }
 0xdc8   : > { %v2537_v3 = vadd.f32 %v3629_v60, %v2536_v1 }
 0xdca   : > { %v2541_v7 = vsel %vm2540_vm0, %v3629_v60, %v2537_v3 }
 0xdcb   : > { %v2546_v8 = vsel %vm2543_vm3, %v2545_v4, %v2541_v7 }
 0xdcc   : > { %2548 = vst [vmem:[%s620_s30] sm:$0xff] %v2546_v8 }
 0xdcd PF: > { %s32_s29 = sadd.s32 1, %s3704_s29  }
 0xdce   : > { %p29_p7 = scmp.ge.s32.totalorder %s32_s29, 4  }
 0xdd0   :  { %31 = sbr.rel (!%p29_p7) target bundleno = 6 (0x6), region = 146 }
 0xdd5   :  { %2568 = vsyncpa [#allocation4], 1 }
 0xdd6   :  { %2570 = vsyncpa [#allocation4 + $0x1], 1 }
 0xdd7   :  { %2571 = vsyncpa [#allocation6], 1 }

// kernel: ext_summarizer_forward.2
= control target key start
LH: loop header
LB: loop body
LE: loop exit
PB: predicated region body
PF: predicated region fallthrough
CT: control target
= control target key end

     0   :  { %s4315_s0 = inlined_call_operand.vmem [shape: f32[2,16,128], index: 0, kind: input, shape index: {}]   ;;  %s4316_s1 = inlined_call_operand.vmem [shape: f32[2,1,16], index: 1, kind: input, shape index: {}]   ;;  %s4317_s2 = inlined_call_operand.vmem [shape: f32[1,128], index: 2, kind: input, shape index: {}]   ;;  %s4318_s3 = inlined_call_operand.vmem [shape: f32[1,128], index: 3, kind: input, shape index: {}]   ;;  %s4319_s4 = inlined_call_operand.hbm [shape: bf16[2,128,768], index: 4, kind: input, shape index: {}]   ;;  %s4320_s5 = inlined_call_operand.vmem [shape: f32[2,1,768], index: 5, kind: input, shape index: {}]   ;;  %s4321_s6 = inlined_call_operand.vmem [shape: bf16[2,2,128,128], index: 6, kind: input, shape index: {}]   ;;  %s4322_s7 = inlined_call_operand.vmem [shape: f32[2,1,128], index: 7, kind: input, shape index: {}]   ;;  %s4323_s8 = inlined_call_operand.vmem [shape: f32[2,1,128], index: 8, kind: input, shape index: {}]   ;;  %s4324_s9 = inlined_call_operand.vmem [shape: f32[2,1,128], index: 9, kind: input, shape index: {}]   ;;  %s4325_s10 = inlined_call_operand.hbm [shape: bf16[2,128,128], index: 10, kind: input, shape index: {}]   ;;  %s4326_s11 = inlined_call_operand.vmem [shape: f32[2,1,128], index: 11, kind: input, shape index: {}]   ;;  %s4327_s12 = inlined_call_operand.hbm [shape: bf16[2,128,128], index: 12, kind: input, shape index: {}]   ;;  %s4328_s13 = inlined_call_operand.vmem [shape: f32[2,1,128], index: 13, kind: input, shape index: {}]   ;;  %s4329_s14 = inlined_call_operand.vmem [shape: f32[2,1,128], index: 14, kind: input, shape index: {}]   ;;  %s4330_s15 = inlined_call_operand.vmem [shape: f32[2,1,128], index: 15, kind: input, shape index: {}]   ;;  %s4331_s16 = inlined_call_operand.vmem [shape: f32[2,16,128], index: 16, kind: output, shape index: {}]  }
   0x1   :  { %4333 = sst [smem:[#allocation10_spill]] %s4315_s0 }
   0x2   :  { %4334 = sst [smem:[#allocation11_spill]] %s4319_s4 }
   0x3   :  { %4335 = sst [smem:[#allocation12_spill]] %s4325_s10 }
   0x4   :  { %21 = vsyncpa [#allocation3], 0 }
   0x5   :  { %22 = vsyncpa [#allocation5], 0  ;;  %s3968_s21 = smov 0  }
   0x6 LB: > { %4336 = sst [smem:[#allocation9_spill]] %s3874_s21  ;;  %s3977_s25 = sadd.s32 4294967295, %s3874_s21   ;;  %s3874_s21 = sphi %s3968_s21, %s28_s21  }
   0x7   : > { %s4337_s10 = sld [smem:[#allocation12_spill]]  ;;  %p2790_p0 = scmp.ge.s32.totalorder %s3874_s21, 1 }
   0x8   : > { %p405_p1 = scmp.lt.s32.totalorder %s3874_s21, 3  ;;  %p3673_p2 = scmp.eq.s32.totalorder %s3977_s25, 0 }
   0x9   : > { %s3876_s27 = smov [#allocation4]   ;;  %s4339_s4 = sld [smem:[#allocation11_spill]] }
   0xa   : > { %p3982_p3 = pnand %p2790_p0, %p405_p1  ;;  %s453_s28 = sshll.u32 %s3876_s27, 4  ;;  %s454_s28 = int_to_ptr.vmem [resolvable:$true] %s453_s28 }
   0xb   : > { %s3877_s18 = smov [#allocation2]   ;;  %s3878_s20 = smov 64  }
   0xc   : > { %p3663_p4 = pneg %p3982_p3  ;;  %s424_s19 = sshll.u32 %s3877_s18, 4  ;;  %s425_s19 = int_to_ptr.vmem [resolvable:$true] %s424_s19 }
   0xd   : > { %s451_s24 = sshll.u32 %s4337_s10, 4  ;;  %s3879_s22 = smov 4   ;;  %s452_s24 = int_to_ptr.hbm [resolvable:$true] %s451_s24 }
   0xe   : > { %p3993_p5 = pnand %p3673_p2, %p3663_p4  ;;  %s468_s29 = sshll.u32 %s4327_s12, 4  ;;  %s469_s29 = int_to_ptr.hbm [resolvable:$true] %s468_s29 }
   0xf   : > { %s422_s0 = sshll.u32 %s4339_s4, 4  ;;  %s3880_s30 = smov 384   ;;  %s423_s0 = int_to_ptr.hbm [resolvable:$true] %s422_s0 }
  0x10   : > { %3669 = dma.hbm_to_vmem [thread:$0]  (!%p3993_p5), %s452_s24, 2048, %s454_s28, [#allocation5], %s3878_s20, %s3878_s20, %s3879_s22  }
  0x11   : > { %s3881_s4 = smov 24   ;;  %s3882_s10 = smov [#allocation6]  }
  0x12   : > { %3666 = dma.hbm_to_vmem [thread:$0]  (!%p3993_p5), %s423_s0, 12288, %s425_s19, [#allocation3], %s3880_s30, %s3880_s30, %s3881_s4  }
  0x13   : > { %s470_s21 = sshll.u32 %s3882_s10, 4  ;;  %509 = sbr.rel (%p3982_p3) target bundleno = 3711 (0xe7f), region = 84  ;;  %s471_s21 = int_to_ptr.vmem [resolvable:$true] %s470_s21 }
  0x14   : > { %3672 = dma.hbm_to_vmem [thread:$0]  (!%p3993_p5), %s469_s29, 2048, %s471_s21, [#allocation5], %s3878_s20, %s3878_s20, %s3879_s22  }
  0x18   : > { %3865 = dma.done.wait (%p3673_p2), [#allocation3], 12288  }
  0x19   : > { %3867 = vsyncadd (%p3673_p2), [#allocation3], 4294955008 }
  0x1a   : > { %3869 = dma.done.wait (%p3673_p2), [#allocation5], 4096  }
  0x1b   : > { %3871 = vsyncadd (%p3673_p2), [#allocation5], 4294963200  ;;  %p573_p6 = scmp.lt.s32.totalorder %s3977_s25, 1  ;;  %s4341_s24 = sld [smem:[#allocation10_spill]]  ;;  %v2973_v2 = vld [vmem:[#allocation2 + $0x150] sm:$0xf]  ;;  %v592_v14 = vlaneseq }
  0x1c   : > { %v3536_v3 = vld [vmem:[#allocation2 + $0x164] sm:$0xf0]  ;;  %v3533_v4 = vld [vmem:[#allocation2 + $0x154] sm:$0xf]  ;;  %v2975_v6 = vld [vmem:[#allocation2 + $0x168] sm:$0xf0] }
  0x1d   : > { %s4346_s25 = smov (!%p573_p6, %s3977_s25), 1  ;;  %v2974_v5 = vor.u32 %v3536_v3, %v2973_v2  ;;  %v2949_v7 = vld [vmem:[#allocation2 + $0x120] sm:$0xf]  ;;  %v3530_v8 = vld [vmem:[#allocation2 + $0x134] sm:$0xf0]  ;;  %v2978_v9 = vor.u32 %v3533_v4, %v2975_v6  ;;  %v4026_v15 = vand.u32 127, %v592_v14 }
  0x1e   : > { %s3489_s4 = sshll.u32 %s4346_s25, 4  ;;  %v3527_v10 = vld [vmem:[#allocation2 + $0x124] sm:$0xf]  ;;  %v2951_v11 = vld [vmem:[#allocation2 + $0x138] sm:$0xf0]  ;;  %v2950_v12 = vor.u32 %v3530_v8, %v2949_v7  ;;  %s580_s27 = scalar_lea.vmem %s4316_s1, %s4346_s25  ;;  %vm1088_vm7 = vcmask 130048  }
  0x1f   : > { %984 = vmatpush.bf16.msra.mxu0 %v2974_v5  ;;  %998 = vmatpush.bf16.msra.mxu1 %v2978_v9  ;;  %v2954_v13 = vor.u32 %v3527_v10, %v2951_v11  ;;  %vm594_vm0 = vcmp.lt.s32.totalorder %v4026_v15, 32  ;;  %v2925_v26 = vld [vmem:[#allocation2 + $0xf0] sm:$0xf]  ;;  %v3524_v27 = vld [vmem:[#allocation2 + $0x104] sm:$0xf0]  ;;  %s585_s28 = scalar_lea.vmem %s4331_s16, %s3489_s4 }
  0x20   : > { %v3521_v28 = vld [vmem:[#allocation2 + $0xf4] sm:$0xf]  ;;  %v2926_v29 = vor.u32 %v3524_v27, %v2925_v26  ;;  %v2927_v30 = vld [vmem:[#allocation2 + $0x108] sm:$0xf0]  ;;  %v2901_v32 = vld [vmem:[#allocation2 + $0xc0] sm:$0xf] }
  0x21   : > { %s577_s26 = scalar_lea.vmem %s4341_s24, %s3489_s4  ;;  %v2930_v31 = vor.u32 %v3521_v28, %v2927_v30  ;;  %v3518_v33 = vld [vmem:[#allocation2 + $0xd4] sm:$0xf0]  ;;  %v3515_v34 = vld [vmem:[#allocation2 + $0xc4] sm:$0xf]  ;;  %v2903_v36 = vld [vmem:[#allocation2 + $0xd8] sm:$0xf0] }
  0x22   : > { %v587_v0 = vld [vmem:[%s577_s26] sm:$0xff]  ;;  %v588_v1 = vld [vmem:[%s577_s26 + $0x8] sm:$0xff]  ;;  %v2902_v35 = vor.u32 %v3518_v33, %v2901_v32  ;;  %v2981_v37 = vld [vmem:[#allocation2 + $0x158] sm:$0xf]  ;;  %v2906_v39 = vor.u32 %v3515_v34, %v2903_v36 }
  0x23   : > { %597 = vadd.xlane.f32.xlu0 %v587_v0  ;;  %985 = vmatpush.bf16.msra.mxu0 %v2950_v12  ;;  %v3537_v38 = vld [vmem:[#allocation2 + $0x16c] sm:$0xf0]  ;;  %v3534_v41 = vld [vmem:[#allocation2 + $0x15c] sm:$0xf]  ;;  %v2983_v42 = vld [vmem:[#allocation2 + $0x170] sm:$0xf0] }
  0x24   : > { %999 = vmatpush.bf16.msra.mxu1 %v2954_v13  ;;  %v2982_v40 = vor.u32 %v3537_v38, %v2981_v37  ;;  %v2986_v43 = vor.u32 %v3534_v41, %v2983_v42  ;;  %v2877_v44 = vld [vmem:[#allocation2 + $0x90] sm:$0xf]  ;;  %v3512_v45 = vld [vmem:[#allocation2 + $0xa4] sm:$0xf0]  ;;  %v3509_v46 = vld [vmem:[#allocation2 + $0x94] sm:$0xf] }
  0x25   : > { %v2878_v47 = vor.u32 %v3512_v45, %v2877_v44  ;;  %v2879_v48 = vld [vmem:[#allocation2 + $0xa8] sm:$0xf0]  ;;  %v2957_v49 = vld [vmem:[#allocation2 + $0x128] sm:$0xf]  ;;  %v3531_v50 = vld [vmem:[#allocation2 + $0x13c] sm:$0xf0] }
  0x26   : > { %1012 = vmatpush.bf16.msra.mxu2 %v2982_v40  ;;  %1026 = vmatpush.bf16.msra.mxu3 %v2986_v43  ;;  %v2882_v51 = vor.u32 %v3509_v46, %v2879_v48  ;;  %v2958_v52 = vor.u32 %v3531_v50, %v2957_v49  ;;  %v3528_v53 = vld [vmem:[#allocation2 + $0x12c] sm:$0xf]  ;;  %v2959_v54 = vld [vmem:[#allocation2 + $0x140] sm:$0xf0]  ;;  %v2853_v56 = vld [vmem:[#allocation2 + $0x60] sm:$0xf] }
  0x27   : > { %986 = vmatpush.bf16.msra.mxu0 %v2926_v29  ;;  %v2962_v55 = vor.u32 %v3528_v53, %v2959_v54  ;;  %v3506_v57 = vld [vmem:[#allocation2 + $0x74] sm:$0xf0]  ;;  %v3503_v58 = vld [vmem:[#allocation2 + $0x64] sm:$0xf]  ;;  %v2855_v60 = vld [vmem:[#allocation2 + $0x78] sm:$0xf0] }
  0x28   : > { %1000 = vmatpush.bf16.msra.mxu1 %v2930_v31  ;;  %v2854_v59 = vor.u32 %v3506_v57, %v2853_v56  ;;  %v2933_v61 = vld [vmem:[#allocation2 + $0xf8] sm:$0xf]  ;;  %v3525_v62 = vld [vmem:[#allocation2 + $0x10c] sm:$0xf0]  ;;  %v2858_v63 = vor.u32 %v3503_v58, %v2855_v60  ;;  %v2935_v2 = vld [vmem:[#allocation2 + $0x110] sm:$0xf0] }
  0x29   : > { %v2829_v4 = vld [vmem:[#allocation2 + $0x30] sm:$0xf]  ;;  %v3500_v5 = vld [vmem:[#allocation2 + $0x44] sm:$0xf0]  ;;  %v3497_v6 = vld [vmem:[#allocation2 + $0x34] sm:$0xf] }
  0x2a   : > { %1013 = vmatpush.bf16.msra.mxu2 %v2958_v52  ;;  %1027 = vmatpush.bf16.msra.mxu3 %v2962_v55  ;;  %v2830_v7 = vor.u32 %v3500_v5, %v2829_v4  ;;  %v2831_v8 = vld [vmem:[#allocation2 + $0x48] sm:$0xf0]  ;;  %v2909_v9 = vld [vmem:[#allocation2 + $0xc8] sm:$0xf]  ;;  %v3519_v10 = vld [vmem:[#allocation2 + $0xdc] sm:$0xf0] }
  0x2b   : > { %599 = vadd.xlane.f32.xlu0 %v588_v1  ;;  %987 = vmatpush.bf16.msra.mxu0 %v2902_v35  ;;  %v2834_v11 = vor.u32 %v3497_v6, %v2831_v8  ;;  %v2910_v12 = vor.u32 %v3519_v10, %v2909_v9  ;;  %v3516_v13 = vld [vmem:[#allocation2 + $0xcc] sm:$0xf]  ;;  %v2911_v14 = vld [vmem:[#allocation2 + $0xe0] sm:$0xf0]  ;;  %v3510_v28 = vld [vmem:[#allocation2 + $0x9c] sm:$0xf] }
  0x2c   : > { %1001 = vmatpush.bf16.msra.mxu1 %v2906_v39  ;;  %v2887_v29 = vld [vmem:[#allocation2 + $0xb0] sm:$0xf0]  ;;  %v2989_v30 = vld [vmem:[#allocation2 + $0x160] sm:$0xf]  ;;  %v3538_v32 = vld [vmem:[#allocation2 + $0x174] sm:$0xf0] }
  0x2d   : > { %v2890_v31 = vor.u32 %v3510_v28, %v2887_v29  ;;  %v3535_v33 = vld [vmem:[#allocation2 + $0x164] sm:$0xf]  ;;  %v2991_v34 = vld [vmem:[#allocation2 + $0x178] sm:$0xf0]  ;;  %v2990_v35 = vor.u32 %v3538_v32, %v2989_v30  ;;  %v2861_v37 = vld [vmem:[#allocation2 + $0x68] sm:$0xf] }
  0x2e   : > { %v2994_v36 = vor.u32 %v3535_v33, %v2991_v34  ;;  %v3507_v38 = vld [vmem:[#allocation2 + $0x7c] sm:$0xf0]  ;;  %v3504_v39 = vld [vmem:[#allocation2 + $0x6c] sm:$0xf]  ;;  %v2863_v41 = vld [vmem:[#allocation2 + $0x80] sm:$0xf0] }
  0x2f   : > { %988 = vmatpush.bf16.msra.mxu0 %v2878_v47  ;;  %v2862_v40 = vor.u32 %v3507_v38, %v2861_v37  ;;  %v2965_v42 = vld [vmem:[#allocation2 + $0x130] sm:$0xf]  ;;  %v3532_v43 = vld [vmem:[#allocation2 + $0x144] sm:$0xf0]  ;;  %v2866_v44 = vor.u32 %v3504_v39, %v2863_v41  ;;  %v3529_v46 = vld [vmem:[#allocation2 + $0x134] sm:$0xf] }
  0x30   : > { %1002 = vmatpush.bf16.msra.mxu1 %v2882_v51  ;;  %v2966_v45 = vor.u32 %v3532_v43, %v2965_v42  ;;  %v2967_v47 = vld [vmem:[#allocation2 + $0x148] sm:$0xf0]  ;;  %v2837_v49 = vld [vmem:[#allocation2 + $0x38] sm:$0xf]  ;;  %v3501_v50 = vld [vmem:[#allocation2 + $0x4c] sm:$0xf0] }
  0x31   : > { %v2970_v48 = vor.u32 %v3529_v46, %v2967_v47  ;;  %v3498_v51 = vld [vmem:[#allocation2 + $0x3c] sm:$0xf]  ;;  %v2838_v52 = vor.u32 %v3501_v50, %v2837_v49  ;;  %v2839_v53 = vld [vmem:[#allocation2 + $0x50] sm:$0xf0]  ;;  %v2941_v54 = vld [vmem:[#allocation2 + $0x100] sm:$0xf] }
  0x32   : > { %v3526_v55 = vld [vmem:[#allocation2 + $0x114] sm:$0xf0]  ;;  %v2842_v56 = vor.u32 %v3498_v51, %v2839_v53  ;;  %v3523_v58 = vld [vmem:[#allocation2 + $0x104] sm:$0xf]  ;;  %v2917_v4 = vld [vmem:[#allocation2 + $0xd0] sm:$0xf] }
  0x33   : > { %989 = vmatpush.bf16.msra.mxu0 %v2854_v59  ;;  %v2942_v57 = vor.u32 %v3526_v55, %v2941_v54  ;;  %v2943_v59 = vld [vmem:[#allocation2 + $0x118] sm:$0xf0]  ;;  %v3517_v8 = vld [vmem:[#allocation2 + $0xd4] sm:$0xf]  ;;  %v2919_v10 = vld [vmem:[#allocation2 + $0xe8] sm:$0xf0] }
  0x34   : > { %1003 = vmatpush.bf16.msra.mxu1 %v2858_v63  ;;  %v2813_v63 = vld [vmem:[#allocation2 + $0x8] sm:$0xf]  ;;  %v3502_v32 = vld [vmem:[#allocation2 + $0x54] sm:$0xf0]  ;;  %v3499_v34 = vld [vmem:[#allocation2 + $0x44] sm:$0xf] }
  0x35   : > { %v2821_v39 = vld [vmem:[#allocation2 + $0x10] sm:$0xf]  ;;  %v3493_v42 = vld [vmem:[#allocation2 + $0x14] sm:$0xf]  ;;  %v2823_v43 = vld [vmem:[#allocation2 + $0x28] sm:$0xf0] }
  0x36   : > { %v2826_v47 = vor.u32 %v3493_v42, %v2823_v43  ;;  %v3694_v54 = vld [vmem:[%s4317_s2] ss:$0 sm:$0xff] }
  0x37   : > { %990 = vmatpush.bf16.msra.mxu0 %v2830_v7  ;;  %v3520_v7 = vld [vmem:[#allocation2 + $0xe4] sm:$0xf0] }
  0x38   : > { %1004 = vmatpush.bf16.msra.mxu1 %v2834_v11  ;;  %v2918_v9 = vor.u32 %v3520_v7, %v2917_v4  ;;  %v2922_v11 = vor.u32 %v3517_v8, %v2919_v10 }
  0x96   : > { %v598_v16 = vpop.xlane.xlu0 %597 }
  0x97   : > { %v601_v17 = vmul.f32 0.03125, %v598_v16  ;;  %v2914_v16 = vor.u32 %v3516_v13, %v2911_v14  ;;  %v3514_v13 = vld [vmem:[#allocation2 + $0xb4] sm:$0xf0]  ;;  %v3511_v14 = vld [vmem:[#allocation2 + $0xa4] sm:$0xf] }
  0x99   : > { %v603_v18 = vsub.f32 %v587_v0, %v601_v17  ;;  %v2934_v0 = vor.u32 %v3525_v62, %v2933_v61  ;;  %v2805_v17 = vld [vmem:[#allocation2] sm:$0xf]  ;;  %v2946_v61 = vor.u32 %v3523_v58, %v2943_v59 }
  0x9a   : > { %v3695_v58 = vld [vmem:[%s4318_s3] ss:$0 sm:$0xff] }
  0x9b   : > { %v4031_v19 = vsel %vm594_vm0, %v603_v18, 0.0  ;;  %1014 = vmatpush.bf16.msra.mxu2 %v2934_v0  ;;  %v3494_v18 = vld [vmem:[#allocation2 + $0x14] sm:$0xf0]  ;;  %v3495_v0 = vld [vmem:[#allocation2 + $0x1c] sm:$0xf0] }
  0x9c   : > { %v607_v20 = vmul.f32 %v4031_v19, %v4031_v19 }
  0x9e   : > { %609 = vadd.xlane.f32.xlu1 %v607_v20  ;;  %v600_v21 = vpop.xlane.xlu0 %599  ;;  %v3491_v20 = vld [vmem:[#allocation2 + $0x4] sm:$0xf] }
  0x9f   : > { %v602_v22 = vmul.f32 0.03125, %v600_v21  ;;  %1015 = vmatpush.bf16.msra.mxu2 %v2910_v12  ;;  %v2806_v21 = vor.u32 %v3494_v18, %v2805_v17  ;;  %v2893_v12 = vld [vmem:[#allocation2 + $0xa0] sm:$0xf]  ;;  %v2895_v17 = vld [vmem:[#allocation2 + $0xb8] sm:$0xf0] }
  0xa1   : > { %v604_v23 = vsub.f32 %v588_v1, %v602_v22  ;;  %v3522_v1 = vld [vmem:[#allocation2 + $0xfc] sm:$0xf]  ;;  %991 = vmatpush.bf16.msra.mxu0 %v2806_v21  ;;  %v2869_v21 = vld [vmem:[#allocation2 + $0x70] sm:$0xf] }
  0xa2   : > { %v2938_v3 = vor.u32 %v3522_v1, %v2935_v2  ;;  %v2807_v22 = vld [vmem:[#allocation2 + $0x18] sm:$0xf0]  ;;  %v2814_v1 = vor.u32 %v3495_v0, %v2813_v63  ;;  %v3492_v2 = vld [vmem:[#allocation2 + $0xc] sm:$0xf] }
  0xa3   : > { %v4037_v24 = vsel %vm594_vm0, %v604_v23, 0.0  ;;  %v2885_v23 = vld [vmem:[#allocation2 + $0x98] sm:$0xf]  ;;  %v2810_v26 = vor.u32 %v3491_v20, %v2807_v22  ;;  %v2898_v20 = vor.u32 %v3511_v14, %v2895_v17  ;;  %v3508_v22 = vld [vmem:[#allocation2 + $0x84] sm:$0xf0] }
  0xa4   : > { %v608_v25 = vmul.f32 %v4037_v24, %v4037_v24  ;;  %1028 = vmatpush.bf16.msra.mxu3 %v2938_v3  ;;  %v2815_v3 = vld [vmem:[#allocation2 + $0x20] sm:$0xf0] }
  0xa5   : > { %1005 = vmatpush.bf16.msra.mxu1 %v2810_v26  ;;  %1040 = vmatpush.bf16.msrb.mxu0 %v2990_v35  ;;  %v2818_v6 = vor.u32 %v3492_v2, %v2815_v3  ;;  %v2871_v26 = vld [vmem:[#allocation2 + $0x88] sm:$0xf0]  ;;  %v2847_v35 = vld [vmem:[#allocation2 + $0x58] sm:$0xf0] }
  0xa6   : > { %611 = vadd.xlane.f32.xlu1 %v608_v25  ;;  %v3513_v25 = vld [vmem:[#allocation2 + $0xac] sm:$0xf0]  ;;  %v2850_v38 = vor.u32 %v3499_v34, %v2847_v35 }
  0xa7   : > { %v2886_v27 = vor.u32 %v3513_v25, %v2885_v23  ;;  %v3505_v23 = vld [vmem:[#allocation2 + $0x74] sm:$0xf] }
  0xa8   : > { %1029 = vmatpush.bf16.msra.mxu3 %v2914_v16  ;;  %v2894_v16 = vor.u32 %v3514_v13, %v2893_v12  ;;  %v2874_v30 = vor.u32 %v3505_v23, %v2871_v26 }
  0xa9   : > { %1016 = vmatpush.bf16.msra.mxu2 %v2886_v27  ;;  %1054 = vmatpush.bf16.msrb.mxu1 %v2994_v36  ;;  %v2870_v27 = vor.u32 %v3508_v22, %v2869_v21 }
  0xaa   : > { %1041 = vmatpush.bf16.msrb.mxu0 %v2966_v45 }
  0xac   : > { %1030 = vmatpush.bf16.msra.mxu3 %v2890_v31  ;;  %v2845_v31 = vld [vmem:[#allocation2 + $0x40] sm:$0xf] }
  0xad   : > { %1017 = vmatpush.bf16.msra.mxu2 %v2862_v40  ;;  %1055 = vmatpush.bf16.msrb.mxu1 %v2970_v48  ;;  %v2846_v37 = vor.u32 %v3502_v32, %v2845_v31  ;;  %v3496_v40 = vld [vmem:[#allocation2 + $0x24] sm:$0xf0] }
  0xae   : > { %1042 = vmatpush.bf16.msrb.mxu0 %v2942_v57  ;;  %v2822_v45 = vor.u32 %v3496_v40, %v2821_v39  ;;  %v589_v39 = vld [vmem:[%s580_s27] sm:$0x1] }
  0xaf   : > { %v590_v40 = vsub.f32 1.0, %v589_v39 }
  0xb0   : > { %1031 = vmatpush.bf16.msra.mxu3 %v2866_v44 }
  0xb1   : > { %1018 = vmatpush.bf16.msra.mxu2 %v2838_v52  ;;  %1056 = vmatpush.bf16.msrb.mxu1 %v2946_v61 }
  0xb2   : > { %1043 = vmatpush.bf16.msrb.mxu0 %v2918_v9 }
  0xb4   : > { %1032 = vmatpush.bf16.msra.mxu3 %v2842_v56 }
  0xb5   : > { %1019 = vmatpush.bf16.msra.mxu2 %v2814_v1  ;;  %1057 = vmatpush.bf16.msrb.mxu1 %v2922_v11 }
  0xb6   : > { %1044 = vmatpush.bf16.msrb.mxu0 %v2894_v16 }
  0xb8   : > { %1033 = vmatpush.bf16.msra.mxu3 %v2818_v6 }
  0xb9   : > { %1058 = vmatpush.bf16.msrb.mxu1 %v2898_v20 }
  0xba   : > { %1045 = vmatpush.bf16.msrb.mxu0 %v2870_v27 }
  0xbd   : > { %1059 = vmatpush.bf16.msrb.mxu1 %v2874_v30 }
  0xbe   : > { %1046 = vmatpush.bf16.msrb.mxu0 %v2846_v37 }
  0xc1   : > { %1060 = vmatpush.bf16.msrb.mxu1 %v2850_v38 }
  0xc2   : > { %1047 = vmatpush.bf16.msrb.mxu0 %v2822_v45 }
  0xc5   : > { %1061 = vmatpush.bf16.msrb.mxu1 %v2826_v47 }
 0x111   : > { %v610_v60 = vpop.xlane.xlu1 %609 }
 0x112   : > { %v613_v62 = vmul.f32 0.03125, %v610_v60 }
 0x114   : > { %v615_v5 = vadd.f32 1e-12, %v613_v62 }
 0x116   : > { %3710 = vrsqrt.f32 %v615_v5  ;;  %vm623_vm2 = vweird.f32 %v615_v5 }
 0x119   : > { %v612_v18 = vpop.xlane.xlu1 %611 }
 0x11a   : > { %v614_v25 = vmul.f32 0.03125, %v612_v18 }
 0x11c   : > { %v3711_v28 = vpop.eup %3710  ;;  %v616_v29 = vadd.f32 1e-12, %v614_v25 }
 0x11d   : > { %v618_v33 = vmul.f32 %v3711_v28, %v615_v5  ;;  %vm624_vm1 = vweird.f32 %v3711_v28 }
 0x11e   : > { %3712 = vrsqrt.f32 %v616_v29  ;;  %vm625_vm3 = vmor %vm623_vm2, %vm624_vm1  ;;  %vm633_vm5 = vweird.f32 %v616_v29 }
 0x11f   : > { %v619_v36 = vmul.f32 %v3711_v28, %v618_v33 }
 0x121   : > { %v620_v41 = vmul.f32 0.5, %v619_v36 }
 0x123   : > { %v621_v44 = vsub.f32 1.5, %v620_v41  ;;  %v591_v41 = vmul.f32 -10000.0, %v590_v40 }
 0x124   : > { %v3713_v46 = vpop.eup %3712 }
 0x125   : > { %v622_v48 = vmul.f32 %v3711_v28, %v621_v44  ;;  %v628_v49 = vmul.f32 %v3713_v46, %v616_v29  ;;  %vm634_vm4 = vweird.f32 %v3713_v46  ;;  %v4062_v42 = vperm.slane %v591_v41, 0 }
 0x126   : > { %vm635_vm6 = vmor %vm633_vm5, %vm634_vm4 }
 0x127   : > { %v629_v50 = vmul.f32 %v3713_v46, %v628_v49  ;;  %v626_v51 = vsel %vm625_vm3, %v3711_v28, %v622_v48 }
 0x128   : > { %v637_v55 = vmul.f32 %v626_v51, %v4031_v19 }
 0x129   : > { %v630_v52 = vmul.f32 0.5, %v629_v50 }
 0x12a   : > { %v642_v59 = vmul.f32 %v3694_v54, %v637_v55 }
 0x12b   : > { %v631_v53 = vsub.f32 1.5, %v630_v52 }
 0x12c   : > { %v4049_v62 = vadd.f32 %v3695_v58, %v642_v59 }
 0x12d   : > { %v632_v56 = vmul.f32 %v3713_v46, %v631_v53 }
 0x12f   : > { %v636_v57 = vsel %vm635_vm6, %v3713_v46, %v632_v56 }
 0x130   : > { %v638_v60 = vmul.f32 %v636_v57, %v4037_v24  ;;  %v697_v24 = vld [vmem:[%s4320_s5] sm:$0x3f] }
 0x131   : > { %v733_v2 = vperm.slane %v697_v24, 1  ;;  %v732_v9 = vperm.slane %v697_v24, 0  ;;  %v734_v10 = vperm.slane %v697_v24, 2  ;;  %v736_v23 = vperm.slane %v697_v24, 4 }
 0x132   : > { %v643_v61 = vmul.f32 %v3694_v54, %v638_v60  ;;  %v737_v25 = vperm.slane %v697_v24, 5  ;;  %v735_v35 = vperm.slane %v697_v24, 3 }
 0x134   : > { %v4051_v63 = vadd.f32 %v3695_v58, %v643_v61 }
 0x136   : > { %v730_v0 = vpack.c.bf16 %v4051_v63, %v4049_v62 }
 0x138   : > { %992 = vmatmul.bf16.vlgmr.msra.gmra.mxu0 %v730_v0  ;;  %1006 = vmatmul.bf16.vlgmr.msra.gmra.mxu1 %v730_v0 }
 0x139   : > { %1020 = vmatmul.bf16.vlgmr.msra.gmra.mxu2 %v730_v0  ;;  %1034 = vmatmul.bf16.vlgmr.msra.gmra.mxu3 %v730_v0 }
 0x148   : > { %1048 = vmatmul.bf16.vlgmr.msrb.gmra.mxu0 %v730_v0  ;;  %1062 = vmatmul.bf16.vlgmr.msrb.gmra.mxu1 %v730_v0 }
 0x1b5   : > { %v993_v19 = vpop.f32.mrf.mxu0  ;;  %v1007_v1 = vpop.f32.mrf.mxu1 }
 0x1b6   : > { %v1008_v6 = vadd.f32 %v1007_v1, %v733_v2  ;;  %v994_v13 = vadd.f32 %v993_v19, %v732_v9 }
 0x1bc   : > { %v1021_v3 = vpop.f32.mrf.mxu2  ;;  %v1035_v20 = vpop.f32.mrf.mxu3 }
 0x1bd   : > { %v995_v4 = vpop.f32.mrf.mxu0  ;;  %v1009_v5 = vpop.f32.mrf.mxu1  ;;  %v1022_v14 = vadd.f32 %v1021_v3, %v734_v10  ;;  %v1036_v37 = vadd.f32 %v1035_v20, %v735_v35  ;;  %v3546_v20 = vld [vmem:[%s4321_s6 + $0x38] sm:$0xff] }
 0x1be   : > { %v1010_v7 = vadd.f32 %v1009_v5, %v733_v2  ;;  %v996_v11 = vadd.f32 %v995_v4, %v732_v9  ;;  %1350 = vmatpush.bf16.msra.mxu1 %v3546_v20 }
 0x1c0   : > { %v1069_v8 = vpack.c.bf16 %v1010_v7, %v1008_v6  ;;  %v1068_v21 = vpack.c.bf16 %v996_v11, %v994_v13 }
 0x1c2   : > { %1081 = vmatpush.bf16.xpose.msrb.mxu2 %v1069_v8 }
 0x1c4   : > { %v1023_v12 = vpop.f32.mrf.mxu2  ;;  %v1037_v32 = vpop.f32.mrf.mxu3 }
 0x1c5   : > { %v1024_v16 = vadd.f32 %v1023_v12, %v734_v10  ;;  %v1049_v17 = vpop.f32.mrf.mxu0  ;;  %v1063_v18 = vpop.f32.mrf.mxu1  ;;  %v1038_v36 = vadd.f32 %v1037_v32, %v735_v35  ;;  %v3544_v35 = vld [vmem:[%s4321_s6 + $0x28] sm:$0xff] }
 0x1c6   : > { %v1050_v28 = vadd.f32 %v1049_v17, %v736_v23  ;;  %v1064_v29 = vadd.f32 %v1063_v18, %v737_v25 }
 0x1c7   : > { %v1070_v22 = vpack.c.bf16 %v1024_v16, %v1022_v14  ;;  %v1156_v38 = vpack.c.bf16 %v1038_v36, %v1036_v37 }
 0x1c9   : > { %1148 = vmatpush.bf16.msrb.mxu3 %v1070_v22  ;;  %1082 = vmatmul.bf16.vlgmr.msrb.gmra.mxu2 %v1068_v21 }
 0x1cd   : > { %v1051_v26 = vpop.f32.mrf.mxu0  ;;  %v1065_v27 = vpop.f32.mrf.mxu1 }
 0x1ce   : > { %v1052_v30 = vadd.f32 %v1051_v26, %v736_v23  ;;  %v1066_v31 = vadd.f32 %v1065_v27, %v737_v25  ;;  %v3554_v23 = vld [vmem:[%s4321_s6 + $0x78] sm:$0xff]  ;;  %v3545_v26 = vld [vmem:[%s4321_s6 + $0x30] sm:$0xff] }
 0x1cf   : > { %1288 = vmatpush.bf16.msra.mxu0 %v3554_v23  ;;  %1351 = vmatpush.bf16.msra.mxu1 %v3545_v26 }
 0x1d0   : > { %v1157_v33 = vpack.c.bf16 %v1052_v30, %v1050_v28  ;;  %v1158_v34 = vpack.c.bf16 %v1066_v31, %v1064_v29 }
 0x1d2   : > { %1166 = vmatpush.bf16.xpose.msra.mxu2 %v1157_v33  ;;  %1232 = vmatpush.bf16.msra.mxu3 %v1158_v34 }
 0x1d3   : > { %1352 = vmatpush.bf16.msra.mxu1 %v3544_v35 }
 0x1d9   : > { %1167 = vmatmul.bf16.vlgmr.msra.gmra.mxu2 %v1156_v38 }
 0x24c   : > { %v1083_v43 = vpop.f32.mrf.mxu2 }
 0x24d   : > { %v1084_v44 = vadd.f32 %v1083_v43, %v4062_v42 }
 0x24f   : > { %v1089_v45 = vsel %vm1088_vm7, %v1084_v44, -inf }
 0x250   : > { %1090 = vmax.xlane.f32.xlu2 %v1089_v45  ;;  %v3543_v45 = vld [vmem:[%s4321_s6 + $0x20] sm:$0xff] }
 0x251   : > { %1353 = vmatpush.bf16.msra.mxu1 %v3543_v45 }
 0x254   : > { %v1085_v46 = vpop.f32.mrf.mxu2 }
 0x255   : > { %v1086_v47 = vadd.f32 %v1085_v46, %v4062_v42 }
 0x257   : > { %v1092_v48 = vsel %vm1088_vm7, %v1086_v47, -inf }
 0x258   : > { %1093 = vmax.xlane.f32.xlu2 %v1092_v48 }
 0x25c   : > { %v1168_v49 = vpop.f32.mrf.mxu2 }
 0x25d   : > { %v1169_v50 = vadd.f32 %v1168_v49, %v4062_v42 }
 0x25f   : > { %v1173_v51 = vsel %vm1088_vm7, %v1169_v50, -inf }
 0x260   : > { %1174 = vmax.xlane.f32.xlu0 %v1173_v51 }
 0x264   : > { %v1170_v52 = vpop.f32.mrf.mxu2 }
 0x265   : > { %v1171_v53 = vadd.f32 %v1170_v52, %v4062_v42  ;;  %v3542_v52 = vld [vmem:[%s4321_s6 + $0x18] sm:$0xff] }
 0x266   : > { %1354 = vmatpush.bf16.msra.mxu1 %v3542_v52  ;;  %v3557_v52 = vld [vmem:[#allocation4 + $0x10] sm:$0xff] }
 0x267   : > { %v1176_v54 = vsel %vm1088_vm7, %v1171_v53, -inf }
 0x268   : > { %1177 = vmax.xlane.f32.xlu1 %v1176_v54 }
 0x2c3   : > { %v1091_v55 = vpop.xlane.xlu2 %1090 }
 0x2c4   : > { %v1095_v56 = vsub.f32 %v1084_v44, %v1091_v55 }
 0x2c6   : > { %v1097_v57 = vmul.f32 1.442695, %v1095_v56 }
 0x2c8   : > { %3714 = vpow2.f32 %v1097_v57 }
 0x2cb   : > { %v1094_v58 = vpop.xlane.xlu2 %1093 }
 0x2cc   : > { %v1096_v59 = vsub.f32 %v1086_v47, %v1094_v58 }
 0x2ce   : > { %v4072_v60 = vpop.eup %3714  ;;  %v1099_v61 = vmul.f32 1.442695, %v1096_v59 }
 0x2cf   : > { %v1101_v0 = vsel %vm1088_vm7, %v4072_v60, 0.0 }
 0x2d0   : > { %3716 = vpow2.f32 %v1099_v61  ;;  %1102 = vadd.xlane.f32.xlu2 %v1101_v0 }
 0x2d3   : > { %v1175_v19 = vpop.xlane.xlu0 %1174 }
 0x2d4   : > { %v1179_v1 = vsub.f32 %v1169_v50, %v1175_v19 }
 0x2d6   : > { %v4076_v24 = vpop.eup %3716  ;;  %v1181_v2 = vmul.f32 1.442695, %v1179_v1 }
 0x2d7   : > { %v1104_v3 = vsel %vm1088_vm7, %v4076_v24, 0.0 }
 0x2d8   : > { %3718 = vpow2.f32 %v1181_v2  ;;  %1105 = vadd.xlane.f32.xlu0 %v1104_v3 }
 0x2db   : > { %v1178_v4 = vpop.xlane.xlu1 %1177 }
 0x2dc   : > { %v1180_v5 = vsub.f32 %v1171_v53, %v1178_v4 }
 0x2de   : > { %v4080_v6 = vpop.eup %3718  ;;  %v1183_v7 = vmul.f32 1.442695, %v1180_v5 }
 0x2df   : > { %v1185_v8 = vsel %vm1088_vm7, %v4080_v6, 0.0 }
 0x2e0   : > { %3720 = vpow2.f32 %v1183_v7  ;;  %1186 = vadd.xlane.f32.xlu1 %v1185_v8 }
 0x2e6   : > { %v4084_v9 = vpop.eup %3720 }
 0x2e7   : > { %v1188_v10 = vsel %vm1088_vm7, %v4084_v9, 0.0 }
 0x2e8   : > { %1189 = vadd.xlane.f32.xlu2 %v1188_v10  ;;  %v3553_v10 = vld [vmem:[%s4321_s6 + $0x70] sm:$0xff] }
 0x2e9   : > { %1289 = vmatpush.bf16.msra.mxu0 %v3553_v10 }
 0x343   : > { %v1103_v11 = vpop.xlane.xlu2 %1102 }
 0x344   : > { %3722 = vrcp.f32 %v1103_v11  ;;  %v1118_v27 = vand.u32 2147483648, %v1103_v11  ;;  %vm1112_vm9 = vweird.f32 %v1103_v11  ;;  %v1116_v29 = vand.u32 2147483647, %v1103_v11 }
 0x346   : > { %v1119_v36 = vor.u32 1.1754944e-38, %v1118_v27  ;;  %vm1117_vm13 = vcmp.eq.f32.partialorder %v1116_v29, 8.507059e+37 }
 0x34a   : > { %v3723_v12 = vpop.eup %3722 }
 0x34b   : > { %v1108_v13 = vmul.f32 %v3723_v12, %v1103_v11  ;;  %v1106_v14 = vpop.xlane.xlu0 %1105  ;;  %vm1113_vm8 = vweird.f32 %v3723_v12  ;;  %v3541_v11 = vld [vmem:[%s4321_s6 + $0x10] sm:$0xff] }
 0x34c   : > { %3724 = vrcp.f32 %v1106_v14  ;;  %vm4097_vm10 = vmor %vm1112_vm9, %vm1113_vm8  ;;  %v1132_v32 = vand.u32 2147483648, %v1106_v14  ;;  %v1130_v34 = vand.u32 2147483647, %v1106_v14  ;;  %vm1126_vm12 = vweird.f32 %v1106_v14  ;;  %1355 = vmatpush.bf16.msra.mxu1 %v3541_v11 }
 0x34d   : > { %v1109_v16 = vsub.f32 1.0, %v1108_v13  ;;  %v3539_v13 = vld [vmem:[%s4321_s6] sm:$0xff] }
 0x34e   : > { %v1133_v40 = vor.u32 1.1754944e-38, %v1132_v32  ;;  %vm1131_vm15 = vcmp.eq.f32.partialorder %v1130_v34, 8.507059e+37 }
 0x34f   : > { %v1110_v17 = vmul.f32 %v3723_v12, %v1109_v16  ;;  %v3549_v16 = vld [vmem:[%s4321_s6 + $0x50] sm:$0xff] }
 0x351   : > { %v1111_v25 = vadd.f32 %v3723_v12, %v1110_v17  ;;  %v3548_v17 = vld [vmem:[%s4321_s6 + $0x48] sm:$0xff] }
 0x352   : > { %v3725_v18 = vpop.eup %3724 }
 0x353   : > { %v1122_v21 = vmul.f32 %v3725_v18, %v1106_v14  ;;  %v1187_v22 = vpop.xlane.xlu1 %1186  ;;  %vm1127_vm11 = vweird.f32 %v3725_v18  ;;  %v1115_v33 = vsel %vm4097_vm10, %v3723_v12, %v1111_v25  ;;  %v3552_v12 = vld [vmem:[%s4321_s6 + $0x68] sm:$0xff]  ;;  %v3550_v14 = vld [vmem:[%s4321_s6 + $0x58] sm:$0xff] }
 0x354   : > { %3726 = vrcp.f32 %v1187_v22  ;;  %vm1128_vm14 = vmor %vm1126_vm12, %vm1127_vm11  ;;  %v1120_v44 = vsel %vm1117_vm13, %v1119_v36, %v1115_v33  ;;  %v1202_v56 = vand.u32 2147483648, %v1187_v22  ;;  %vm1196_vm2 = vweird.f32 %v1187_v22  ;;  %1290 = vmatpush.bf16.msra.mxu0 %v3552_v12  ;;  %v3697_v12 = vld [vmem:[%s4323_s8] ss:$0 sm:$0xff] }
 0x355   : > { %v1123_v28 = vsub.f32 1.0, %v1122_v21  ;;  %v1135_v48 = vmul.f32 %v4072_v60, %v1120_v44  ;;  %v1200_v57 = vand.u32 2147483647, %v1187_v22 }
 0x356   : > { %v1203_v19 = vor.u32 1.1754944e-38, %v1202_v56 }
 0x357   : > { %v1124_v31 = vmul.f32 %v3725_v18, %v1123_v28  ;;  %vm1201_vm5 = vcmp.eq.f32.partialorder %v1200_v57, 8.507059e+37  ;;  %v3696_v28 = vld [vmem:[%s4322_s7] ss:$0 sm:$0xff] }
 0x359   : > { %v1125_v37 = vadd.f32 %v3725_v18, %v1124_v31 }
 0x35a   : > { %v3727_v38 = vpop.eup %3726 }
 0x35b   : > { %v1129_v39 = vsel %vm1128_vm14, %v3725_v18, %v1125_v37  ;;  %v1192_v41 = vmul.f32 %v3727_v38, %v1187_v22  ;;  %v1190_v43 = vpop.xlane.xlu2 %1189  ;;  %vm1197_vm1 = vweird.f32 %v3727_v38  ;;  %v3547_v18 = vld [vmem:[%s4321_s6 + $0x40] sm:$0xff] }
 0x35c   : > { %3728 = vrcp.f32 %v1190_v43  ;;  %v1134_v47 = vsel %vm1131_vm15, %v1133_v40, %v1129_v39  ;;  %vm1198_vm3 = vmor %vm1196_vm2, %vm1197_vm1  ;;  %v1216_v59 = vand.u32 2147483648, %v1190_v43  ;;  %v1214_v0 = vand.u32 2147483647, %v1190_v43 }
 0x35d   : > { %v1193_v46 = vsub.f32 1.0, %v1192_v41  ;;  %v1136_v49 = vmul.f32 %v4076_v24, %v1134_v47  ;;  %vm1210_vm6 = vweird.f32 %v1190_v43 }
 0x35e   : > { %v1217_v2 = vor.u32 1.1754944e-38, %v1216_v59  ;;  %vm1215_vm9 = vcmp.eq.f32.partialorder %v1214_v0, 8.507059e+37 }
 0x35f   : > { %v1194_v50 = vmul.f32 %v3727_v38, %v1193_v46  ;;  %v1137_v51 = vpack.c.bf16 %v1136_v49, %v1135_v48  ;;  %v3562_v48 = vld [vmem:[#allocation4 + $0x38] sm:$0xff]  ;;  %v3560_v49 = vld [vmem:[#allocation4 + $0x28] sm:$0xff] }
 0x360   : > { %1495 = vmatpush.bf16.msrb.mxu2 %v3562_v48 }
 0x361   : > { %2995 = vmatmul.msk.bf16.vlgmr.msrb.gmra.mxu3 %vm1088_vm7, %v1137_v51  ;;  %v1195_v54 = vadd.f32 %v3727_v38, %v1194_v50  ;;  %v3559_v50 = vld [vmem:[#allocation4 + $0x20] sm:$0xff]  ;;  %v3558_v51 = vld [vmem:[#allocation4 + $0x18] sm:$0xff] }
 0x362   : > { %v3729_v53 = vpop.eup %3728 }
 0x363   : > { %v1206_v55 = vmul.f32 %v3729_v53, %v1190_v43  ;;  %v1199_v60 = vsel %vm1198_vm3, %v3727_v38, %v1195_v54  ;;  %vm1211_vm4 = vweird.f32 %v3729_v53 }
 0x364   : > { %v1204_v24 = vsel %vm1201_vm5, %v1203_v19, %v1199_v60  ;;  %vm1212_vm8 = vmor %vm1210_vm6, %vm1211_vm4 }
 0x365   : > { %v1207_v58 = vsub.f32 1.0, %v1206_v55  ;;  %v1219_v5 = vmul.f32 %v4080_v6, %v1204_v24  ;;  %v3540_v6 = vld [vmem:[%s4321_s6 + $0x8] sm:$0xff]  ;;  %v3555_v55 = vld [vmem:[#allocation4] sm:$0xff] }
 0x366   : > { %1356 = vmatpush.bf16.msra.mxu1 %v3540_v6 }
 0x367   : > { %v1208_v61 = vmul.f32 %v3729_v53, %v1207_v58 }
 0x369   : > { %v1209_v1 = vadd.f32 %v3729_v53, %v1208_v61 }
 0x36a   : > { %1357 = vmatpush.bf16.msra.mxu1 %v3539_v13 }
 0x36b   : > { %v1213_v3 = vsel %vm1212_vm8, %v3729_v53, %v1209_v1  ;;  %v3556_v53 = vld [vmem:[#allocation4 + $0x8] sm:$0xff] }
 0x36c   : > { %v1218_v4 = vsel %vm1215_vm9, %v1217_v2, %v1213_v3 }
 0x36d   : > { %v1220_v7 = vmul.f32 %v4084_v9, %v1218_v4  ;;  %v3551_v9 = vld [vmem:[%s4321_s6 + $0x60] sm:$0xff] }
 0x36e   : > { %1291 = vmatpush.bf16.msra.mxu0 %v3551_v9 }
 0x36f   : > { %v1221_v8 = vpack.c.bf16 %v1220_v7, %v1219_v5 }
 0x371   : > { %2996 = vmatmul.msk.bf16.vlgmr.msra.gmra.mxu3 %vm1088_vm7, %v1221_v8 }
 0x372   : > { %1292 = vmatpush.bf16.msra.mxu0 %v3550_v14 }
 0x376   : > { %1293 = vmatpush.bf16.msra.mxu0 %v3549_v16  ;;  %v3698_v16 = vld [vmem:[%s4324_s9] ss:$0 sm:$0xff] }
 0x37a   : > { %1294 = vmatpush.bf16.msra.mxu0 %v3548_v17 }
 0x37e   : > { %1295 = vmatpush.bf16.msra.mxu0 %v3547_v18 }
 0x3e4   : > { %v1150_v20 = vpop.f32.mrf.mxu3 }
 0x3ec   : > { %v1152_v21 = vpop.f32.mrf.mxu3 }
 0x3ed   : > { %v1155_v22 = vpack.c.bf16 %v1152_v21, %v1150_v20 }
 0x3ef   : > { %1358 = vmatmul.bf16.vlgmr.msra.gmra.mxu1 %v1155_v22  ;;  %v3570_v22 = vld [vmem:[#allocation6 + $0x38] sm:$0xff] }
 0x3f0   : > { %1596 = vmatpush.bf16.msrb.mxu3 %v3570_v22  ;;  %v3604_v22 = vld [vmem:[#allocation2 + $0x284] sm:$0xf0] }
 0x3f4   : > { %v1234_v23 = vpop.f32.mrf.mxu3 }
 0x3fc   : > { %v1236_v25 = vpop.f32.mrf.mxu3 }
 0x3fd   : > { %v1239_v26 = vpack.c.bf16 %v1236_v25, %v1234_v23  ;;  %v3569_v23 = vld [vmem:[#allocation6 + $0x30] sm:$0xff]  ;;  %v3568_v25 = vld [vmem:[#allocation6 + $0x28] sm:$0xff] }
 0x3fe   : > { %1597 = vmatpush.bf16.msrb.mxu3 %v3569_v23  ;;  %v3601_v23 = vld [vmem:[#allocation2 + $0x274] sm:$0xf] }
 0x3ff   : > { %1296 = vmatmul.bf16.vlgmr.msra.gmra.mxu0 %v1239_v26  ;;  %v3567_v26 = vld [vmem:[#allocation6 + $0x20] sm:$0xff] }
 0x402   : > { %1598 = vmatpush.bf16.msrb.mxu3 %v3568_v25 }
 0x406   : > { %1599 = vmatpush.bf16.msrb.mxu3 %v3567_v26  ;;  %v3282_v26 = vld [vmem:[#allocation2 + $0x288] sm:$0xf0] }
 0x46c   : > { %v1359_v27 = vpop.f32.mrf.mxu1 }
 0x474   : > { %v1361_v33 = vpop.f32.mrf.mxu1 }
 0x47c   : > { %v1297_v29 = vpop.f32.mrf.mxu0 }
 0x47d   : > { %v1360_v30 = vadd.f32 %v1359_v27, %v1297_v29  ;;  %v3566_v27 = vld [vmem:[#allocation6 + $0x18] sm:$0xff]  ;;  %v3564_v29 = vld [vmem:[#allocation6 + $0x8] sm:$0xff] }
 0x47e   : > { %1600 = vmatpush.bf16.msrb.mxu3 %v3566_v27  ;;  %v3285_v27 = vor.u32 %v3601_v23, %v3282_v26  ;;  %v3242_v26 = vld [vmem:[#allocation2 + $0x230] sm:$0xf0] }
 0x47f   : > { %v1368_v31 = vadd.f32 %v3696_v28, %v1360_v30  ;;  %v3699_v30 = vld [vmem:[%s4326_s11] ss:$0 sm:$0xff] }
 0x481   : > { %v1370_v32 = vadd.f32 %v1368_v31, %v4049_v62  ;;  %v3563_v31 = vld [vmem:[#allocation6] sm:$0xff] }
 0x483   : > { %1374 = vadd.xlane.f32.xlu0 %v1370_v32 }
 0x484   : > { %v1299_v34 = vpop.f32.mrf.mxu0 }
 0x485   : > { %v1362_v35 = vadd.f32 %v1361_v33, %v1299_v34 }
 0x487   : > { %v1369_v36 = vadd.f32 %v3696_v28, %v1362_v35  ;;  %v3565_v28 = vld [vmem:[#allocation6 + $0x10] sm:$0xff] }
 0x488   : > { %1601 = vmatpush.bf16.msrb.mxu3 %v3565_v28  ;;  %v3256_v28 = vld [vmem:[#allocation2 + $0x240] sm:$0xf] }
 0x489   : > { %v1371_v37 = vadd.f32 %v1369_v36, %v4051_v63  ;;  %v3561_v63 = vld [vmem:[#allocation4 + $0x30] sm:$0xff] }
 0x48a   : > { %1496 = vmatpush.bf16.msrb.mxu2 %v3561_v63 }
 0x48b   : > { %1376 = vadd.xlane.f32.xlu1 %v1371_v37 }
 0x48c   : > { %1602 = vmatpush.bf16.msrb.mxu3 %v3564_v29  ;;  %v3598_v29 = vld [vmem:[#allocation2 + $0x254] sm:$0xf0] }
 0x48e   : > { %1497 = vmatpush.bf16.msrb.mxu2 %v3560_v49 }
 0x490   : > { %1603 = vmatpush.bf16.msrb.mxu3 %v3563_v31  ;;  %v3257_v31 = vor.u32 %v3598_v29, %v3256_v28  ;;  %v3618_v29 = vld [vmem:[#allocation2 + $0x2f4] sm:$0xf0] }
 0x492   : > { %1498 = vmatpush.bf16.msrb.mxu2 %v3559_v50 }
 0x496   : > { %1499 = vmatpush.bf16.msrb.mxu2 %v3558_v51 }
 0x49a   : > { %1500 = vmatpush.bf16.msrb.mxu2 %v3557_v52 }
 0x49e   : > { %1501 = vmatpush.bf16.msrb.mxu2 %v3556_v53 }
 0x4a2   : > { %1502 = vmatpush.bf16.msrb.mxu2 %v3555_v55 }
 0x4f6   : > { %v1375_v38 = vpop.xlane.xlu0 %1374 }
 0x4f7   : > { %v1378_v39 = vmul.f32 0.03125, %v1375_v38 }
 0x4f9   : > { %v1380_v40 = vsub.f32 %v1370_v32, %v1378_v39 }
 0x4fb   : > { %v1382_v41 = vsel %vm594_vm0, %v1380_v40, 0.0 }
 0x4fc   : > { %v1384_v43 = vmul.f32 %v1382_v41, %v1382_v41 }
 0x4fe   : > { %1386 = vadd.xlane.f32.xlu2 %v1384_v43  ;;  %v1377_v44 = vpop.xlane.xlu1 %1376 }
 0x4ff   : > { %v1379_v45 = vmul.f32 0.03125, %v1377_v44 }
 0x501   : > { %v1381_v46 = vsub.f32 %v1371_v37, %v1379_v45 }
 0x503   : > { %v1383_v62 = vsel %vm594_vm0, %v1381_v46, 0.0 }
 0x504   : > { %v1385_v47 = vmul.f32 %v1383_v62, %v1383_v62 }
 0x506   : > { %1388 = vadd.xlane.f32.xlu0 %v1385_v47 }
 0x571   : > { %v1387_v54 = vpop.xlane.xlu2 %1386 }
 0x572   : > { %v1390_v56 = vmul.f32 0.03125, %v1387_v54  ;;  %v3700_v54 = vld [vmem:[%s4328_s13] ss:$0 sm:$0xff] }
 0x574   : > { %v1392_v57 = vadd.f32 1e-12, %v1390_v56 }
 0x576   : > { %3730 = vrsqrt.f32 %v1392_v57  ;;  %vm1400_vm11 = vweird.f32 %v1392_v57 }
 0x579   : > { %v1389_v58 = vpop.xlane.xlu0 %1388 }
 0x57a   : > { %v1391_v59 = vmul.f32 0.03125, %v1389_v58 }
 0x57c   : > { %v3731_v60 = vpop.eup %3730  ;;  %v1393_v61 = vadd.f32 1e-12, %v1391_v59 }
 0x57d   : > { %v1395_v0 = vmul.f32 %v3731_v60, %v1392_v57  ;;  %vm1401_vm10 = vweird.f32 %v3731_v60 }
 0x57e   : > { %3732 = vrsqrt.f32 %v1393_v61  ;;  %vm1402_vm12 = vmor %vm1400_vm11, %vm1401_vm10  ;;  %vm1410_vm14 = vweird.f32 %v1393_v61 }
 0x57f   : > { %v1396_v19 = vmul.f32 %v3731_v60, %v1395_v0  ;;  %v3616_v0 = vld [vmem:[#allocation2 + $0x2e4] sm:$0xf0] }
 0x581   : > { %v1397_v1 = vmul.f32 0.5, %v1396_v19  ;;  %v3613_v19 = vld [vmem:[#allocation2 + $0x2d4] sm:$0xf] }
 0x583   : > { %v1398_v24 = vsub.f32 1.5, %v1397_v1 }
 0x584   : > { %v3733_v2 = vpop.eup %3732 }
 0x585   : > { %v1399_v3 = vmul.f32 %v3731_v60, %v1398_v24  ;;  %v1405_v4 = vmul.f32 %v3733_v2, %v1393_v61  ;;  %vm1411_vm13 = vweird.f32 %v3733_v2  ;;  %v3328_v61 = vld [vmem:[#allocation2 + $0x2d0] sm:$0xf]  ;;  %v3330_v24 = vld [vmem:[#allocation2 + $0x2e8] sm:$0xf0] }
 0x586   : > { %vm1412_vm15 = vmor %vm1410_vm14, %vm1411_vm13  ;;  %v3329_v1 = vor.u32 %v3616_v0, %v3328_v61  ;;  %v3290_v61 = vld [vmem:[#allocation2 + $0x290] sm:$0xf0] }
 0x587   : > { %v1406_v5 = vmul.f32 %v3733_v2, %v1405_v4  ;;  %v1403_v7 = vsel %vm1402_vm12, %v3731_v60, %v1399_v3  ;;  %v3610_v3 = vld [vmem:[#allocation2 + $0x2b4] sm:$0xf0]  ;;  %v3333_v4 = vor.u32 %v3613_v19, %v3330_v24  ;;  %v3184_v19 = vld [vmem:[#allocation2 + $0x1b0] sm:$0xf]  ;;  %v3577_v24 = vld [vmem:[#allocation2 + $0x1b4] sm:$0xf] }
 0x588   : > { %v1414_v11 = vmul.f32 %v1403_v7, %v1382_v41  ;;  %v3306_v7 = vld [vmem:[#allocation2 + $0x2b8] sm:$0xf0]  ;;  %2004 = vmatpush.bf16.msrb.mxu0 %v3329_v1  ;;  %v3580_v1 = vld [vmem:[#allocation2 + $0x1c4] sm:$0xf0] }
 0x589   : > { %v1407_v8 = vmul.f32 0.5, %v1406_v5  ;;  %v3607_v5 = vld [vmem:[#allocation2 + $0x2a4] sm:$0xf]  ;;  %2018 = vmatpush.bf16.msrb.mxu1 %v3333_v4  ;;  %v3264_v4 = vld [vmem:[#allocation2 + $0x248] sm:$0xf] }
 0x58a   : > { %v1419_v14 = vmul.f32 %v3697_v12, %v1414_v11 }
 0x58b   : > { %v1408_v10 = vsub.f32 1.5, %v1407_v8 }
 0x58c   : > { %v1424_v18 = vadd.f32 %v3698_v16, %v1419_v14 }
 0x58d   : > { %v1409_v6 = vmul.f32 %v3733_v2, %v1408_v10  ;;  %v3309_v10 = vor.u32 %v3607_v5, %v3306_v7  ;;  %v3599_v5 = vld [vmem:[#allocation2 + $0x25c] sm:$0xf0] }
 0x58f   : > { %v1413_v9 = vsel %vm1412_vm15, %v3733_v2, %v1409_v6  ;;  %v3304_v2 = vld [vmem:[#allocation2 + $0x2a0] sm:$0xf]  ;;  %2019 = vmatpush.bf16.msrb.mxu1 %v3309_v10  ;;  %v3596_v10 = vld [vmem:[#allocation2 + $0x24c] sm:$0xf] }
 0x590   : > { %v1415_v13 = vmul.f32 %v1413_v9, %v1383_v62  ;;  %v3305_v8 = vor.u32 %v3610_v3, %v3304_v2  ;;  %v3185_v2 = vor.u32 %v3580_v1, %v3184_v19  ;;  %v3186_v3 = vld [vmem:[#allocation2 + $0x1c8] sm:$0xf0]  ;;  %v3170_v19 = vld [vmem:[#allocation2 + $0x1a0] sm:$0xf0]  ;;  %v3272_v1 = vld [vmem:[#allocation2 + $0x250] sm:$0xf] }
 0x591   : > { %v3189_v7 = vor.u32 %v3577_v24, %v3186_v3  ;;  %v3600_v3 = vld [vmem:[#allocation2 + $0x264] sm:$0xf0] }
 0x592   : > { %v1420_v17 = vmul.f32 %v3697_v12, %v1415_v13  ;;  %2005 = vmatpush.bf16.msrb.mxu0 %v3305_v8  ;;  %v3265_v8 = vor.u32 %v3599_v5, %v3264_v4  ;;  %v3597_v4 = vld [vmem:[#allocation2 + $0x254] sm:$0xf]  ;;  %v3273_v5 = vor.u32 %v3600_v3, %v3272_v1 }
 0x593   : > { %2020 = vmatpush.bf16.msrb.mxu1 %v3285_v27  ;;  %v3344_v27 = vld [vmem:[#allocation2 + $0x2e0] sm:$0xf] }
 0x594   : > { %v1425_v20 = vadd.f32 %v3698_v16, %v1420_v17 }
 0x596   : > { %v1442_v21 = vpack.c.bf16 %v1425_v20, %v1424_v18 }
 0x598   : > { %1503 = vmatmul.bf16.vlgmr.msrb.gmra.mxu2 %v1442_v21  ;;  %v3280_v21 = vld [vmem:[#allocation2 + $0x270] sm:$0xf] }
 0x599   : > { %v3281_v25 = vor.u32 %v3604_v22, %v3280_v21  ;;  %v3593_v21 = vld [vmem:[#allocation2 + $0x22c] sm:$0xf0] }
 0x59b   : > { %2006 = vmatpush.bf16.msrb.mxu0 %v3281_v25  ;;  %v3590_v25 = vld [vmem:[#allocation2 + $0x21c] sm:$0xf] }
 0x59c   : > { %v3245_v28 = vor.u32 %v3590_v25, %v3242_v26 }
 0x59f   : > { %2007 = vmatpush.bf16.msrb.mxu0 %v3257_v31  ;;  %v3346_v31 = vld [vmem:[#allocation2 + $0x2f8] sm:$0xf0] }
 0x61b   : > { %v1504_v32 = vpop.f32.mrf.mxu2 }
 0x61c   : > { %v1505_v33 = vadd.f32 %v3699_v30, %v1504_v32  ;;  %v3258_v32 = vld [vmem:[#allocation2 + $0x258] sm:$0xf0] }
 0x61e   : > { %v1509_v34 = vmul.f32 %v1505_v33, %v1505_v33 }
 0x620   : > { %v1511_v35 = vmul.f32 %v1509_v34, %v1505_v33  ;;  %v3617_v34 = vld [vmem:[#allocation2 + $0x2ec] sm:$0xf0] }
 0x622   : > { %v1513_v36 = vmul.f32 0.044715, %v1511_v35 }
 0x623   : > { %v1506_v37 = vpop.f32.mrf.mxu2 }
 0x624   : > { %v1515_v38 = vadd.f32 %v1513_v36, %v1505_v33  ;;  %v1507_v39 = vadd.f32 %v3699_v30, %v1506_v37  ;;  %v3595_v30 = vld [vmem:[#allocation2 + $0x244] sm:$0xf]  ;;  %v3614_v37 = vld [vmem:[#allocation2 + $0x2dc] sm:$0xf] }
 0x625   : > { %v3261_v35 = vor.u32 %v3595_v30, %v3258_v32  ;;  %v3615_v30 = vld [vmem:[#allocation2 + $0x2e4] sm:$0xf]  ;;  %v3345_v32 = vor.u32 %v3618_v29, %v3344_v27  ;;  %v3200_v29 = vld [vmem:[#allocation2 + $0x1c0] sm:$0xf] }
 0x626   : > { %v1517_v40 = vmul.f32 0.7978846, %v1515_v38  ;;  %v1510_v41 = vmul.f32 %v1507_v39, %v1507_v39  ;;  %v3338_v38 = vld [vmem:[#allocation2 + $0x2f0] sm:$0xf0] }
 0x627   : > { %2021 = vmatpush.bf16.msrb.mxu1 %v3261_v35  ;;  %v3587_v35 = vld [vmem:[#allocation2 + $0x1fc] sm:$0xf0] }
 0x628   : > { %v1512_v43 = vmul.f32 %v1510_v41, %v1507_v39  ;;  %3734 = vtanh.f32 %v1517_v40  ;;  %v3232_v40 = vld [vmem:[#allocation2 + $0x210] sm:$0xf]  ;;  %v3592_v41 = vld [vmem:[#allocation2 + $0x224] sm:$0xf0] }
 0x62a   : > { %v1514_v44 = vmul.f32 0.044715, %v1512_v43  ;;  %v3589_v43 = vld [vmem:[#allocation2 + $0x214] sm:$0xf] }
 0x62c   : > { %v1516_v45 = vadd.f32 %v1514_v44, %v1507_v39  ;;  %v3233_v44 = vor.u32 %v3592_v41, %v3232_v40  ;;  %v3612_v40 = vld [vmem:[#allocation2 + $0x2c4] sm:$0xf0] }
 0x62e   : > { %v1518_v46 = vmul.f32 0.7978846, %v1516_v45  ;;  %v3735_v62 = vpop.eup %3734  ;;  %v3234_v45 = vld [vmem:[#allocation2 + $0x228] sm:$0xf0]  ;;  %2008 = vmatpush.bf16.msrb.mxu0 %v3233_v44  ;;  %v3609_v44 = vld [vmem:[#allocation2 + $0x2b4] sm:$0xf] }
 0x62f   : > { %v1521_v47 = vadd.f32 1.0, %v3735_v62  ;;  %v3611_v62 = vld [vmem:[#allocation2 + $0x2bc] sm:$0xf0] }
 0x630   : > { %3736 = vtanh.f32 %v1518_v46  ;;  %v3312_v46 = vld [vmem:[#allocation2 + $0x2a8] sm:$0xf] }
 0x631   : > { %v1523_v63 = vmul.f32 0.5, %v1521_v47  ;;  %v3237_v47 = vor.u32 %v3589_v43, %v3234_v45  ;;  %v3322_v45 = vld [vmem:[#allocation2 + $0x2c8] sm:$0xf0] }
 0x633   : > { %v1525_v51 = vmul.f32 %v1523_v63, %v1505_v33  ;;  %v3336_v33 = vld [vmem:[#allocation2 + $0x2d8] sm:$0xf]  ;;  %v3608_v63 = vld [vmem:[#allocation2 + $0x2ac] sm:$0xf]  ;;  %2022 = vmatpush.bf16.msrb.mxu1 %v3237_v47  ;;  %v3581_v47 = vld [vmem:[#allocation2 + $0x1cc] sm:$0xf0] }
 0x634   : > { %v3337_v36 = vor.u32 %v3617_v34, %v3336_v33  ;;  %v3349_v33 = vor.u32 %v3615_v30, %v3346_v31  ;;  %v3216_v34 = vld [vmem:[#allocation2 + $0x1e8] sm:$0xf]  ;;  %v3582_v30 = vld [vmem:[#allocation2 + $0x1d4] sm:$0xf0] }
 0x636   : > { %v3737_v48 = vpop.eup %3736  ;;  %2032 = vmatpush.bf16.msra.mxu2 %v3337_v36  ;;  %v3584_v36 = vld [vmem:[#allocation2 + $0x1ec] sm:$0xf] }
 0x637   : > { %v1522_v49 = vadd.f32 1.0, %v3737_v48  ;;  %v3313_v48 = vor.u32 %v3611_v62, %v3312_v46  ;;  %v3325_v46 = vor.u32 %v3609_v44, %v3322_v45  ;;  %v3192_v62 = vld [vmem:[#allocation2 + $0x1b8] sm:$0xf] }
 0x639   : > { %v1524_v50 = vmul.f32 0.5, %v1522_v49  ;;  %v3314_v49 = vld [vmem:[#allocation2 + $0x2c0] sm:$0xf0] }
 0x63a   : > { %2033 = vmatpush.bf16.msra.mxu2 %v3313_v48  ;;  %v3578_v48 = vld [vmem:[#allocation2 + $0x1bc] sm:$0xf] }
 0x63b   : > { %v1526_v52 = vmul.f32 %v1524_v50, %v1507_v39  ;;  %v3341_v39 = vor.u32 %v3614_v37, %v3338_v38  ;;  %v3317_v50 = vor.u32 %v3608_v63, %v3314_v49  ;;  %v3217_v37 = vor.u32 %v3587_v35, %v3216_v34  ;;  %v3218_v38 = vld [vmem:[#allocation2 + $0x200] sm:$0xf0]  ;;  %v3194_v49 = vld [vmem:[#allocation2 + $0x1d0] sm:$0xf0] }
 0x63c   : > { %v3221_v41 = vor.u32 %v3584_v36, %v3218_v38  ;;  %v3193_v63 = vor.u32 %v3581_v47, %v3192_v62  ;;  %v3201_v35 = vor.u32 %v3582_v30, %v3200_v29  ;;  %v3576_v38 = vld [vmem:[#allocation2 + $0x1a4] sm:$0xf0] }
 0x63d   : > { %v1543_v53 = vpack.c.bf16 %v1526_v52, %v1525_v51  ;;  %2046 = vmatpush.bf16.msra.mxu3 %v3341_v39  ;;  %v3208_v51 = vld [vmem:[#allocation2 + $0x1e0] sm:$0xf]  ;;  %v3586_v52 = vld [vmem:[#allocation2 + $0x1f4] sm:$0xf0]  ;;  %v3320_v39 = vld [vmem:[#allocation2 + $0x2b0] sm:$0xf] }
 0x63e   : > { %v3321_v43 = vor.u32 %v3612_v40, %v3320_v39  ;;  %v3573_v40 = vld [vmem:[#allocation2 + $0x194] sm:$0xf] }
 0x63f   : > { %1604 = vmatmul.bf16.vlgmr.msrb.gmra.mxu3 %v1543_v53  ;;  %v3583_v53 = vld [vmem:[#allocation2 + $0x1e4] sm:$0xf] }
 0x641   : > { %2047 = vmatpush.bf16.msra.mxu3 %v3317_v50  ;;  %v3296_v50 = vld [vmem:[#allocation2 + $0x280] sm:$0xf] }
 0x6c2   : > { %v1605_v55 = vpop.f32.mrf.mxu3 }
 0x6c3   : > { %v1606_v56 = vadd.f32 %v3700_v54, %v1605_v55  ;;  %v3210_v55 = vld [vmem:[#allocation2 + $0x1f8] sm:$0xf0] }
 0x6c5   : > { %v1610_v57 = vadd.f32 %v1606_v56, %v1424_v18  ;;  %v3288_v56 = vld [vmem:[#allocation2 + $0x278] sm:$0xf] }
 0x6c7   : > { %1614 = vadd.xlane.f32.xlu1 %v1610_v57 }
 0x6ca   : > { %v1607_v58 = vpop.f32.mrf.mxu3 }
 0x6cb   : > { %v1608_v59 = vadd.f32 %v3700_v54, %v1607_v58  ;;  %v3209_v54 = vor.u32 %v3586_v52, %v3208_v51  ;;  %v3213_v58 = vor.u32 %v3583_v53, %v3210_v55  ;;  %v3606_v51 = vld [vmem:[#allocation2 + $0x294] sm:$0xf0]  ;;  %v3197_v52 = vor.u32 %v3578_v48, %v3194_v49  ;;  %v3298_v55 = vld [vmem:[#allocation2 + $0x298] sm:$0xf0] }
 0x6cc   : > { %v3297_v53 = vor.u32 %v3606_v51, %v3296_v50  ;;  %v3701_v51 = vld [vmem:[%s4329_s14] ss:$0 sm:$0xff] }
 0x6cd   : > { %v1611_v60 = vadd.f32 %v1608_v59, %v1425_v20  ;;  %2009 = vmatpush.bf16.msrb.mxu0 %v3209_v54  ;;  %2023 = vmatpush.bf16.msrb.mxu1 %v3213_v58  ;;  %v3603_v54 = vld [vmem:[#allocation2 + $0x284] sm:$0xf] }
 0x6cf   : > { %1616 = vadd.xlane.f32.xlu2 %v1611_v60 }
 0x6d1   : > { %2010 = vmatpush.bf16.msrb.mxu0 %v3185_v2  ;;  %2024 = vmatpush.bf16.msrb.mxu1 %v3189_v7  ;;  %v3274_v7 = vld [vmem:[#allocation2 + $0x268] sm:$0xf0] }
 0x73a   : > { %v1615_v11 = vpop.xlane.xlu1 %1614 }
 0x73b   : > { %v1618_v12 = vmul.f32 0.03125, %v1615_v11  ;;  %v3266_v11 = vld [vmem:[#allocation2 + $0x260] sm:$0xf0] }
 0x73d   : > { %v1620_v6 = vsub.f32 %v1610_v57, %v1618_v12  ;;  %v3605_v57 = vld [vmem:[#allocation2 + $0x28c] sm:$0xf0]  ;;  %v3269_v12 = vor.u32 %v3596_v10, %v3266_v11  ;;  %v3248_v10 = vld [vmem:[#allocation2 + $0x220] sm:$0xf]  ;;  %v3594_v11 = vld [vmem:[#allocation2 + $0x234] sm:$0xf0] }
 0x73e   : > { %v3289_v59 = vor.u32 %v3605_v57, %v3288_v56  ;;  %v3301_v57 = vor.u32 %v3603_v54, %v3298_v55  ;;  %v3702_v55 = vld [vmem:[%s4330_s15] ss:$0 sm:$0xff] }
 0x73f   : > { %v4171_v9 = vsel %vm594_vm0, %v1620_v6, 0.0  ;;  %v3160_v6 = vld [vmem:[#allocation2 + $0x180] sm:$0xf] }
 0x740   : > { %v1624_v13 = vmul.f32 %v4171_v9, %v4171_v9  ;;  %2034 = vmatpush.bf16.msra.mxu2 %v3289_v59  ;;  %v3168_v59 = vld [vmem:[#allocation2 + $0x188] sm:$0xf] }
 0x742   : > { %v1617_v14 = vpop.xlane.xlu2 %1616  ;;  %1626 = vadd.xlane.f32.xlu0 %v1624_v13  ;;  %v3574_v13 = vld [vmem:[#allocation2 + $0x194] sm:$0xf0] }
 0x743   : > { %v1619_v16 = vmul.f32 0.03125, %v1617_v14  ;;  %v3571_v14 = vld [vmem:[#allocation2 + $0x184] sm:$0xf] }
 0x744   : > { %2035 = vmatpush.bf16.msra.mxu2 %v3265_v8  ;;  %v3277_v8 = vor.u32 %v3597_v4, %v3274_v7 }
 0x745   : > { %v1621_v17 = vsub.f32 %v1611_v60, %v1619_v16  ;;  %v3602_v60 = vld [vmem:[#allocation2 + $0x27c] sm:$0xf]  ;;  %v3161_v16 = vor.u32 %v3574_v13, %v3160_v6  ;;  %v3249_v6 = vor.u32 %v3594_v11, %v3248_v10 }
 0x746   : > { %v3293_v0 = vor.u32 %v3602_v60, %v3290_v61  ;;  %v3575_v60 = vld [vmem:[#allocation2 + $0x19c] sm:$0xf0]  ;;  %v3250_v13 = vld [vmem:[#allocation2 + $0x238] sm:$0xf0] }
 0x747   : > { %v4177_v18 = vsel %vm594_vm0, %v1621_v17, 0.0  ;;  %v3162_v17 = vld [vmem:[#allocation2 + $0x198] sm:$0xf0]  ;;  %2011 = vmatpush.bf16.msrb.mxu0 %v3161_v16  ;;  %v3169_v61 = vor.u32 %v3575_v60, %v3168_v59 }
 0x748   : > { %v1625_v20 = vmul.f32 %v4177_v18, %v4177_v18  ;;  %2048 = vmatpush.bf16.msra.mxu3 %v3293_v0  ;;  %v3165_v22 = vor.u32 %v3571_v14, %v3162_v17  ;;  %v3572_v0 = vld [vmem:[#allocation2 + $0x18c] sm:$0xf]  ;;  %v3224_v17 = vld [vmem:[#allocation2 + $0x1f0] sm:$0xf] }
 0x749   : > { %v3173_v2 = vor.u32 %v3572_v0, %v3170_v19 }
 0x74a   : > { %1628 = vadd.xlane.f32.xlu1 %v1625_v20  ;;  %v3240_v20 = vld [vmem:[#allocation2 + $0x218] sm:$0xf]  ;;  %2025 = vmatpush.bf16.msrb.mxu1 %v3165_v22 }
 0x74b   : > { %v3241_v23 = vor.u32 %v3593_v21, %v3240_v20  ;;  %2060 = vmatpush.bf16.msra.mxu0 %v3345_v32  ;;  %v3588_v20 = vld [vmem:[#allocation2 + $0x204] sm:$0xf0]  ;;  %v3585_v21 = vld [vmem:[#allocation2 + $0x1f4] sm:$0xf]  ;;  %v3579_v32 = vld [vmem:[#allocation2 + $0x1c4] sm:$0xf] }
 0x74c   : > { %2049 = vmatpush.bf16.msra.mxu3 %v3269_v12  ;;  %v3591_v12 = vld [vmem:[#allocation2 + $0x224] sm:$0xf]  ;;  %v3225_v25 = vor.u32 %v3588_v20, %v3224_v17 }
 0x74d   : > { %2036 = vmatpush.bf16.msra.mxu2 %v3241_v23  ;;  %v3253_v16 = vor.u32 %v3591_v12, %v3250_v13  ;;  %v3226_v23 = vld [vmem:[#allocation2 + $0x208] sm:$0xf0] }
 0x74e   : > { %2074 = vmatpush.bf16.msra.mxu1 %v3349_v33  ;;  %v3202_v33 = vld [vmem:[#allocation2 + $0x1d8] sm:$0xf0] }
 0x74f   : > { %2061 = vmatpush.bf16.msra.mxu0 %v3321_v43  ;;  %v3205_v36 = vor.u32 %v3579_v32, %v3202_v33 }
 0x750   : > { %2050 = vmatpush.bf16.msra.mxu3 %v3245_v28  ;;  %v3229_v28 = vor.u32 %v3585_v21, %v3226_v23 }
 0x751   : > { %2037 = vmatpush.bf16.msra.mxu2 %v3217_v37  ;;  %v3176_v37 = vld [vmem:[#allocation2 + $0x190] sm:$0xf] }
 0x752   : > { %2075 = vmatpush.bf16.msra.mxu1 %v3325_v46  ;;  %v3177_v44 = vor.u32 %v3576_v38, %v3176_v37 }
 0x753   : > { %2062 = vmatpush.bf16.msra.mxu0 %v3297_v53 }
 0x754   : > { %2051 = vmatpush.bf16.msra.mxu3 %v3221_v41  ;;  %v3178_v41 = vld [vmem:[#allocation2 + $0x1a8] sm:$0xf0] }
 0x755   : > { %2038 = vmatpush.bf16.msra.mxu2 %v3193_v63  ;;  %v3181_v46 = vor.u32 %v3573_v40, %v3178_v41 }
 0x756   : > { %2076 = vmatpush.bf16.msra.mxu1 %v3301_v57 }
 0x757   : > { %2063 = vmatpush.bf16.msra.mxu0 %v3273_v5 }
 0x758   : > { %2052 = vmatpush.bf16.msra.mxu3 %v3197_v52 }
 0x759   : > { %2039 = vmatpush.bf16.msra.mxu2 %v3169_v61 }
 0x75a   : > { %2077 = vmatpush.bf16.msra.mxu1 %v3277_v8 }
 0x75b   : > { %2064 = vmatpush.bf16.msra.mxu0 %v3249_v6 }
 0x75c   : > { %2053 = vmatpush.bf16.msra.mxu3 %v3173_v2 }
 0x75e   : > { %2078 = vmatpush.bf16.msra.mxu1 %v3253_v16 }
 0x75f   : > { %2065 = vmatpush.bf16.msra.mxu0 %v3225_v25 }
 0x762   : > { %2079 = vmatpush.bf16.msra.mxu1 %v3229_v28 }
 0x763   : > { %2066 = vmatpush.bf16.msra.mxu0 %v3201_v35 }
 0x766   : > { %2080 = vmatpush.bf16.msra.mxu1 %v3205_v36 }
 0x767   : > { %2067 = vmatpush.bf16.msra.mxu0 %v3177_v44 }
 0x76a   : > { %2081 = vmatpush.bf16.msra.mxu1 %v3181_v46 }
 0x7b5   : > { %v1627_v56 = vpop.xlane.xlu0 %1626 }
 0x7b6   : > { %v1630_v58 = vmul.f32 0.03125, %v1627_v56 }
 0x7b8   : > { %v1632_v24 = vadd.f32 1e-12, %v1630_v58 }
 0x7ba   : > { %3738 = vrsqrt.f32 %v1632_v24  ;;  %vm1640_vm2 = vweird.f32 %v1632_v24 }
 0x7bd   : > { %v1629_v14 = vpop.xlane.xlu1 %1628 }
 0x7be   : > { %v1631_v22 = vmul.f32 0.03125, %v1629_v14 }
 0x7c0   : > { %v3739_v26 = vpop.eup %3738  ;;  %v1633_v27 = vadd.f32 1e-12, %v1631_v22 }
 0x7c1   : > { %v1635_v31 = vmul.f32 %v3739_v26, %v1632_v24  ;;  %vm1641_vm1 = vweird.f32 %v3739_v26 }
 0x7c2   : > { %3740 = vrsqrt.f32 %v1633_v27  ;;  %vm1642_vm3 = vmor %vm1640_vm2, %vm1641_vm1  ;;  %vm1650_vm5 = vweird.f32 %v1633_v27 }
 0x7c3   : > { %v1636_v34 = vmul.f32 %v3739_v26, %v1635_v31 }
 0x7c5   : > { %v1637_v39 = vmul.f32 0.5, %v1636_v34 }
 0x7c7   : > { %v1638_v43 = vsub.f32 1.5, %v1637_v39 }
 0x7c8   : > { %v3741_v45 = vpop.eup %3740 }
 0x7c9   : > { %v1639_v62 = vmul.f32 %v3739_v26, %v1638_v43  ;;  %v1645_v47 = vmul.f32 %v3741_v45, %v1633_v27  ;;  %vm1651_vm4 = vweird.f32 %v3741_v45 }
 0x7ca   : > { %vm1652_vm6 = vmor %vm1650_vm5, %vm1651_vm4 }
 0x7cb   : > { %v1646_v48 = vmul.f32 %v3741_v45, %v1645_v47  ;;  %v1643_v63 = vsel %vm1642_vm3, %v3739_v26, %v1639_v62 }
 0x7cc   : > { %v1654_v52 = vmul.f32 %v1643_v63, %v4171_v9 }
 0x7cd   : > { %v1647_v49 = vmul.f32 0.5, %v1646_v48 }
 0x7ce   : > { %v1659_v56 = vmul.f32 %v3701_v51, %v1654_v52 }
 0x7cf   : > { %v1648_v50 = vsub.f32 1.5, %v1647_v49 }
 0x7d0   : > { %v4189_v59 = vadd.f32 %v3702_v55, %v1659_v56 }
 0x7d1   : > { %v1649_v53 = vmul.f32 %v3741_v45, %v1648_v50 }
 0x7d3   : > { %v1653_v54 = vsel %vm1652_vm6, %v3741_v45, %v1649_v53 }
 0x7d4   : > { %v1655_v57 = vmul.f32 %v1653_v54, %v4177_v18  ;;  %v3125_v18 = vld [vmem:[%s4320_s5 + $0x6] sm:$0x3f] }
 0x7d5   : > { %v1753_v19 = vperm.slane %v3125_v18, 1  ;;  %v1752_v7 = vperm.slane %v3125_v18, 0  ;;  %v1754_v8 = vperm.slane %v3125_v18, 2  ;;  %v1756_v22 = vperm.slane %v3125_v18, 4 }
 0x7d6   : > { %v1660_v58 = vmul.f32 %v3701_v51, %v1655_v57  ;;  %v1757_v23 = vperm.slane %v3125_v18, 5  ;;  %v1755_v34 = vperm.slane %v3125_v18, 3 }
 0x7d8   : > { %v4191_v60 = vadd.f32 %v3702_v55, %v1660_v58 }
 0x7da   : > { %v1750_v61 = vpack.c.bf16 %v4191_v60, %v4189_v59 }
 0x7dc   : > { %2012 = vmatmul.bf16.vlgmr.msrb.gmra.mxu0 %v1750_v61  ;;  %2026 = vmatmul.bf16.vlgmr.msrb.gmra.mxu1 %v1750_v61 }
 0x7dd   : > { %2040 = vmatmul.bf16.vlgmr.msra.gmra.mxu2 %v1750_v61  ;;  %2054 = vmatmul.bf16.vlgmr.msra.gmra.mxu3 %v1750_v61 }
 0x7ec   : > { %2068 = vmatmul.bf16.vlgmr.msra.gmra.mxu0 %v1750_v61  ;;  %2082 = vmatmul.bf16.vlgmr.msra.gmra.mxu1 %v1750_v61 }
 0x859   : > { %v2013_v9 = vpop.f32.mrf.mxu0  ;;  %v2027_v0 = vpop.f32.mrf.mxu1 }
 0x85a   : > { %v2028_v3 = vadd.f32 %v2027_v0, %v1753_v19  ;;  %v2014_v12 = vadd.f32 %v2013_v9, %v1752_v7 }
 0x860   : > { %v2041_v1 = vpop.f32.mrf.mxu2  ;;  %v2055_v17 = vpop.f32.mrf.mxu3 }
 0x861   : > { %v2015_v24 = vpop.f32.mrf.mxu0  ;;  %v2029_v2 = vpop.f32.mrf.mxu1  ;;  %v2042_v6 = vadd.f32 %v2041_v1, %v1754_v8  ;;  %v2056_v36 = vadd.f32 %v2055_v17, %v1755_v34 }
 0x862   : > { %v2030_v4 = vadd.f32 %v2029_v2, %v1753_v19  ;;  %v2016_v10 = vadd.f32 %v2015_v24, %v1752_v7 }
 0x864   : > { %v2089_v5 = vpack.c.bf16 %v2030_v4, %v2028_v3  ;;  %v2088_v20 = vpack.c.bf16 %v2016_v10, %v2014_v12  ;;  %v3626_v12 = vld [vmem:[%s4321_s6 + $0xb8] sm:$0xff] }
 0x865   : > { %2366 = vmatpush.bf16.msrb.mxu1 %v3626_v12 }
 0x866   : > { %2098 = vmatpush.bf16.xpose.msrb.mxu2 %v2089_v5 }
 0x868   : > { %v2043_v11 = vpop.f32.mrf.mxu2  ;;  %v2057_v31 = vpop.f32.mrf.mxu3 }
 0x869   : > { %v2044_v13 = vadd.f32 %v2043_v11, %v1754_v8  ;;  %v2069_v14 = vpop.f32.mrf.mxu0  ;;  %v2083_v16 = vpop.f32.mrf.mxu1  ;;  %v2058_v35 = vadd.f32 %v2057_v31, %v1755_v34 }
 0x86a   : > { %v2070_v27 = vadd.f32 %v2069_v14, %v1756_v22  ;;  %v2084_v28 = vadd.f32 %v2083_v16, %v1757_v23 }
 0x86b   : > { %v2090_v21 = vpack.c.bf16 %v2044_v13, %v2042_v6  ;;  %v2172_v37 = vpack.c.bf16 %v2058_v35, %v2056_v36  ;;  %v3634_v13 = vld [vmem:[%s4321_s6 + $0xf8] sm:$0xff] }
 0x86c   : > { %2304 = vmatpush.bf16.msrb.mxu0 %v3634_v13 }
 0x86d   : > { %2164 = vmatpush.bf16.msrb.mxu3 %v2090_v21  ;;  %2099 = vmatmul.bf16.vlgmr.msrb.gmra.mxu2 %v2088_v20  ;;  %v3625_v20 = vld [vmem:[%s4321_s6 + $0xb0] sm:$0xff] }
 0x86e   : > { %2367 = vmatpush.bf16.msrb.mxu1 %v3625_v20  ;;  %v3703_v20 = vld [vmem:[%s4322_s7 + $0x1] ss:$0 sm:$0xff] }
 0x871   : > { %v2071_v25 = vpop.f32.mrf.mxu0  ;;  %v2085_v26 = vpop.f32.mrf.mxu1 }
 0x872   : > { %v2072_v29 = vadd.f32 %v2071_v25, %v1756_v22  ;;  %v2086_v30 = vadd.f32 %v2085_v26, %v1757_v23 }
 0x874   : > { %v2173_v32 = vpack.c.bf16 %v2072_v29, %v2070_v27  ;;  %v2174_v33 = vpack.c.bf16 %v2086_v30, %v2084_v28  ;;  %v3624_v29 = vld [vmem:[%s4321_s6 + $0xa8] sm:$0xff] }
 0x875   : > { %2368 = vmatpush.bf16.msrb.mxu1 %v3624_v29 }
 0x876   : > { %2182 = vmatpush.bf16.xpose.msra.mxu2 %v2173_v32  ;;  %2248 = vmatpush.bf16.msra.mxu3 %v2174_v33 }
 0x87d   : > { %2183 = vmatmul.bf16.vlgmr.msra.gmra.mxu2 %v2172_v37 }
 0x8f0   : > { %v2100_v38 = vpop.f32.mrf.mxu2 }
 0x8f1   : > { %v2101_v39 = vadd.f32 %v2100_v38, %v4062_v42  ;;  %v3623_v38 = vld [vmem:[%s4321_s6 + $0xa0] sm:$0xff] }
 0x8f2   : > { %2369 = vmatpush.bf16.msrb.mxu1 %v3623_v38 }
 0x8f3   : > { %v2105_v40 = vsel %vm1088_vm7, %v2101_v39, -inf }
 0x8f4   : > { %2106 = vmax.xlane.f32.xlu2 %v2105_v40 }
 0x8f8   : > { %v2102_v41 = vpop.f32.mrf.mxu2 }
 0x8f9   : > { %v2103_v43 = vadd.f32 %v2102_v41, %v4062_v42 }
 0x8fb   : > { %v2108_v44 = vsel %vm1088_vm7, %v2103_v43, -inf }
 0x8fc   : > { %2109 = vmax.xlane.f32.xlu0 %v2108_v44 }
 0x900   : > { %v2184_v45 = vpop.f32.mrf.mxu2 }
 0x901   : > { %v2185_v46 = vadd.f32 %v2184_v45, %v4062_v42 }
 0x903   : > { %v2189_v62 = vsel %vm1088_vm7, %v2185_v46, -inf }
 0x904   : > { %2190 = vmax.xlane.f32.xlu1 %v2189_v62 }
 0x908   : > { %v2186_v47 = vpop.f32.mrf.mxu2 }
 0x909   : > { %v2187_v48 = vadd.f32 %v2186_v47, %v4062_v42 }
 0x90b   : > { %v2192_v63 = vsel %vm1088_vm7, %v2187_v48, -inf }
 0x90c   : > { %2193 = vmax.xlane.f32.xlu2 %v2192_v63 }
 0x967   : > { %v2107_v49 = vpop.xlane.xlu2 %2106 }
 0x968   : > { %v2111_v50 = vsub.f32 %v2101_v39, %v2107_v49 }
 0x96a   : > { %v2113_v51 = vmul.f32 1.442695, %v2111_v50 }
 0x96c   : > { %3742 = vpow2.f32 %v2113_v51 }
 0x96f   : > { %v2110_v52 = vpop.xlane.xlu0 %2109 }
 0x970   : > { %v2112_v53 = vsub.f32 %v2103_v43, %v2110_v52 }
 0x972   : > { %v4206_v54 = vpop.eup %3742  ;;  %v2115_v55 = vmul.f32 1.442695, %v2112_v53 }
 0x973   : > { %v2117_v56 = vsel %vm1088_vm7, %v4206_v54, 0.0 }
 0x974   : > { %3744 = vpow2.f32 %v2115_v55  ;;  %2118 = vadd.xlane.f32.xlu0 %v2117_v56 }
 0x977   : > { %v2191_v57 = vpop.xlane.xlu1 %2190 }
 0x978   : > { %v2195_v58 = vsub.f32 %v2185_v46, %v2191_v57  ;;  %v3622_v46 = vld [vmem:[%s4321_s6 + $0x98] sm:$0xff] }
 0x979   : > { %2370 = vmatpush.bf16.msrb.mxu1 %v3622_v46  ;;  %v3636_v46 = vld [vmem:[#allocation4 + $0x48] sm:$0xff] }
 0x97a   : > { %v4210_v42 = vpop.eup %3744  ;;  %v2197_v61 = vmul.f32 1.442695, %v2195_v58 }
 0x97b   : > { %v2120_v9 = vsel %vm1088_vm7, %v4210_v42, 0.0 }
 0x97c   : > { %3746 = vpow2.f32 %v2197_v61  ;;  %2121 = vadd.xlane.f32.xlu1 %v2120_v9 }
 0x97f   : > { %v2194_v0 = vpop.xlane.xlu2 %2193 }
 0x980   : > { %v2196_v18 = vsub.f32 %v2187_v48, %v2194_v0 }
 0x982   : > { %v4214_v19 = vpop.eup %3746  ;;  %v2199_v1 = vmul.f32 1.442695, %v2196_v18 }
 0x983   : > { %v2201_v24 = vsel %vm1088_vm7, %v4214_v19, 0.0 }
 0x984   : > { %3748 = vpow2.f32 %v2199_v1  ;;  %2202 = vadd.xlane.f32.xlu2 %v2201_v24  ;;  %v3633_v1 = vld [vmem:[%s4321_s6 + $0xf0] sm:$0xff] }
 0x985   : > { %v3621_v24 = vld [vmem:[%s4321_s6 + $0x90] sm:$0xff]  ;;  %2305 = vmatpush.bf16.msrb.mxu0 %v3633_v1 }
 0x986   : > { %2371 = vmatpush.bf16.msrb.mxu1 %v3621_v24  ;;  %v3704_v24 = vld [vmem:[%s4323_s8 + $0x1] ss:$0 sm:$0xff] }
 0x98a   : > { %v4218_v2 = vpop.eup %3748 }
 0x98b   : > { %v2204_v3 = vsel %vm1088_vm7, %v4218_v2, 0.0 }
 0x98c   : > { %2205 = vadd.xlane.f32.xlu0 %v2204_v3  ;;  %v3632_v3 = vld [vmem:[%s4321_s6 + $0xe8] sm:$0xff] }
 0x98d   : > { %2306 = vmatpush.bf16.msrb.mxu0 %v3632_v3 }
 0x9e7   : > { %v2119_v4 = vpop.xlane.xlu0 %2118 }
 0x9e8   : > { %3750 = vrcp.f32 %v2119_v4  ;;  %v2134_v21 = vand.u32 2147483648, %v2119_v4  ;;  %vm2128_vm9 = vweird.f32 %v2119_v4  ;;  %v2132_v22 = vand.u32 2147483647, %v2119_v4 }
 0x9ea   : > { %v2135_v30 = vor.u32 1.1754944e-38, %v2134_v21  ;;  %vm2133_vm12 = vcmp.eq.f32.partialorder %v2132_v22, 8.507059e+37 }
 0x9ee   : > { %v3751_v5 = vpop.eup %3750 }
 0x9ef   : > { %v2124_v7 = vmul.f32 %v3751_v5, %v2119_v4  ;;  %v2122_v8 = vpop.xlane.xlu1 %2121  ;;  %vm2129_vm8 = vweird.f32 %v3751_v5  ;;  %v3619_v4 = vld [vmem:[%s4321_s6 + $0x80] sm:$0xff] }
 0x9f0   : > { %3752 = vrcp.f32 %v2122_v8  ;;  %vm2130_vm10 = vmor %vm2128_vm9, %vm2129_vm8  ;;  %v2148_v25 = vand.u32 2147483648, %v2122_v8  ;;  %v2146_v28 = vand.u32 2147483647, %v2122_v8  ;;  %vm2142_vm13 = vweird.f32 %v2122_v8 }
 0x9f1   : > { %v2125_v10 = vsub.f32 1.0, %v2124_v7  ;;  %v3629_v7 = vld [vmem:[%s4321_s6 + $0xd0] sm:$0xff] }
 0x9f2   : > { %v2149_v34 = vor.u32 1.1754944e-38, %v2148_v25  ;;  %vm2147_vm15 = vcmp.eq.f32.partialorder %v2146_v28, 8.507059e+37 }
 0x9f3   : > { %v2126_v11 = vmul.f32 %v3751_v5, %v2125_v10  ;;  %v3627_v10 = vld [vmem:[%s4321_s6 + $0xc0] sm:$0xff] }
 0x9f5   : > { %v2127_v14 = vadd.f32 %v3751_v5, %v2126_v11 }
 0x9f6   : > { %v3753_v6 = vpop.eup %3752 }
 0x9f7   : > { %v2138_v16 = vmul.f32 %v3753_v6, %v2122_v8  ;;  %v2203_v17 = vpop.xlane.xlu2 %2202  ;;  %v2131_v26 = vsel %vm2130_vm10, %v3751_v5, %v2127_v14  ;;  %vm2143_vm11 = vweird.f32 %v3753_v6  ;;  %v3630_v5 = vld [vmem:[%s4321_s6 + $0xd8] sm:$0xff]  ;;  %v3628_v8 = vld [vmem:[%s4321_s6 + $0xc8] sm:$0xff] }
 0x9f8   : > { %3754 = vrcp.f32 %v2203_v17  ;;  %v2136_v33 = vsel %vm2133_vm12, %v2135_v30, %v2131_v26  ;;  %vm2144_vm14 = vmor %vm2142_vm13, %vm2143_vm11  ;;  %v2218_v63 = vand.u32 2147483648, %v2203_v17  ;;  %vm2212_vm2 = vweird.f32 %v2203_v17 }
 0x9f9   : > { %v2139_v23 = vsub.f32 1.0, %v2138_v16  ;;  %v2151_v40 = vmul.f32 %v4206_v54, %v2136_v33  ;;  %v2216_v49 = vand.u32 2147483647, %v2203_v17 }
 0x9fa   : > { %v2219_v55 = vor.u32 1.1754944e-38, %v2218_v63 }
 0x9fb   : > { %v2140_v27 = vmul.f32 %v3753_v6, %v2139_v23  ;;  %vm2217_vm5 = vcmp.eq.f32.partialorder %v2216_v49, 8.507059e+37 }
 0x9fd   : > { %v2141_v31 = vadd.f32 %v3753_v6, %v2140_v27 }
 0x9fe   : > { %v3755_v32 = vpop.eup %3754 }
 0x9ff   : > { %v2145_v35 = vsel %vm2144_vm14, %v3753_v6, %v2141_v31  ;;  %v2208_v36 = vmul.f32 %v3755_v32, %v2203_v17  ;;  %v2206_v37 = vpop.xlane.xlu0 %2205  ;;  %vm2213_vm1 = vweird.f32 %v3755_v32 }
 0xa00   : > { %v2150_v39 = vsel %vm2147_vm15, %v2149_v34, %v2145_v35  ;;  %3756 = vrcp.f32 %v2206_v37  ;;  %vm2214_vm3 = vmor %vm2212_vm2, %vm2213_vm1  ;;  %v2232_v51 = vand.u32 2147483648, %v2206_v37  ;;  %v2230_v54 = vand.u32 2147483647, %v2206_v37 }
 0xa01   : > { %v2152_v41 = vmul.f32 %v4210_v42, %v2150_v39  ;;  %v2209_v43 = vsub.f32 1.0, %v2208_v36  ;;  %vm2226_vm6 = vweird.f32 %v2206_v37 }
 0xa02   : > { %v2233_v58 = vor.u32 1.1754944e-38, %v2232_v51  ;;  %vm2231_vm9 = vcmp.eq.f32.partialorder %v2230_v54, 8.507059e+37 }
 0xa03   : > { %v2210_v44 = vmul.f32 %v3755_v32, %v2209_v43  ;;  %v2153_v45 = vpack.c.bf16 %v2152_v41, %v2151_v40  ;;  %v3642_v40 = vld [vmem:[#allocation4 + $0x78] sm:$0xff]  ;;  %v3640_v41 = vld [vmem:[#allocation4 + $0x68] sm:$0xff]  ;;  %v3639_v43 = vld [vmem:[#allocation4 + $0x60] sm:$0xff] }
 0xa04   : > { %2516 = vmatpush.bf16.msrb.mxu2 %v3642_v40 }
 0xa05   : > { %3350 = vmatmul.msk.bf16.vlgmr.msrb.gmra.mxu3 %vm1088_vm7, %v2153_v45  ;;  %v2211_v47 = vadd.f32 %v3755_v32, %v2210_v44  ;;  %v3638_v44 = vld [vmem:[#allocation4 + $0x58] sm:$0xff]  ;;  %v3637_v45 = vld [vmem:[#allocation4 + $0x50] sm:$0xff] }
 0xa06   : > { %v3757_v62 = vpop.eup %3756 }
 0xa07   : > { %v2222_v48 = vmul.f32 %v3757_v62, %v2206_v37  ;;  %v2215_v52 = vsel %vm2214_vm3, %v3755_v32, %v2211_v47  ;;  %vm2227_vm4 = vweird.f32 %v3757_v62 }
 0xa08   : > { %v2220_v57 = vsel %vm2217_vm5, %v2219_v55, %v2215_v52  ;;  %vm2228_vm8 = vmor %vm2226_vm6, %vm2227_vm4 }
 0xa09   : > { %v2223_v50 = vsub.f32 1.0, %v2222_v48  ;;  %v2235_v9 = vmul.f32 %v4214_v19, %v2220_v57  ;;  %v3620_v19 = vld [vmem:[%s4321_s6 + $0x88] sm:$0xff]  ;;  %v3635_v48 = vld [vmem:[#allocation4 + $0x40] sm:$0xff] }
 0xa0a   : > { %2372 = vmatpush.bf16.msrb.mxu1 %v3620_v19 }
 0xa0b   : > { %v2224_v53 = vmul.f32 %v3757_v62, %v2223_v50 }
 0xa0d   : > { %v2225_v56 = vadd.f32 %v3757_v62, %v2224_v53 }
 0xa0e   : > { %2373 = vmatpush.bf16.msrb.mxu1 %v3619_v4 }
 0xa0f   : > { %v2229_v42 = vsel %vm2228_vm8, %v3757_v62, %v2225_v56 }
 0xa10   : > { %v2234_v61 = vsel %vm2231_vm9, %v2233_v58, %v2229_v42 }
 0xa11   : > { %v2236_v0 = vmul.f32 %v4218_v2, %v2234_v61  ;;  %v3631_v2 = vld [vmem:[%s4321_s6 + $0xe0] sm:$0xff] }
 0xa12   : > { %2307 = vmatpush.bf16.msrb.mxu0 %v3631_v2 }
 0xa13   : > { %v2237_v18 = vpack.c.bf16 %v2236_v0, %v2235_v9 }
 0xa15   : > { %3351 = vmatmul.msk.bf16.vlgmr.msra.gmra.mxu3 %vm1088_vm7, %v2237_v18 }
 0xa16   : > { %2308 = vmatpush.bf16.msrb.mxu0 %v3630_v5  ;;  %v3705_v5 = vld [vmem:[%s4324_s9 + $0x1] ss:$0 sm:$0xff] }
 0xa1a   : > { %2309 = vmatpush.bf16.msrb.mxu0 %v3629_v7 }
 0xa1e   : > { %2310 = vmatpush.bf16.msrb.mxu0 %v3628_v8 }
 0xa22   : > { %2311 = vmatpush.bf16.msrb.mxu0 %v3627_v10 }
 0xa88   : > { %v2166_v11 = vpop.f32.mrf.mxu3 }
 0xa90   : > { %v2168_v12 = vpop.f32.mrf.mxu3 }
 0xa91   : > { %v2171_v6 = vpack.c.bf16 %v2168_v12, %v2166_v11  ;;  %v3650_v12 = vld [vmem:[#allocation6 + $0x78] sm:$0xff] }
 0xa92   : > { %2619 = vmatpush.bf16.msrb.mxu3 %v3650_v12 }
 0xa93   : > { %2374 = vmatmul.bf16.vlgmr.msrb.gmra.mxu1 %v2171_v6  ;;  %v3649_v6 = vld [vmem:[#allocation6 + $0x70] sm:$0xff] }
 0xa96   : > { %2620 = vmatpush.bf16.msrb.mxu3 %v3649_v6 }
 0xa98   : > { %v2250_v13 = vpop.f32.mrf.mxu3 }
 0xaa0   : > { %v2252_v14 = vpop.f32.mrf.mxu3 }
 0xaa1   : > { %v2255_v16 = vpack.c.bf16 %v2252_v14, %v2250_v13  ;;  %v3648_v13 = vld [vmem:[#allocation6 + $0x68] sm:$0xff]  ;;  %v3647_v14 = vld [vmem:[#allocation6 + $0x60] sm:$0xff] }
 0xaa2   : > { %2621 = vmatpush.bf16.msrb.mxu3 %v3648_v13  ;;  %v3709_v13 = vld [vmem:[%s4330_s15 + $0x1] ss:$0 sm:$0xff] }
 0xaa3   : > { %2312 = vmatmul.bf16.vlgmr.msrb.gmra.mxu0 %v2255_v16  ;;  %v3646_v16 = vld [vmem:[#allocation6 + $0x58] sm:$0xff] }
 0xaa6   : > { %2622 = vmatpush.bf16.msrb.mxu3 %v3647_v14 }
 0xaaa   : > { %2623 = vmatpush.bf16.msrb.mxu3 %v3646_v16 }
 0xb10   : > { %v2375_v17 = vpop.f32.mrf.mxu1 }
 0xb18   : > { %v2377_v26 = vpop.f32.mrf.mxu1 }
 0xb20   : > { %v2313_v21 = vpop.f32.mrf.mxu0 }
 0xb21   : > { %v2376_v22 = vadd.f32 %v2375_v17, %v2313_v21  ;;  %v3645_v17 = vld [vmem:[#allocation6 + $0x50] sm:$0xff]  ;;  %v3706_v21 = vld [vmem:[%s4326_s11 + $0x1] ss:$0 sm:$0xff] }
 0xb22   : > { %2624 = vmatpush.bf16.msrb.mxu3 %v3645_v17 }
 0xb23   : > { %v2385_v23 = vadd.f32 %v3703_v20, %v2376_v22 }
 0xb25   : > { %v2387_v25 = vadd.f32 %v2385_v23, %v4189_v59  ;;  %v3643_v23 = vld [vmem:[#allocation6 + $0x40] sm:$0xff] }
 0xb27   : > { %2393 = vadd.xlane.f32.xlu1 %v2387_v25 }
 0xb28   : > { %v2315_v27 = vpop.f32.mrf.mxu0 }
 0xb29   : > { %v2378_v28 = vadd.f32 %v2377_v26, %v2315_v27 }
 0xb2b   : > { %v2386_v29 = vadd.f32 %v3703_v20, %v2378_v28  ;;  %v3644_v20 = vld [vmem:[#allocation6 + $0x48] sm:$0xff] }
 0xb2c   : > { %2625 = vmatpush.bf16.msrb.mxu3 %v3644_v20 }
 0xb2d   : > { %v2388_v30 = vadd.f32 %v2386_v29, %v4191_v60  ;;  %v3641_v60 = vld [vmem:[#allocation4 + $0x70] sm:$0xff] }
 0xb2e   : > { %2517 = vmatpush.bf16.msrb.mxu2 %v3641_v60 }
 0xb2f   : > { %2395 = vadd.xlane.f32.xlu2 %v2388_v30 }
 0xb30   : > { %2626 = vmatpush.bf16.msrb.mxu3 %v3643_v23 }
 0xb32   : > { %2518 = vmatpush.bf16.msrb.mxu2 %v3640_v41 }
 0xb36   : > { %2519 = vmatpush.bf16.msrb.mxu2 %v3639_v43 }
 0xb3a   : > { %2520 = vmatpush.bf16.msrb.mxu2 %v3638_v44 }
 0xb3e   : > { %2521 = vmatpush.bf16.msrb.mxu2 %v3637_v45 }
 0xb42   : > { %2522 = vmatpush.bf16.msrb.mxu2 %v3636_v46  ;;  %v3707_v46 = vld [vmem:[%s4328_s13 + $0x1] ss:$0 sm:$0xff] }
 0xb46   : > { %2523 = vmatpush.bf16.msrb.mxu2 %v3635_v48 }
 0xb9a   : > { %v2394_v31 = vpop.xlane.xlu1 %2393 }
 0xb9b   : > { %v2397_v32 = vmul.f32 0.03125, %v2394_v31 }
 0xb9d   : > { %v2399_v33 = vsub.f32 %v2387_v25, %v2397_v32 }
 0xb9f   : > { %v2401_v34 = vsel %vm594_vm0, %v2399_v33, 0.0 }
 0xba0   : > { %v2403_v35 = vmul.f32 %v2401_v34, %v2401_v34 }
 0xba2   : > { %2405 = vadd.xlane.f32.xlu0 %v2403_v35  ;;  %v2396_v36 = vpop.xlane.xlu2 %2395 }
 0xba3   : > { %v2398_v37 = vmul.f32 0.03125, %v2396_v36 }
 0xba5   : > { %v2400_v38 = vsub.f32 %v2388_v30, %v2398_v37 }
 0xba7   : > { %v2402_v59 = vsel %vm594_vm0, %v2400_v38, 0.0 }
 0xba8   : > { %v2404_v39 = vmul.f32 %v2402_v59, %v2402_v59 }
 0xbaa   : > { %2407 = vadd.xlane.f32.xlu1 %v2404_v39 }
 0xc15   : > { %v2406_v62 = vpop.xlane.xlu0 %2405 }
 0xc16   : > { %v2409_v47 = vmul.f32 0.03125, %v2406_v62 }
 0xc18   : > { %v2411_v63 = vadd.f32 1e-12, %v2409_v47 }
 0xc1a   : > { %3758 = vrsqrt.f32 %v2411_v63  ;;  %vm2419_vm10 = vweird.f32 %v2411_v63 }
 0xc1d   : > { %v2408_v49 = vpop.xlane.xlu1 %2407 }
 0xc1e   : > { %v2410_v50 = vmul.f32 0.03125, %v2408_v49 }
 0xc20   : > { %v3759_v51 = vpop.eup %3758  ;;  %v2412_v52 = vadd.f32 1e-12, %v2410_v50 }
 0xc21   : > { %v2414_v53 = vmul.f32 %v3759_v51, %v2411_v63  ;;  %vm2420_vm7 = vweird.f32 %v3759_v51 }
 0xc22   : > { %3760 = vrsqrt.f32 %v2412_v52  ;;  %vm2421_vm11 = vmor %vm2419_vm10, %vm2420_vm7  ;;  %vm2429_vm13 = vweird.f32 %v2412_v52 }
 0xc23   : > { %v2415_v54 = vmul.f32 %v3759_v51, %v2414_v53 }
 0xc25   : > { %v2416_v55 = vmul.f32 0.5, %v2415_v54 }
 0xc27   : > { %v2417_v56 = vsub.f32 1.5, %v2416_v55 }
 0xc28   : > { %v3761_v57 = vpop.eup %3760 }
 0xc29   : > { %v2418_v58 = vmul.f32 %v3759_v51, %v2417_v56  ;;  %v2424_v42 = vmul.f32 %v3761_v57, %v2412_v52  ;;  %vm2430_vm12 = vweird.f32 %v3761_v57 }
 0xc2a   : > { %vm2431_vm14 = vmor %vm2429_vm13, %vm2430_vm12 }
 0xc2b   : > { %v2425_v61 = vmul.f32 %v3761_v57, %v2424_v42  ;;  %v2422_v9 = vsel %vm2421_vm11, %v3759_v51, %v2418_v58 }
 0xc2c   : > { %v2433_v1 = vmul.f32 %v2422_v9, %v2401_v34 }
 0xc2d   : > { %v2426_v0 = vmul.f32 0.5, %v2425_v61 }
 0xc2e   : > { %v2438_v4 = vmul.f32 %v3704_v24, %v2433_v1 }
 0xc2f   : > { %v2427_v18 = vsub.f32 1.5, %v2426_v0 }
 0xc30   : > { %v2443_v8 = vadd.f32 %v3705_v5, %v2438_v4 }
 0xc31   : > { %v2428_v3 = vmul.f32 %v3761_v57, %v2427_v18 }
 0xc33   : > { %v2432_v19 = vsel %vm2431_vm14, %v3761_v57, %v2428_v3 }
 0xc34   : > { %v2434_v2 = vmul.f32 %v2432_v19, %v2402_v59 }
 0xc36   : > { %v2439_v7 = vmul.f32 %v3704_v24, %v2434_v2 }
 0xc38   : > { %v2444_v10 = vadd.f32 %v3705_v5, %v2439_v7 }
 0xc3a   : > { %v2462_v11 = vpack.c.bf16 %v2444_v10, %v2443_v8 }
 0xc3c   : > { %2524 = vmatmul.bf16.vlgmr.msrb.gmra.mxu2 %v2462_v11  ;;  %v3708_v11 = vld [vmem:[%s4329_s14 + $0x1] ss:$0 sm:$0xff] }
 0xcbf   : > { %v2525_v22 = vpop.f32.mrf.mxu2 }
 0xcc0   : > { %v2526_v25 = vadd.f32 %v3706_v21, %v2525_v22 }
 0xcc2   : > { %v2530_v26 = vmul.f32 %v2526_v25, %v2526_v25 }
 0xcc4   : > { %v2532_v27 = vmul.f32 %v2530_v26, %v2526_v25 }
 0xcc6   : > { %v2534_v28 = vmul.f32 0.044715, %v2532_v27 }
 0xcc7   : > { %v2527_v29 = vpop.f32.mrf.mxu2 }
 0xcc8   : > { %v2536_v30 = vadd.f32 %v2534_v28, %v2526_v25  ;;  %v2528_v31 = vadd.f32 %v3706_v21, %v2527_v29 }
 0xcca   : > { %v2538_v32 = vmul.f32 0.7978846, %v2536_v30  ;;  %v2531_v33 = vmul.f32 %v2528_v31, %v2528_v31 }
 0xccc   : > { %v2533_v34 = vmul.f32 %v2531_v33, %v2528_v31  ;;  %3762 = vtanh.f32 %v2538_v32 }
 0xcce   : > { %v2535_v35 = vmul.f32 0.044715, %v2533_v34 }
 0xcd0   : > { %v2537_v36 = vadd.f32 %v2535_v35, %v2528_v31 }
 0xcd2   : > { %v2539_v37 = vmul.f32 0.7978846, %v2537_v36  ;;  %v3763_v38 = vpop.eup %3762 }
 0xcd3   : > { %v2542_v59 = vadd.f32 1.0, %v3763_v38 }
 0xcd4   : > { %3764 = vtanh.f32 %v2539_v37 }
 0xcd5   : > { %v2544_v40 = vmul.f32 0.5, %v2542_v59 }
 0xcd7   : > { %v2546_v43 = vmul.f32 %v2544_v40, %v2526_v25 }
 0xcda   : > { %v3765_v39 = vpop.eup %3764 }
 0xcdb   : > { %v2543_v60 = vadd.f32 1.0, %v3765_v39 }
 0xcdd   : > { %v2545_v41 = vmul.f32 0.5, %v2543_v60 }
 0xcdf   : > { %v2547_v44 = vmul.f32 %v2545_v41, %v2528_v31 }
 0xce1   : > { %v2565_v45 = vpack.c.bf16 %v2547_v44, %v2546_v43 }
 0xce3   : > { %2627 = vmatmul.bf16.vlgmr.msrb.gmra.mxu3 %v2565_v45 }
 0xd66   : > { %v2628_v62 = vpop.f32.mrf.mxu3 }
 0xd67   : > { %v2629_v47 = vadd.f32 %v3707_v46, %v2628_v62 }
 0xd69   : > { %v2633_v48 = vadd.f32 %v2629_v47, %v2443_v8 }
 0xd6b   : > { %2639 = vadd.xlane.f32.xlu2 %v2633_v48 }
 0xd6e   : > { %v2630_v63 = vpop.f32.mrf.mxu3 }
 0xd6f   : > { %v2631_v49 = vadd.f32 %v3707_v46, %v2630_v63 }
 0xd71   : > { %v2634_v50 = vadd.f32 %v2631_v49, %v2444_v10 }
 0xd73   : > { %2641 = vadd.xlane.f32.xlu0 %v2634_v50 }
 0xdde   : > { %v2640_v51 = vpop.xlane.xlu2 %2639 }
 0xddf   : > { %v2643_v52 = vmul.f32 0.03125, %v2640_v51 }
 0xde1   : > { %v2645_v53 = vsub.f32 %v2633_v48, %v2643_v52 }
 0xde3   : > { %v2647_v54 = vsel %vm594_vm0, %v2645_v53, 0.0 }
 0xde4   : > { %v2649_v55 = vmul.f32 %v2647_v54, %v2647_v54 }
 0xde6   : > { %v2642_v56 = vpop.xlane.xlu0 %2641  ;;  %2651 = vadd.xlane.f32.xlu1 %v2649_v55 }
 0xde7   : > { %v2644_v57 = vmul.f32 0.03125, %v2642_v56 }
 0xde9   : > { %v2646_v58 = vsub.f32 %v2634_v50, %v2644_v57 }
 0xdeb   : > { %v2648_v42 = vsel %vm594_vm0, %v2646_v58, 0.0 }
 0xdec   : > { %v2650_v61 = vmul.f32 %v2648_v42, %v2648_v42 }
 0xdee   : > { %2653 = vadd.xlane.f32.xlu2 %v2650_v61 }
 0xe59   : > { %v2652_v9 = vpop.xlane.xlu1 %2651 }
 0xe5a   : > { %v2655_v0 = vmul.f32 0.03125, %v2652_v9 }
 0xe5c   : > { %v2657_v18 = vadd.f32 1e-12, %v2655_v0 }
 0xe5e   : > { %3766 = vrsqrt.f32 %v2657_v18  ;;  %vm2665_vm0 = vweird.f32 %v2657_v18 }
 0xe61   : > { %v2654_v1 = vpop.xlane.xlu2 %2653 }
 0xe62   : > { %v2656_v24 = vmul.f32 0.03125, %v2654_v1 }
 0xe64   : > { %v3767_v3 = vpop.eup %3766  ;;  %v2658_v19 = vadd.f32 1e-12, %v2656_v24 }
 0xe65   : > { %v2660_v2 = vmul.f32 %v3767_v3, %v2657_v18  ;;  %vm2666_vm15 = vweird.f32 %v3767_v3 }
 0xe66   : > { %3768 = vrsqrt.f32 %v2658_v19  ;;  %vm2667_vm1 = vmor %vm2665_vm0, %vm2666_vm15  ;;  %vm2675_vm3 = vweird.f32 %v2658_v19 }
 0xe67   : > { %v2661_v4 = vmul.f32 %v3767_v3, %v2660_v2 }
 0xe69   : > { %v2662_v5 = vmul.f32 0.5, %v2661_v4 }
 0xe6b   : > { %v2663_v7 = vsub.f32 1.5, %v2662_v5 }
 0xe6c   : > { %v3769_v8 = vpop.eup %3768 }
 0xe6d   : > { %v2664_v15 = vmul.f32 %v3767_v3, %v2663_v7  ;;  %v2670_v10 = vmul.f32 %v3769_v8, %v2658_v19  ;;  %vm2676_vm2 = vweird.f32 %v3769_v8 }
 0xe6e   : > { %vm2677_vm4 = vmor %vm2675_vm3, %vm2676_vm2 }
 0xe6f   : > { %v2668_v12 = vsel %vm2667_vm1, %v3767_v3, %v2664_v15  ;;  %v2671_v6 = vmul.f32 %v3769_v8, %v2670_v10 }
 0xe70   : > { %v2679_v14 = vmul.f32 %v2668_v12, %v2647_v54 }
 0xe71   : > { %v2672_v16 = vmul.f32 0.5, %v2671_v6 }
 0xe72   : > { %v2684_v17 = vmul.f32 %v3708_v11, %v2679_v14 }
 0xe73   : > { %v2673_v20 = vsub.f32 1.5, %v2672_v16 }
 0xe74   : > { %v2689_v21 = vadd.f32 %v3709_v13, %v2684_v17 }
 0xe75   : > { %v2674_v22 = vmul.f32 %v3769_v8, %v2673_v20 }
 0xe76   : > { %2691 = vst [vmem:[%s585_s28] sm:$0xff] %v2689_v21 }
 0xe77   : > { %v2678_v23 = vsel %vm2677_vm4, %v3769_v8, %v2674_v22 }
 0xe78   : > { %v2680_v25 = vmul.f32 %v2678_v23, %v2648_v42 }
 0xe7a   : > { %v2685_v26 = vmul.f32 %v3708_v11, %v2680_v25 }
 0xe7c   : > { %v2690_v27 = vadd.f32 %v3709_v13, %v2685_v26 }
 0xe7e   : > { %2692 = vst [vmem:[%s585_s28 + $0x8] sm:$0xff] %v2690_v27 }
 0xe7f PF: > { %s4344_s0 = sld [smem:[#allocation9_spill]] }
 0xe85   : > { %s28_s21 = sadd.s32 1, %s4344_s0  }
 0xe86   : > { %p25_p7 = scmp.ge.s32.totalorder %s28_s21, 4  }
 0xe88   :  { %27 = sbr.rel (!%p25_p7) target bundleno = 6 (0x6), region = 142 }
 0xe8d   :  { %2714 = vsyncpa [#allocation3], 1 }
 0xe8e   :  { %2716 = vsyncpa [#allocation3 + $0x1], 1 }
 0xe8f   :  { %2717 = vsyncpa [#allocation5], 1 }

</bundles_post_ra>
